<compile_context>
chip_gen: v7x
topology: tpu7x:2x2x1
jax: 0.10.0
libtpu: 0.0.40
codegen_flags: <defaults>
</compile_context>

<pallas_src>
import functools

import jax
import jax.numpy as jnp
from jax import lax
from jax.experimental import pallas as pl
from jax.experimental.pallas import tpu as pltpu

BN_EPS = 1e-5
LANE = 128


def _round_up(v, m):
    return ((v + m - 1) // m) * m


# ---------------------------------------------------------------------------------------
# kernels
# ---------------------------------------------------------------------------------------
def _im2col_matmul(src_ref, w_ref, TN, H, W, Cp):
    """3x3 SAME conv on a spatially padded (TN, H+2, W+2, Cp) ref as ONE MXU matmul."""
    M = TN * H * W
    slabs = []
    for dy in range(3):
        for dx in range(3):
            s = src_ref[:, dy:dy + H, dx:dx + W, :].reshape(M, Cp)
            slabs.append(s.astype(jnp.bfloat16))
    patch = jnp.concatenate(slabs, axis=-1)                       # (M, 9*Cp) bf16, lane-dense
    return jnp.dot(patch, w_ref[...], preferred_element_type=jnp.float32)


def _channel_stats(y):
    """Per-channel (sum, sum of squares) partials of this tile -> (2, C) f32."""
    s = jnp.sum(y, axis=0, keepdims=True)
    sq = jnp.sum(y * y, axis=0, keepdims=True)
    return jnp.concatenate([s, sq], axis=0)


def _conv1_kernel(xpad_ref, w1_ref, y1_ref, st1_ref, *, TN, H, W, Cin_p, Cmid_p):
    y = _im2col_matmul(xpad_ref, w1_ref, TN, H, W, Cin_p)         # (M, Cmid_p) f32
    y1_ref[...] = y.reshape(TN, H, W, Cmid_p)
    st1_ref[...] = _channel_stats(y).reshape(1, 2, Cmid_p)


def _conv1_ds_kernel(xpad_ref, w1_ref, wd_ref, y1_ref, st1_ref, id_ref, std_ref,
                     *, TN, H, W, Cin_p, Cmid_p, Cout_p):
    M = TN * H * W
    y = _im2col_matmul(xpad_ref, w1_ref, TN, H, W, Cin_p)
    y1_ref[...] = y.reshape(TN, H, W, Cmid_p)
    st1_ref[...] = _channel_stats(y).reshape(1, 2, Cmid_p)
    # downsample identity: 1x1 conv on the interior of the already-streamed x tile
    xin = xpad_ref[:, 1:H + 1, 1:W + 1, :].reshape(M, Cin_p).astype(jnp.bfloat16)
    idv = jnp.dot(xin, wd_ref[...], preferred_element_type=jnp.float32)
    id_ref[...] = idv.reshape(TN, H, W, Cout_p)
    std_ref[...] = _channel_stats(idv).reshape(1, 2, Cout_p)


def _bn1_relu_conv2_kernel(y1_ref, s1_ref, t1_ref, w2_ref, y2_ref, st2_ref, pad_ref,
                           *, TN, H, W, Cmid_p, Cout_p):
    # bn1 (scale/shift precomputed from global stats) + relu, f32
    act = jnp.maximum(y1_ref[...] * s1_ref[...] + t1_ref[...], 0.0)
    # rebuild the zero halo in a VMEM scratch (no HBM pad round trip)
    pad_ref[...] = jnp.zeros(pad_ref.shape, pad_ref.dtype)
    pad_ref[:, 1:H + 1, 1:W + 1, :] = act
    y = _im2col_matmul(pad_ref, w2_ref, TN, H, W, Cmid_p)
    y2_ref[...] = y.reshape(TN, H, W, Cout_p)
    st2_ref[...] = _channel_stats(y).reshape(1, 2, Cout_p)


def _bn2_add_relu_ds_kernel(y2_ref, s2_ref, t2_ref, id_ref, sd_ref, td_ref, out_ref):
    main = y2_ref[...] * s2_ref[...] + t2_ref[...]
    ident = id_ref[...] * sd_ref[...] + td_ref[...]
    out_ref[...] = jnp.maximum(main + ident, 0.0)


def _bn2_add_relu_kernel(y2_ref, s2_ref, t2_ref, x_ref, out_ref):
    out_ref[...] = jnp.maximum(y2_ref[...] * s2_ref[...] + t2_ref[...] + x_ref[...], 0.0)


# ---------------------------------------------------------------------------------------
# wrapper helpers
# ---------------------------------------------------------------------------------------
def _tile_spec(block_shape):
    nd = len(block_shape)
    return pl.BlockSpec(block_shape, lambda n, _nd=nd: (n,) + (0,) * (_nd - 1))


def _bcast_spec(shape):
    nd = len(shape)
    return pl.BlockSpec(shape, lambda n, _nd=nd: (0,) * _nd)


def _pad_last(a, cp):
    pad = cp - a.shape[-1]
    if pad == 0:
        return a
    return jnp.pad(a, [(0, 0)] * (a.ndim - 1) + [(0, pad)])


def _pack_w3x3(w, cin_p, cout_p):
    kh, kw, ci, co = w.shape
    wp = jnp.zeros((kh, kw, cin_p, cout_p), jnp.float32).at[:, :, :ci, :co].set(
        w.astype(jnp.float32))
    return wp.reshape(kh * kw * cin_p, cout_p).astype(jnp.bfloat16)


def _pack_w1x1(w, cin_p, cout_p):
    ci, co = w.shape
    wp = jnp.zeros((cin_p, cout_p), jnp.float32).at[:ci, :co].set(w.astype(jnp.float32))
    return wp.astype(jnp.bfloat16)


def _pad_vec(v, cp):
    return jnp.pad(v.astype(jnp.float32), (0, cp - v.shape[0]))


def _scale_shift(stats, gamma_p, beta_p, count):
    """Fold per-tile (sum, sumsq) partials into BN scale/shift (train-mode, biased var)."""
    s = jnp.sum(stats[:, 0, :], axis=0)
    sq = jnp.sum(stats[:, 1, :], axis=0)
    mean = s / count
    var = jnp.maximum(sq / count - mean * mean, 0.0)
    scale = gamma_p * lax.rsqrt(var + BN_EPS)
    shift = beta_p - mean * scale
    return scale.reshape(1, -1), shift.reshape(1, -1)


# ---------------------------------------------------------------------------------------
# forward
# ---------------------------------------------------------------------------------------
@functools.partial(jax.jit, static_argnames=("stride", "images_per_step"))
def residual_block_forward(x_nchw, params, stride=1, images_per_step=1):
    if stride != 1:
        # TODO(synk): strided (stride>1) conv / downsample path not implemented.
        raise NotImplementedError("stride > 1 not supported in this kernel")

    N, Cin, H, W = x_nchw.shape
    w1, w2 = params["w1"], params["w2"]
    Cmid, Cout = w1.shape[-1], w2.shape[-1]
    has_ds = "wd" in params

    Cin_p = _round_up(Cin, LANE)        # lane-dense channels (multiples of 128)
    Cmid_p = _round_up(Cmid, LANE)
    Cout_p = _round_up(Cout, LANE)

    TN = images_per_step                # images per grid step; raise for larger VMEM budgets
    if N % TN:
        raise ValueError("batch must be divisible by images_per_step")
    nT = N // TN
    M = N * H * W

    # NCHW -> NHWC at the block boundary only.
    x = jnp.transpose(x_nchw, (0, 2, 3, 1)).astype(jnp.float32)
    x_p = _pad_last(x, Cin_p)
    xpad = jnp.pad(x_p, ((0, 0), (1, 1), (1, 1), (0, 0)))         # zero halo for conv1

    w1f = _pack_w3x3(w1, Cin_p, Cmid_p)                           # (9*Cin_p, Cmid_p) bf16
    w2f = _pack_w3x3(w2, Cmid_p, Cout_p)                          # (9*Cmid_p, Cout_p) bf16

    # Tiles here are tiny; set a modest explicit scoped-VMEM limit that is safe on
    # v5e/v6e/v7x.  For real ResNet shapes re-derive TN per generation (64 MiB on v7x).
    cparams = pltpu.CompilerParams(dimension_semantics=("parallel",),
                                   vmem_limit_bytes=32 * 1024 * 1024)

    # ---- stage 1: conv1 (+ fused 1x1 downsample) + per-tile BN partial stats ----------
    in_arrays = [xpad, w1f]
    in_specs = [_tile_spec((TN, H + 2, W + 2, Cin_p)), _bcast_spec(w1f.shape)]
    out_shape = [jax.ShapeDtypeStruct((N, H, W, Cmid_p), jnp.float32),
                 jax.ShapeDtypeStruct((nT, 2, Cmid_p), jnp.float32)]
    out_specs = [_tile_spec((TN, H, W, Cmid_p)), _tile_spec((1, 2, Cmid_p))]
    if has_ds:
        wdf = _pack_w1x1(params["wd"], Cin_p, Cout_p)
        in_arrays.append(wdf)
        in_specs.append(_bcast_spec(wdf.shape))
        out_shape += [jax.ShapeDtypeStruct((N, H, W, Cout_p), jnp.float32),
                      jax.ShapeDtypeStruct((nT, 2, Cout_p), jnp.float32)]
        out_specs += [_tile_spec((TN, H, W, Cout_p)), _tile_spec((1, 2, Cout_p))]
        k1 = functools.partial(_conv1_ds_kernel, TN=TN, H=H, W=W,
                               Cin_p=Cin_p, Cmid_p=Cmid_p, Cout_p=Cout_p)
    else:
        k1 = functools.partial(_conv1_kernel, TN=TN, H=H, W=W, Cin_p=Cin_p, Cmid_p=Cmid_p)

    res1 = pl.pallas_call(
        k1, out_shape=tuple(out_shape), grid=(nT,),
        in_specs=in_specs, out_specs=tuple(out_specs),
        compiler_params=cparams)(*in_arrays)
    if has_ds:
        y1_raw, stats1, id_raw, statsd = res1
    else:
        y1_raw, stats1 = res1

    s1, t1 = _scale_shift(stats1, _pad_vec(params["g1"], Cmid_p),
                          _pad_vec(params["b1"], Cmid_p), M)

    # ---- stage 2: bn1 + relu + conv2 (halo rebuilt in VMEM) ----------------------------
    k2 = functools.partial(_bn1_relu_conv2_kernel, TN=TN, H=H, W=W,
                           Cmid_p=Cmid_p, Cout_p=Cout_p)
    y2_raw, stats2 = pl.pallas_call(
        k2,
        out_shape=(jax.ShapeDtypeStruct((N, H, W, Cout_p), jnp.float32),
                   jax.ShapeDtypeStruct((nT, 2, Cout_p), jnp.float32)),
        grid=(nT,),
        in_specs=[_tile_spec((TN, H, W, Cmid_p)), _bcast_spec((1, Cmid_p)),
                  _bcast_spec((1, Cmid_p)), _bcast_spec(w2f.shape)],
        out_specs=(_tile_spec((TN, H, W, Cout_p)), _tile_spec((1, 2, Cout_p))),
        scratch_shapes=[pltpu.VMEM((TN, H + 2, W + 2, Cmid_p), jnp.float32)],
        compiler_params=cparams)(y1_raw, s1, t1, w2f)

    s2, t2 = _scale_shift(stats2, _pad_vec(params["g2"], Cout_p),
                          _pad_vec(params["b2"], Cout_p), M)

    # ---- stage 3: bn2 + identity add + relu --------------------------------------------
    if has_ds:
        sd, td = _scale_shift(statsd, _pad_vec(params["gd"], Cout_p),
                              _pad_vec(params["bd"], Cout_p), M)
        out_p = pl.pallas_call(
            _bn2_add_relu_ds_kernel,
            out_shape=jax.ShapeDtypeStruct((N, H, W, Cout_p), jnp.float32),
            grid=(nT,),
            in_specs=[_tile_spec((TN, H, W, Cout_p)), _bcast_spec((1, Cout_p)),
                      _bcast_spec((1, Cout_p)), _tile_spec((TN, H, W, Cout_p)),
                      _bcast_spec((1, Cout_p)), _bcast_spec((1, Cout_p))],
            out_specs=_tile_spec((TN, H, W, Cout_p)),
            compiler_params=cparams)(y2_raw, s2, t2, id_raw, sd, td)
    else:
        out_p = pl.pallas_call(
            _bn2_add_relu_kernel,
            out_shape=jax.ShapeDtypeStruct((N, H, W, Cout_p), jnp.float32),
            grid=(nT,),
            in_specs=[_tile_spec((TN, H, W, Cout_p)), _bcast_spec((1, Cout_p)),
                      _bcast_spec((1, Cout_p)), _tile_spec((TN, H, W, Cout_p))],
            out_specs=_tile_spec((TN, H, W, Cout_p)),
            compiler_params=cparams)(y2_raw, s2, t2, x_p)

    return jnp.transpose(out_p[..., :Cout], (0, 3, 1, 2))         # NHWC -> NCHW


# ---------------------------------------------------------------------------------------
# pure-JAX reference (PyTorch train-mode BN forward); bf16_matmul matches MXU precision
# ---------------------------------------------------------------------------------------
def _bn_ref(x_nhwc, gamma, beta):
    mean = jnp.mean(x_nhwc, axis=(0, 1, 2), keepdims=True)
    var = jnp.mean(jnp.square(x_nhwc - mean), axis=(0, 1, 2), keepdims=True)
    return (x_nhwc - mean) * lax.rsqrt(var + BN_EPS) * gamma + beta


def residual_block_ref(x_nchw, params, bf16_matmul=True):
    cast = (lambda a: a.astype(jnp.bfloat16)) if bf16_matmul else (lambda a: a.astype(jnp.float32))
    x = jnp.transpose(x_nchw, (0, 2, 3, 1)).astype(jnp.float32)

    def conv(a, w):
        return lax.conv_general_dilated(
            cast(a), cast(w), (1, 1), "SAME",
            dimension_numbers=("NHWC", "HWIO", "NHWC"),
            preferred_element_type=jnp.float32)

    y = jnp.maximum(_bn_ref(conv(x, params["w1"]), params["g1"], params["b1"]), 0.0)
    y = _bn_ref(conv(y, params["w2"]), params["g2"], params["b2"])
    if "wd" in params:
        N, H, W, C = x.shape
        ident = jnp.dot(cast(x).reshape(N * H * W, C), cast(params["wd"]),
                        preferred_element_type=jnp.float32).reshape(N, H, W, -1)
        ident = _bn_ref(ident, params["gd"], params["bd"])
    else:
        ident = x
    return jnp.transpose(jnp.maximum(y + ident, 0.0), (0, 3, 1, 2))


if __name__ == "__main__":
    key = jax.random.PRNGKey(0)

    def make_params(k, cin, cout, downsample):
        ks = jax.random.split(k, 9)
        p = {
            "w1": jax.random.normal(ks[0], (3, 3, cin, cout), jnp.float32) * (2.0 / (9 * cin)) ** 0.5,
            "g1": 1.0 + 0.1 * jax.random.normal(ks[1], (cout,), jnp.float32),
            "b1": 0.1 * jax.random.normal(ks[2], (cout,), jnp.float32),
            "w2": jax.random.normal(ks[3], (3, 3, cout, cout), jnp.float32) * (2.0 / (9 * cout)) ** 0.5,
            "g2": 1.0 + 0.1 * jax.random.normal(ks[4], (cout,), jnp.float32),
            "b2": 0.1 * jax.random.normal(ks[5], (cout,), jnp.float32),
        }
        if downsample:
            p["wd"] = jax.random.normal(ks[6], (cin, cout), jnp.float32) * (2.0 / cin) ** 0.5
            p["gd"] = 1.0 + 0.1 * jax.random.normal(ks[7], (cout,), jnp.float32)
            p["bd"] = 0.1 * jax.random.normal(ks[8], (cout,), jnp.float32)
        return p

    # case 1: Cin != Cout -> downsample (1x1 conv + BN) identity path
    N, Cin, H, W, Cout = 2, 4, 16, 16, 8
    kx, kp = jax.random.split(key)
    x = jax.random.normal(kx, (N, Cin, H, W), jnp.float32)
    params = make_params(kp, Cin, Cout, downsample=True)

    out = jax.block_until_ready(residual_block_forward(x, params))
    assert out.shape == (N, Cout, H, W), out.shape
    ref_match = residual_block_ref(x, params, bf16_matmul=True)   # matched MXU precision
    ref_f32 = residual_block_ref(x, params, bf16_matmul=False)    # full-f32 sanity check
    err_m = float(jnp.max(jnp.abs(out - ref_match)))
    err_f = float(jnp.max(jnp.abs(out - ref_f32)))
    assert err_m < 5e-3, f"downsample path mismatch vs matched reference: {err_m}"
    assert err_f < 1e-1, f"downsample path mismatch vs f32 reference: {err_f}"

    # case 2: Cin == Cout -> plain passthrough identity
    N2, C2 = 2, 8
    kx2, kp2 = jax.random.split(kp)
    x2 = jax.random.normal(kx2, (N2, C2, H, W), jnp.float32)
    params2 = make_params(kp2, C2, C2, downsample=False)
    out2 = jax.block_until_ready(residual_block_forward(x2, params2))
    assert out2.shape == (N2, C2, H, W), out2.shape
    err2 = float(jnp.max(jnp.abs(out2 - residual_block_ref(x2, params2, bf16_matmul=True))))
    assert err2 < 5e-3, f"identity path mismatch vs matched reference: {err2}"

    print("KERNEL_OK")
</pallas_src>

<mosaic_0001>
module attributes {stable_mosaic.version = 11 : i64} {
  func.func @_conv1_ds_kernel(%arg0: i32, %arg1: memref<1x18x18x128xf32, #tpu.memory_space<vmem>>, %arg2: memref<1152x128xbf16, #tpu.memory_space<vmem>>, %arg3: memref<128x128xbf16, #tpu.memory_space<vmem>>, %arg4: memref<1x16x16x128xf32, #tpu.memory_space<vmem>>, %arg5: memref<1x2x128xf32, #tpu.memory_space<vmem>>, %arg6: memref<1x16x16x128xf32, #tpu.memory_space<vmem>>, %arg7: memref<1x2x128xf32, #tpu.memory_space<vmem>>) attributes {dimension_semantics = [#tpu.dimension_semantics<parallel>], iteration_bounds = array<i64: 2>, scalar_prefetch = 0 : i64, scratch_operands = 0 : i64, tpu.core_type = #tpu.core_type<tc>, window_params = [{transform_indices = @transform_0, window_bounds = array<i64: 1, 18, 18, 128>}, {pipeline_mode = #tpu.pipeline_mode<synchronous>, transform_indices = @transform_1, window_bounds = array<i64: 1152, 128>}, {pipeline_mode = #tpu.pipeline_mode<synchronous>, transform_indices = @transform_2, window_bounds = array<i64: 128, 128>}, {transform_indices = @transform_3, window_bounds = array<i64: 1, 16, 16, 128>}, {transform_indices = @transform_4, window_bounds = array<i64: 1, 2, 128>}, {transform_indices = @transform_5, window_bounds = array<i64: 1, 16, 16, 128>}, {transform_indices = @transform_6, window_bounds = array<i64: 1, 2, 128>}]} {
    %c0 = arith.constant 0 : index
    %c0_0 = arith.constant 0 : index
    %c0_1 = arith.constant 0 : index
    %c0_2 = arith.constant 0 : index
    %0 = vector.load %arg1[%c0, %c0_0, %c0_1, %c0_2] : memref<1x18x18x128xf32, #tpu.memory_space<vmem>>, vector<1x16x16x128xf32>
    %1 = vector.shape_cast %0 : vector<1x16x16x128xf32> to vector<256x128xf32>
    %2 = arith.truncf %1 : vector<256x128xf32> to vector<256x128xbf16>
    %c0_3 = arith.constant 0 : index
    %c0_4 = arith.constant 0 : index
    %c1 = arith.constant 1 : index
    %c0_5 = arith.constant 0 : index
    %3 = vector.load %arg1[%c0_3, %c0_4, %c1, %c0_5] : memref<1x18x18x128xf32, #tpu.memory_space<vmem>>, vector<1x16x16x128xf32>
    %4 = vector.shape_cast %3 : vector<1x16x16x128xf32> to vector<256x128xf32>
    %5 = arith.truncf %4 : vector<256x128xf32> to vector<256x128xbf16>
    %c0_6 = arith.constant 0 : index
    %c0_7 = arith.constant 0 : index
    %c2 = arith.constant 2 : index
    %c0_8 = arith.constant 0 : index
    %6 = vector.load %arg1[%c0_6, %c0_7, %c2, %c0_8] : memref<1x18x18x128xf32, #tpu.memory_space<vmem>>, vector<1x16x16x128xf32>
    %7 = vector.shape_cast %6 : vector<1x16x16x128xf32> to vector<256x128xf32>
    %8 = arith.truncf %7 : vector<256x128xf32> to vector<256x128xbf16>
    %c0_9 = arith.constant 0 : index
    %c1_10 = arith.constant 1 : index
    %c0_11 = arith.constant 0 : index
    %c0_12 = arith.constant 0 : index
    %9 = vector.load %arg1[%c0_9, %c1_10, %c0_11, %c0_12] : memref<1x18x18x128xf32, #tpu.memory_space<vmem>>, vector<1x16x16x128xf32>
    %10 = vector.shape_cast %9 : vector<1x16x16x128xf32> to vector<256x128xf32>
    %11 = arith.truncf %10 : vector<256x128xf32> to vector<256x128xbf16>
    %c0_13 = arith.constant 0 : index
    %c1_14 = arith.constant 1 : index
    %c1_15 = arith.constant 1 : index
    %c0_16 = arith.constant 0 : index
    %12 = vector.load %arg1[%c0_13, %c1_14, %c1_15, %c0_16] : memref<1x18x18x128xf32, #tpu.memory_space<vmem>>, vector<1x16x16x128xf32>
    %13 = vector.shape_cast %12 : vector<1x16x16x128xf32> to vector<256x128xf32>
    %14 = arith.truncf %13 : vector<256x128xf32> to vector<256x128xbf16>
    %c0_17 = arith.constant 0 : index
    %c1_18 = arith.constant 1 : index
    %c2_19 = arith.constant 2 : index
    %c0_20 = arith.constant 0 : index
    %15 = vector.load %arg1[%c0_17, %c1_18, %c2_19, %c0_20] : memref<1x18x18x128xf32, #tpu.memory_space<vmem>>, vector<1x16x16x128xf32>
    %16 = vector.shape_cast %15 : vector<1x16x16x128xf32> to vector<256x128xf32>
    %17 = arith.truncf %16 : vector<256x128xf32> to vector<256x128xbf16>
    %c0_21 = arith.constant 0 : index
    %c2_22 = arith.constant 2 : index
    %c0_23 = arith.constant 0 : index
    %c0_24 = arith.constant 0 : index
    %18 = vector.load %arg1[%c0_21, %c2_22, %c0_23, %c0_24] : memref<1x18x18x128xf32, #tpu.memory_space<vmem>>, vector<1x16x16x128xf32>
    %19 = vector.shape_cast %18 : vector<1x16x16x128xf32> to vector<256x128xf32>
    %20 = arith.truncf %19 : vector<256x128xf32> to vector<256x128xbf16>
    %c0_25 = arith.constant 0 : index
    %c2_26 = arith.constant 2 : index
    %c1_27 = arith.constant 1 : index
    %c0_28 = arith.constant 0 : index
    %21 = vector.load %arg1[%c0_25, %c2_26, %c1_27, %c0_28] : memref<1x18x18x128xf32, #tpu.memory_space<vmem>>, vector<1x16x16x128xf32>
    %22 = vector.shape_cast %21 : vector<1x16x16x128xf32> to vector<256x128xf32>
    %23 = arith.truncf %22 : vector<256x128xf32> to vector<256x128xbf16>
    %c0_29 = arith.constant 0 : index
    %c2_30 = arith.constant 2 : index
    %c2_31 = arith.constant 2 : index
    %c0_32 = arith.constant 0 : index
    %24 = vector.load %arg1[%c0_29, %c2_30, %c2_31, %c0_32] : memref<1x18x18x128xf32, #tpu.memory_space<vmem>>, vector<1x16x16x128xf32>
    %25 = vector.shape_cast %24 : vector<1x16x16x128xf32> to vector<256x128xf32>
    %26 = arith.truncf %25 : vector<256x128xf32> to vector<256x128xbf16>
    %27 = tpu.concatenate %2, %5, %8, %11, %14, %17, %20, %23, %26 in 1 : vector<256x128xbf16>, vector<256x128xbf16>, vector<256x128xbf16>, vector<256x128xbf16>, vector<256x128xbf16>, vector<256x128xbf16>, vector<256x128xbf16>, vector<256x128xbf16>, vector<256x128xbf16> -> vector<256x1152xbf16>
    %c0_33 = arith.constant 0 : index
    %c0_34 = arith.constant 0 : index
    %28 = vector.load %arg2[%c0_33, %c0_34] : memref<1152x128xbf16, #tpu.memory_space<vmem>>, vector<1152x128xbf16>
    %cst = arith.constant dense<0.000000e+00> : vector<256x128xf32>
    %29 = tpu.matmul %27, %28, %cst {dimension_numbers = #tpu.dot_dimension_numbers<[1], [0], [0], [1], [0, 0, 1, 1], [], []>} : vector<256x1152xbf16>, vector<1152x128xbf16>, vector<256x128xf32> -> vector<256x128xf32>
    %30 = vector.shape_cast %29 : vector<256x128xf32> to vector<1x16x16x128xf32>
    %c0_35 = arith.constant 0 : index
    %c0_36 = arith.constant 0 : index
    %c0_37 = arith.constant 0 : index
    %c0_38 = arith.constant 0 : index
    %31 = vector.load %arg4[%c0_35, %c0_36, %c0_37, %c0_38] : memref<1x16x16x128xf32, #tpu.memory_space<vmem>>, vector<1x16x16x128xf32>
    tpu.vector_store %arg4[%c0_35, %c0_36, %c0_37, %c0_38], %30 {strides = array<i32>} : memref<1x16x16x128xf32, #tpu.memory_space<vmem>>, vector<1x16x16x128xf32>,
    %cst_39 = arith.constant dense<0.000000e+00> : vector<128xf32>
    %32 = vector.multi_reduction <add>, %29, %cst_39 [0] : vector<256x128xf32> to vector<128xf32>
    %33 = vector.shape_cast %32 : vector<128xf32> to vector<1x128xf32>
    %34 = arith.mulf %29, %29 : vector<256x128xf32>
    %cst_40 = arith.constant dense<0.000000e+00> : vector<128xf32>
    %35 = vector.multi_reduction <add>, %34, %cst_40 [0] : vector<256x128xf32> to vector<128xf32>
    %36 = vector.shape_cast %35 : vector<128xf32> to vector<1x128xf32>
    %37 = tpu.concatenate %33, %36 in 0 : vector<1x128xf32>, vector<1x128xf32> -> vector<2x128xf32>
    %38 = vector.shape_cast %37 : vector<2x128xf32> to vector<1x2x128xf32>
    %c0_41 = arith.constant 0 : index
    %c0_42 = arith.constant 0 : index
    %c0_43 = arith.constant 0 : index
    %39 = vector.load %arg5[%c0_41, %c0_42, %c0_43] : memref<1x2x128xf32, #tpu.memory_space<vmem>>, vector<1x2x128xf32>
    tpu.vector_store %arg5[%c0_41, %c0_42, %c0_43], %38 {strides = array<i32>} : memref<1x2x128xf32, #tpu.memory_space<vmem>>, vector<1x2x128xf32>,
    %c0_44 = arith.constant 0 : index
    %c1_45 = arith.constant 1 : index
    %c1_46 = arith.constant 1 : index
    %c0_47 = arith.constant 0 : index
    %40 = vector.load %arg1[%c0_44, %c1_45, %c1_46, %c0_47] : memref<1x18x18x128xf32, #tpu.memory_space<vmem>>, vector<1x16x16x128xf32>
    %41 = vector.shape_cast %40 : vector<1x16x16x128xf32> to vector<256x128xf32>
    %42 = arith.truncf %41 : vector<256x128xf32> to vector<256x128xbf16>
    %c0_48 = arith.constant 0 : index
    %c0_49 = arith.constant 0 : index
    %43 = vector.load %arg3[%c0_48, %c0_49] : memref<128x128xbf16, #tpu.memory_space<vmem>>, vector<128x128xbf16>
    %cst_50 = arith.constant dense<0.000000e+00> : vector<256x128xf32>
    %44 = tpu.matmul %42, %43, %cst_50 {dimension_numbers = #tpu.dot_dimension_numbers<[1], [0], [0], [1], [0, 0, 1, 1], [], []>} : vector<256x128xbf16>, vector<128x128xbf16>, vector<256x128xf32> -> vector<256x128xf32>
    %45 = vector.shape_cast %44 : vector<256x128xf32> to vector<1x16x16x128xf32>
    %c0_51 = arith.constant 0 : index
    %c0_52 = arith.constant 0 : index
    %c0_53 = arith.constant 0 : index
    %c0_54 = arith.constant 0 : index
    %46 = vector.load %arg6[%c0_51, %c0_52, %c0_53, %c0_54] : memref<1x16x16x128xf32, #tpu.memory_space<vmem>>, vector<1x16x16x128xf32>
    tpu.vector_store %arg6[%c0_51, %c0_52, %c0_53, %c0_54], %45 {strides = array<i32>} : memref<1x16x16x128xf32, #tpu.memory_space<vmem>>, vector<1x16x16x128xf32>,
    %cst_55 = arith.constant dense<0.000000e+00> : vector<128xf32>
    %47 = vector.multi_reduction <add>, %44, %cst_55 [0] : vector<256x128xf32> to vector<128xf32>
    %48 = vector.shape_cast %47 : vector<128xf32> to vector<1x128xf32>
    %49 = arith.mulf %44, %44 : vector<256x128xf32>
    %cst_56 = arith.constant dense<0.000000e+00> : vector<128xf32>
    %50 = vector.multi_reduction <add>, %49, %cst_56 [0] : vector<256x128xf32> to vector<128xf32>
    %51 = vector.shape_cast %50 : vector<128xf32> to vector<1x128xf32>
    %52 = tpu.concatenate %48, %51 in 0 : vector<1x128xf32>, vector<1x128xf32> -> vector<2x128xf32>
    %53 = vector.shape_cast %52 : vector<2x128xf32> to vector<1x2x128xf32>
    %c0_57 = arith.constant 0 : index
    %c0_58 = arith.constant 0 : index
    %c0_59 = arith.constant 0 : index
    %54 = vector.load %arg7[%c0_57, %c0_58, %c0_59] : memref<1x2x128xf32, #tpu.memory_space<vmem>>, vector<1x2x128xf32>
    tpu.vector_store %arg7[%c0_57, %c0_58, %c0_59], %53 {strides = array<i32>} : memref<1x2x128xf32, #tpu.memory_space<vmem>>, vector<1x2x128xf32>,
    return
  }
  func.func @transform_0(%arg0: i32) -> (i32, i32, i32, i32) {
    %c0_i32 = arith.constant 0 : i32
    %c0_i32_0 = arith.constant 0 : i32
    %c0_i32_1 = arith.constant 0 : i32
    %c0_i32_2 = arith.constant 0 : i32
    return %arg0, %c0_i32, %c0_i32_0, %c0_i32_1 : i32, i32, i32, i32
  }
  func.func @transform_1(%arg0: i32) -> (i32, i32) {
    %c0_i32 = arith.constant 0 : i32
    %c0_i32_0 = arith.constant 0 : i32
    %c0_i32_1 = arith.constant 0 : i32
    return %c0_i32, %c0_i32_0 : i32, i32
  }
  func.func @transform_2(%arg0: i32) -> (i32, i32) {
    %c0_i32 = arith.constant 0 : i32
    %c0_i32_0 = arith.constant 0 : i32
    %c0_i32_1 = arith.constant 0 : i32
    return %c0_i32, %c0_i32_0 : i32, i32
  }
  func.func @transform_3(%arg0: i32) -> (i32, i32, i32, i32) {
    %c0_i32 = arith.constant 0 : i32
    %c0_i32_0 = arith.constant 0 : i32
    %c0_i32_1 = arith.constant 0 : i32
    %c0_i32_2 = arith.constant 0 : i32
    return %arg0, %c0_i32, %c0_i32_0, %c0_i32_1 : i32, i32, i32, i32
  }
  func.func @transform_4(%arg0: i32) -> (i32, i32, i32) {
    %c0_i32 = arith.constant 0 : i32
    %c0_i32_0 = arith.constant 0 : i32
    %c0_i32_1 = arith.constant 0 : i32
    return %arg0, %c0_i32, %c0_i32_0 : i32, i32, i32
  }
  func.func @transform_5(%arg0: i32) -> (i32, i32, i32, i32) {
    %c0_i32 = arith.constant 0 : i32
    %c0_i32_0 = arith.constant 0 : i32
    %c0_i32_1 = arith.constant 0 : i32
    %c0_i32_2 = arith.constant 0 : i32
    return %arg0, %c0_i32, %c0_i32_0, %c0_i32_1 : i32, i32, i32, i32
  }
  func.func @transform_6(%arg0: i32) -> (i32, i32, i32) {
    %c0_i32 = arith.constant 0 : i32
    %c0_i32_0 = arith.constant 0 : i32
    %c0_i32_1 = arith.constant 0 : i32
    return %arg0, %c0_i32, %c0_i32_0 : i32, i32, i32
  }
}

module attributes {stable_mosaic.version = 11 : i64} {
  func.func @_bn1_relu_conv2_kernel(%arg0: i32, %arg1: memref<1x16x16x128xf32, #tpu.memory_space<vmem>>, %arg2: memref<1x128xf32, #tpu.memory_space<vmem>>, %arg3: memref<1x128xf32, #tpu.memory_space<vmem>>, %arg4: memref<1152x128xbf16, #tpu.memory_space<vmem>>, %arg5: memref<1x16x16x128xf32, #tpu.memory_space<vmem>>, %arg6: memref<1x2x128xf32, #tpu.memory_space<vmem>>, %arg7: memref<1x18x18x128xf32, #tpu.memory_space<vmem>>) attributes {dimension_semantics = [#tpu.dimension_semantics<parallel>], iteration_bounds = array<i64: 2>, scalar_prefetch = 0 : i64, scratch_operands = 1 : i64, tpu.core_type = #tpu.core_type<tc>, window_params = [{transform_indices = @transform_0, window_bounds = array<i64: 1, 16, 16, 128>}, {pipeline_mode = #tpu.pipeline_mode<synchronous>, transform_indices = @transform_1, window_bounds = array<i64: 1, 128>}, {pipeline_mode = #tpu.pipeline_mode<synchronous>, transform_indices = @transform_2, window_bounds = array<i64: 1, 128>}, {pipeline_mode = #tpu.pipeline_mode<synchronous>, transform_indices = @transform_3, window_bounds = array<i64: 1152, 128>}, {transform_indices = @transform_4, window_bounds = array<i64: 1, 16, 16, 128>}, {transform_indices = @transform_5, window_bounds = array<i64: 1, 2, 128>}]} {
    %c0 = arith.constant 0 : index
    %c0_0 = arith.constant 0 : index
    %c0_1 = arith.constant 0 : index
    %c0_2 = arith.constant 0 : index
    %0 = vector.load %arg1[%c0, %c0_0, %c0_1, %c0_2] : memref<1x16x16x128xf32, #tpu.memory_space<vmem>>, vector<1x16x16x128xf32>
    %c0_3 = arith.constant 0 : index
    %c0_4 = arith.constant 0 : index
    %1 = vector.load %arg2[%c0_3, %c0_4] : memref<1x128xf32, #tpu.memory_space<vmem>>, vector<1x128xf32>
    %2 = vector.shape_cast %1 : vector<1x128xf32> to vector<1x1x1x128xf32>
    %3 = vector.broadcast %2 : vector<1x1x1x128xf32> to vector<1x16x16x128xf32>
    %4 = arith.mulf %0, %3 : vector<1x16x16x128xf32>
    %c0_5 = arith.constant 0 : index
    %c0_6 = arith.constant 0 : index
    %5 = vector.load %arg3[%c0_5, %c0_6] : memref<1x128xf32, #tpu.memory_space<vmem>>, vector<1x128xf32>
    %6 = vector.shape_cast %5 : vector<1x128xf32> to vector<1x1x1x128xf32>
    %7 = vector.broadcast %6 : vector<1x1x1x128xf32> to vector<1x16x16x128xf32>
    %8 = arith.addf %4, %7 : vector<1x16x16x128xf32>
    %cst = arith.constant 0.000000e+00 : f32
    %9 = vector.broadcast %cst : f32 to vector<1x16x16x128xf32>
    %10 = arith.maximumf %8, %9 : vector<1x16x16x128xf32>
    %cst_7 = arith.constant 0.000000e+00 : f32
    %11 = vector.broadcast %cst_7 : f32 to vector<1x18x18x128xf32>
    %c0_8 = arith.constant 0 : index
    %c0_9 = arith.constant 0 : index
    %c0_10 = arith.constant 0 : index
    %c0_11 = arith.constant 0 : index
    %12 = vector.load %arg7[%c0_8, %c0_9, %c0_10, %c0_11] : memref<1x18x18x128xf32, #tpu.memory_space<vmem>>, vector<1x18x18x128xf32>
    tpu.vector_store %arg7[%c0_8, %c0_9, %c0_10, %c0_11], %11 {strides = array<i32>} : memref<1x18x18x128xf32, #tpu.memory_space<vmem>>, vector<1x18x18x128xf32>,
    %c0_12 = arith.constant 0 : index
    %c1 = arith.constant 1 : index
    %c1_13 = arith.constant 1 : index
    %c0_14 = arith.constant 0 : index
    %13 = vector.load %arg7[%c0_12, %c1, %c1_13, %c0_14] : memref<1x18x18x128xf32, #tpu.memory_space<vmem>>, vector<1x16x16x128xf32>
    tpu.vector_store %arg7[%c0_12, %c1, %c1_13, %c0_14], %10 {strides = array<i32>} : memref<1x18x18x128xf32, #tpu.memory_space<vmem>>, vector<1x16x16x128xf32>,
    %c0_15 = arith.constant 0 : index
    %c0_16 = arith.constant 0 : index
    %c0_17 = arith.constant 0 : index
    %c0_18 = arith.constant 0 : index
    %14 = vector.load %arg7[%c0_15, %c0_16, %c0_17, %c0_18] : memref<1x18x18x128xf32, #tpu.memory_space<vmem>>, vector<1x16x16x128xf32>
    %15 = vector.shape_cast %14 : vector<1x16x16x128xf32> to vector<256x128xf32>
    %16 = arith.truncf %15 : vector<256x128xf32> to vector<256x128xbf16>
    %c0_19 = arith.constant 0 : index
    %c0_20 = arith.constant 0 : index
    %c1_21 = arith.constant 1 : index
    %c0_22 = arith.constant 0 : index
    %17 = vector.load %arg7[%c0_19, %c0_20, %c1_21, %c0_22] : memref<1x18x18x128xf32, #tpu.memory_space<vmem>>, vector<1x16x16x128xf32>
    %18 = vector.shape_cast %17 : vector<1x16x16x128xf32> to vector<256x128xf32>
    %19 = arith.truncf %18 : vector<256x128xf32> to vector<256x128xbf16>
    %c0_23 = arith.constant 0 : index
    %c0_24 = arith.constant 0 : index
    %c2 = arith.constant 2 : index
    %c0_25 = arith.constant 0 : index
    %20 = vector.load %arg7[%c0_23, %c0_24, %c2, %c0_25] : memref<1x18x18x128xf32, #tpu.memory_space<vmem>>, vector<1x16x16x128xf32>
    %21 = vector.shape_cast %20 : vector<1x16x16x128xf32> to vector<256x128xf32>
    %22 = arith.truncf %21 : vector<256x128xf32> to vector<256x128xbf16>
    %c0_26 = arith.constant 0 : index
    %c1_27 = arith.constant 1 : index
    %c0_28 = arith.constant 0 : index
    %c0_29 = arith.constant 0 : index
    %23 = vector.load %arg7[%c0_26, %c1_27, %c0_28, %c0_29] : memref<1x18x18x128xf32, #tpu.memory_space<vmem>>, vector<1x16x16x128xf32>
    %24 = vector.shape_cast %23 : vector<1x16x16x128xf32> to vector<256x128xf32>
    %25 = arith.truncf %24 : vector<256x128xf32> to vector<256x128xbf16>
    %c0_30 = arith.constant 0 : index
    %c1_31 = arith.constant 1 : index
    %c1_32 = arith.constant 1 : index
    %c0_33 = arith.constant 0 : index
    %26 = vector.load %arg7[%c0_30, %c1_31, %c1_32, %c0_33] : memref<1x18x18x128xf32, #tpu.memory_space<vmem>>, vector<1x16x16x128xf32>
    %27 = vector.shape_cast %26 : vector<1x16x16x128xf32> to vector<256x128xf32>
    %28 = arith.truncf %27 : vector<256x128xf32> to vector<256x128xbf16>
    %c0_34 = arith.constant 0 : index
    %c1_35 = arith.constant 1 : index
    %c2_36 = arith.constant 2 : index
    %c0_37 = arith.constant 0 : index
    %29 = vector.load %arg7[%c0_34, %c1_35, %c2_36, %c0_37] : memref<1x18x18x128xf32, #tpu.memory_space<vmem>>, vector<1x16x16x128xf32>
    %30 = vector.shape_cast %29 : vector<1x16x16x128xf32> to vector<256x128xf32>
    %31 = arith.truncf %30 : vector<256x128xf32> to vector<256x128xbf16>
    %c0_38 = arith.constant 0 : index
    %c2_39 = arith.constant 2 : index
    %c0_40 = arith.constant 0 : index
    %c0_41 = arith.constant 0 : index
    %32 = vector.load %arg7[%c0_38, %c2_39, %c0_40, %c0_41] : memref<1x18x18x128xf32, #tpu.memory_space<vmem>>, vector<1x16x16x128xf32>
    %33 = vector.shape_cast %32 : vector<1x16x16x128xf32> to vector<256x128xf32>
    %34 = arith.truncf %33 : vector<256x128xf32> to vector<256x128xbf16>
    %c0_42 = arith.constant 0 : index
    %c2_43 = arith.constant 2 : index
    %c1_44 = arith.constant 1 : index
    %c0_45 = arith.constant 0 : index
    %35 = vector.load %arg7[%c0_42, %c2_43, %c1_44, %c0_45] : memref<1x18x18x128xf32, #tpu.memory_space<vmem>>, vector<1x16x16x128xf32>
    %36 = vector.shape_cast %35 : vector<1x16x16x128xf32> to vector<256x128xf32>
    %37 = arith.truncf %36 : vector<256x128xf32> to vector<256x128xbf16>
    %c0_46 = arith.constant 0 : index
    %c2_47 = arith.constant 2 : index
    %c2_48 = arith.constant 2 : index
    %c0_49 = arith.constant 0 : index
    %38 = vector.load %arg7[%c0_46, %c2_47, %c2_48, %c0_49] : memref<1x18x18x128xf32, #tpu.memory_space<vmem>>, vector<1x16x16x128xf32>
    %39 = vector.shape_cast %38 : vector<1x16x16x128xf32> to vector<256x128xf32>
    %40 = arith.truncf %39 : vector<256x128xf32> to vector<256x128xbf16>
    %41 = tpu.concatenate %16, %19, %22, %25, %28, %31, %34, %37, %40 in 1 : vector<256x128xbf16>, vector<256x128xbf16>, vector<256x128xbf16>, vector<256x128xbf16>, vector<256x128xbf16>, vector<256x128xbf16>, vector<256x128xbf16>, vector<256x128xbf16>, vector<256x128xbf16> -> vector<256x1152xbf16>
    %c0_50 = arith.constant 0 : index
    %c0_51 = arith.constant 0 : index
    %42 = vector.load %arg4[%c0_50, %c0_51] : memref<1152x128xbf16, #tpu.memory_space<vmem>>, vector<1152x128xbf16>
    %cst_52 = arith.constant dense<0.000000e+00> : vector<256x128xf32>
    %43 = tpu.matmul %41, %42, %cst_52 {dimension_numbers = #tpu.dot_dimension_numbers<[1], [0], [0], [1], [0, 0, 1, 1], [], []>} : vector<256x1152xbf16>, vector<1152x128xbf16>, vector<256x128xf32> -> vector<256x128xf32>
    %44 = vector.shape_cast %43 : vector<256x128xf32> to vector<1x16x16x128xf32>
    %c0_53 = arith.constant 0 : index
    %c0_54 = arith.constant 0 : index
    %c0_55 = arith.constant 0 : index
    %c0_56 = arith.constant 0 : index
    %45 = vector.load %arg5[%c0_53, %c0_54, %c0_55, %c0_56] : memref<1x16x16x128xf32, #tpu.memory_space<vmem>>, vector<1x16x16x128xf32>
    tpu.vector_store %arg5[%c0_53, %c0_54, %c0_55, %c0_56], %44 {strides = array<i32>} : memref<1x16x16x128xf32, #tpu.memory_space<vmem>>, vector<1x16x16x128xf32>,
    %cst_57 = arith.constant dense<0.000000e+00> : vector<128xf32>
    %46 = vector.multi_reduction <add>, %43, %cst_57 [0] : vector<256x128xf32> to vector<128xf32>
    %47 = vector.shape_cast %46 : vector<128xf32> to vector<1x128xf32>
    %48 = arith.mulf %43, %43 : vector<256x128xf32>
    %cst_58 = arith.constant dense<0.000000e+00> : vector<128xf32>
    %49 = vector.multi_reduction <add>, %48, %cst_58 [0] : vector<256x128xf32> to vector<128xf32>
    %50 = vector.shape_cast %49 : vector<128xf32> to vector<1x128xf32>
    %51 = tpu.concatenate %47, %50 in 0 : vector<1x128xf32>, vector<1x128xf32> -> vector<2x128xf32>
    %52 = vector.shape_cast %51 : vector<2x128xf32> to vector<1x2x128xf32>
    %c0_59 = arith.constant 0 : index
    %c0_60 = arith.constant 0 : index
    %c0_61 = arith.constant 0 : index
    %53 = vector.load %arg6[%c0_59, %c0_60, %c0_61] : memref<1x2x128xf32, #tpu.memory_space<vmem>>, vector<1x2x128xf32>
    tpu.vector_store %arg6[%c0_59, %c0_60, %c0_61], %52 {strides = array<i32>} : memref<1x2x128xf32, #tpu.memory_space<vmem>>, vector<1x2x128xf32>,
    return
  }
  func.func @transform_0(%arg0: i32) -> (i32, i32, i32, i32) {
    %c0_i32 = arith.constant 0 : i32
    %c0_i32_0 = arith.constant 0 : i32
    %c0_i32_1 = arith.constant 0 : i32
    %c0_i32_2 = arith.constant 0 : i32
    return %arg0, %c0_i32, %c0_i32_0, %c0_i32_1 : i32, i32, i32, i32
  }
  func.func @transform_1(%arg0: i32) -> (i32, i32) {
    %c0_i32 = arith.constant 0 : i32
    %c0_i32_0 = arith.constant 0 : i32
    %c0_i32_1 = arith.constant 0 : i32
    return %c0_i32, %c0_i32_0 : i32, i32
  }
  func.func @transform_2(%arg0: i32) -> (i32, i32) {
    %c0_i32 = arith.constant 0 : i32
    %c0_i32_0 = arith.constant 0 : i32
    %c0_i32_1 = arith.constant 0 : i32
    return %c0_i32, %c0_i32_0 : i32, i32
  }
  func.func @transform_3(%arg0: i32) -> (i32, i32) {
    %c0_i32 = arith.constant 0 : i32
    %c0_i32_0 = arith.constant 0 : i32
    %c0_i32_1 = arith.constant 0 : i32
    return %c0_i32, %c0_i32_0 : i32, i32
  }
  func.func @transform_4(%arg0: i32) -> (i32, i32, i32, i32) {
    %c0_i32 = arith.constant 0 : i32
    %c0_i32_0 = arith.constant 0 : i32
    %c0_i32_1 = arith.constant 0 : i32
    %c0_i32_2 = arith.constant 0 : i32
    return %arg0, %c0_i32, %c0_i32_0, %c0_i32_1 : i32, i32, i32, i32
  }
  func.func @transform_5(%arg0: i32) -> (i32, i32, i32) {
    %c0_i32 = arith.constant 0 : i32
    %c0_i32_0 = arith.constant 0 : i32
    %c0_i32_1 = arith.constant 0 : i32
    return %arg0, %c0_i32, %c0_i32_0 : i32, i32, i32
  }
}

module attributes {stable_mosaic.version = 11 : i64} {
  func.func @_bn2_add_relu_ds_kernel(%arg0: i32, %arg1: memref<1x16x16x128xf32, #tpu.memory_space<vmem>>, %arg2: memref<1x128xf32, #tpu.memory_space<vmem>>, %arg3: memref<1x128xf32, #tpu.memory_space<vmem>>, %arg4: memref<1x16x16x128xf32, #tpu.memory_space<vmem>>, %arg5: memref<1x128xf32, #tpu.memory_space<vmem>>, %arg6: memref<1x128xf32, #tpu.memory_space<vmem>>, %arg7: memref<1x16x16x128xf32, #tpu.memory_space<vmem>>) attributes {dimension_semantics = [#tpu.dimension_semantics<parallel>], iteration_bounds = array<i64: 2>, scalar_prefetch = 0 : i64, scratch_operands = 0 : i64, tpu.core_type = #tpu.core_type<tc>, window_params = [{transform_indices = @transform_0, window_bounds = array<i64: 1, 16, 16, 128>}, {pipeline_mode = #tpu.pipeline_mode<synchronous>, transform_indices = @transform_1, window_bounds = array<i64: 1, 128>}, {pipeline_mode = #tpu.pipeline_mode<synchronous>, transform_indices = @transform_2, window_bounds = array<i64: 1, 128>}, {transform_indices = @transform_3, window_bounds = array<i64: 1, 16, 16, 128>}, {pipeline_mode = #tpu.pipeline_mode<synchronous>, transform_indices = @transform_4, window_bounds = array<i64: 1, 128>}, {pipeline_mode = #tpu.pipeline_mode<synchronous>, transform_indices = @transform_5, window_bounds = array<i64: 1, 128>}, {transform_indices = @transform_6, window_bounds = array<i64: 1, 16, 16, 128>}]} {
    %c0 = arith.constant 0 : index
    %c0_0 = arith.constant 0 : index
    %c0_1 = arith.constant 0 : index
    %c0_2 = arith.constant 0 : index
    %0 = vector.load %arg1[%c0, %c0_0, %c0_1, %c0_2] : memref<1x16x16x128xf32, #tpu.memory_space<vmem>>, vector<1x16x16x128xf32>
    %c0_3 = arith.constant 0 : index
    %c0_4 = arith.constant 0 : index
    %1 = vector.load %arg2[%c0_3, %c0_4] : memref<1x128xf32, #tpu.memory_space<vmem>>, vector<1x128xf32>
    %2 = vector.shape_cast %1 : vector<1x128xf32> to vector<1x1x1x128xf32>
    %3 = vector.broadcast %2 : vector<1x1x1x128xf32> to vector<1x16x16x128xf32>
    %4 = arith.mulf %0, %3 : vector<1x16x16x128xf32>
    %c0_5 = arith.constant 0 : index
    %c0_6 = arith.constant 0 : index
    %5 = vector.load %arg3[%c0_5, %c0_6] : memref<1x128xf32, #tpu.memory_space<vmem>>, vector<1x128xf32>
    %6 = vector.shape_cast %5 : vector<1x128xf32> to vector<1x1x1x128xf32>
    %7 = vector.broadcast %6 : vector<1x1x1x128xf32> to vector<1x16x16x128xf32>
    %8 = arith.addf %4, %7 : vector<1x16x16x128xf32>
    %c0_7 = arith.constant 0 : index
    %c0_8 = arith.constant 0 : index
    %c0_9 = arith.constant 0 : index
    %c0_10 = arith.constant 0 : index
    %9 = vector.load %arg4[%c0_7, %c0_8, %c0_9, %c0_10] : memref<1x16x16x128xf32, #tpu.memory_space<vmem>>, vector<1x16x16x128xf32>
    %c0_11 = arith.constant 0 : index
    %c0_12 = arith.constant 0 : index
    %10 = vector.load %arg5[%c0_11, %c0_12] : memref<1x128xf32, #tpu.memory_space<vmem>>, vector<1x128xf32>
    %11 = vector.shape_cast %10 : vector<1x128xf32> to vector<1x1x1x128xf32>
    %12 = vector.broadcast %11 : vector<1x1x1x128xf32> to vector<1x16x16x128xf32>
    %13 = arith.mulf %9, %12 : vector<1x16x16x128xf32>
    %c0_13 = arith.constant 0 : index
    %c0_14 = arith.constant 0 : index
    %14 = vector.load %arg6[%c0_13, %c0_14] : memref<1x128xf32, #tpu.memory_space<vmem>>, vector<1x128xf32>
    %15 = vector.shape_cast %14 : vector<1x128xf32> to vector<1x1x1x128xf32>
    %16 = vector.broadcast %15 : vector<1x1x1x128xf32> to vector<1x16x16x128xf32>
    %17 = arith.addf %13, %16 : vector<1x16x16x128xf32>
    %18 = arith.addf %8, %17 : vector<1x16x16x128xf32>
    %cst = arith.constant 0.000000e+00 : f32
    %19 = vector.broadcast %cst : f32 to vector<1x16x16x128xf32>
    %20 = arith.maximumf %18, %19 : vector<1x16x16x128xf32>
    %c0_15 = arith.constant 0 : index
    %c0_16 = arith.constant 0 : index
    %c0_17 = arith.constant 0 : index
    %c0_18 = arith.constant 0 : index
    %21 = vector.load %arg7[%c0_15, %c0_16, %c0_17, %c0_18] : memref<1x16x16x128xf32, #tpu.memory_space<vmem>>, vector<1x16x16x128xf32>
    tpu.vector_store %arg7[%c0_15, %c0_16, %c0_17, %c0_18], %20 {strides = array<i32>} : memref<1x16x16x128xf32, #tpu.memory_space<vmem>>, vector<1x16x16x128xf32>,
    return
  }
  func.func @transform_0(%arg0: i32) -> (i32, i32, i32, i32) {
    %c0_i32 = arith.constant 0 : i32
    %c0_i32_0 = arith.constant 0 : i32
    %c0_i32_1 = arith.constant 0 : i32
    %c0_i32_2 = arith.constant 0 : i32
    return %arg0, %c0_i32, %c0_i32_0, %c0_i32_1 : i32, i32, i32, i32
  }
  func.func @transform_1(%arg0: i32) -> (i32, i32) {
    %c0_i32 = arith.constant 0 : i32
    %c0_i32_0 = arith.constant 0 : i32
    %c0_i32_1 = arith.constant 0 : i32
    return %c0_i32, %c0_i32_0 : i32, i32
  }
  func.func @transform_2(%arg0: i32) -> (i32, i32) {
    %c0_i32 = arith.constant 0 : i32
    %c0_i32_0 = arith.constant 0 : i32
    %c0_i32_1 = arith.constant 0 : i32
    return %c0_i32, %c0_i32_0 : i32, i32
  }
  func.func @transform_3(%arg0: i32) -> (i32, i32, i32, i32) {
    %c0_i32 = arith.constant 0 : i32
    %c0_i32_0 = arith.constant 0 : i32
    %c0_i32_1 = arith.constant 0 : i32
    %c0_i32_2 = arith.constant 0 : i32
    return %arg0, %c0_i32, %c0_i32_0, %c0_i32_1 : i32, i32, i32, i32
  }
  func.func @transform_4(%arg0: i32) -> (i32, i32) {
    %c0_i32 = arith.constant 0 : i32
    %c0_i32_0 = arith.constant 0 : i32
    %c0_i32_1 = arith.constant 0 : i32
    return %c0_i32, %c0_i32_0 : i32, i32
  }
  func.func @transform_5(%arg0: i32) -> (i32, i32) {
    %c0_i32 = arith.constant 0 : i32
    %c0_i32_0 = arith.constant 0 : i32
    %c0_i32_1 = arith.constant 0 : i32
    return %c0_i32, %c0_i32_0 : i32, i32
  }
  func.func @transform_6(%arg0: i32) -> (i32, i32, i32, i32) {
    %c0_i32 = arith.constant 0 : i32
    %c0_i32_0 = arith.constant 0 : i32
    %c0_i32_1 = arith.constant 0 : i32
    %c0_i32_2 = arith.constant 0 : i32
    return %arg0, %c0_i32, %c0_i32_0, %c0_i32_1 : i32, i32, i32, i32
  }
}

</mosaic_0001>

<bundles_post_ra>
// kernel: residual_block_forward.5
= control target key start
LH: loop header
LB: loop body
LE: loop exit
PB: predicated region body
PF: predicated region fallthrough
CT: control target
= control target key end

     0   :  { %s726_s21 = smov 0   ;;  %s1001_s0 = inlined_call_operand.vmem [shape: f32[2,16,16,128], index: 0, kind: input, shape index: {}]   ;;  %s1002_s1 = inlined_call_operand.vmem [shape: f32[1,128], index: 1, kind: input, shape index: {}]   ;;  %s1003_s2 = inlined_call_operand.vmem [shape: f32[1,128], index: 2, kind: input, shape index: {}]   ;;  %s1004_s3 = inlined_call_operand.vmem [shape: f32[2,16,16,128], index: 3, kind: input, shape index: {}]   ;;  %s1005_s4 = inlined_call_operand.vmem [shape: f32[1,128], index: 4, kind: input, shape index: {}]   ;;  %s1006_s5 = inlined_call_operand.vmem [shape: f32[1,128], index: 5, kind: input, shape index: {}]   ;;  %s1007_s6 = inlined_call_operand.vmem [shape: f32[2,16,16,128], index: 6, kind: output, shape index: {}]  }
   0x1 LB: > { %s655_s22 = sadd.s32 4294967295, %s689_s21   ;;  %p659_p0 = scmp.ge.s32.totalorder %s689_s21, 1  ;;  %s689_s21 = sphi %s726_s21, %s16_s21  }
   0x2   : > { %p222_p1 = scmp.lt.s32.totalorder %s689_s21, 3 }
   0x4   : > { %p223_p2 = pnand %p659_p0, %p222_p1 }
   0x5   : > { %p257_p3 = scmp.lt.s32.totalorder (!%p223_p2), %s655_s22, 1  ;;  %v739_v0 = vld [vmem:[%s1002_s1] ss:$0 sm:$0xff] (!%p223_p2) }
   0x6   : > { %226 = sbr.rel (%p223_p2) target bundleno = 71 (0x47), region = 44  ;;  %v744_v1 = vld [vmem:[%s1005_s4] ss:$0 sm:$0xff] (!%p223_p2) }
   0x7   : > { %v761_v2 = vld [vmem:[%s1003_s2] ss:$0 sm:$0xff] (!%p223_p2) }
   0x8   : > { %v766_v3 = vld [vmem:[%s1006_s5] ss:$0 sm:$0xff] (!%p223_p2) }
   0xd   : > { %s1009_s22 = smov (!%p257_p3, %s655_s22), 1 }
   0xe   : > { %s734_s23 = sshll.u32 %s1009_s22, 8 }
   0xf   : > { %s750_s30 = scalar_lea.vmem %s1001_s0, %s734_s23  ;;  %s756_s9 = scalar_lea.vmem %s1004_s3, %s734_s23 }
  0x10   : > { %v272_v4 = vld [vmem:[%s750_s30] sm:$0xff]  ;;  %v273_v6 = vld [vmem:[%s750_s30 + $0x8] sm:$0xff]  ;;  %v274_v11 = vld [vmem:[%s750_s30 + $0x10] sm:$0xff]  ;;  %s801_s16 = scalar_lea.vmem %s1007_s6, %s734_s23 }
  0x11   : > { %v382_v5 = vld [vmem:[%s756_s9] sm:$0xff]  ;;  %v311_v7 = vmul.f32 %v739_v0, %v272_v4  ;;  %v312_v9 = vmul.f32 %v739_v0, %v273_v6  ;;  %v383_v10 = vld [vmem:[%s756_s9 + $0x8] sm:$0xff]  ;;  %v384_v12 = vld [vmem:[%s756_s9 + $0x10] sm:$0xff]  ;;  %v313_v14 = vmul.f32 %v739_v0, %v274_v11 }
  0x12   : > { %v421_v8 = vmul.f32 %v744_v1, %v382_v5  ;;  %v422_v13 = vmul.f32 %v744_v1, %v383_v10  ;;  %v423_v15 = vmul.f32 %v744_v1, %v384_v12  ;;  %v275_v16 = vld [vmem:[%s750_s30 + $0x18] sm:$0xff]  ;;  %v276_v18 = vld [vmem:[%s750_s30 + $0x20] sm:$0xff]  ;;  %v277_v24 = vld [vmem:[%s750_s30 + $0x28] sm:$0xff] }
  0x13   : > { %v385_v17 = vld [vmem:[%s756_s9 + $0x18] sm:$0xff]  ;;  %v350_v19 = vadd.f32 %v761_v2, %v311_v7  ;;  %v351_v21 = vadd.f32 %v761_v2, %v312_v9  ;;  %v314_v22 = vmul.f32 %v739_v0, %v275_v16  ;;  %v386_v23 = vld [vmem:[%s756_s9 + $0x20] sm:$0xff]  ;;  %v352_v26 = vadd.f32 %v761_v2, %v313_v14  ;;  %v387_v29 = vld [vmem:[%s756_s9 + $0x28] sm:$0xff] }
  0x14   : > { %v460_v20 = vadd.f32 %v766_v3, %v421_v8  ;;  %v461_v25 = vadd.f32 %v766_v3, %v422_v13  ;;  %v462_v27 = vadd.f32 %v766_v3, %v423_v15  ;;  %v424_v28 = vmul.f32 %v744_v1, %v385_v17  ;;  %v278_v38 = vld [vmem:[%s750_s30 + $0x30] sm:$0xff]  ;;  %v279_v44 = vld [vmem:[%s750_s30 + $0x38] sm:$0xff]  ;;  %v280_v46 = vld [vmem:[%s750_s30 + $0x40] sm:$0xff] }
  0x15   : > { %v353_v31 = vadd.f32 %v761_v2, %v314_v22  ;;  %v315_v32 = vmul.f32 %v739_v0, %v276_v18  ;;  %v425_v33 = vmul.f32 %v744_v1, %v386_v23  ;;  %v316_v37 = vmul.f32 %v739_v0, %v277_v24  ;;  %v388_v39 = vld [vmem:[%s756_s9 + $0x30] sm:$0xff]  ;;  %v389_v45 = vld [vmem:[%s756_s9 + $0x38] sm:$0xff]  ;;  %v390_v55 = vld [vmem:[%s756_s9 + $0x40] sm:$0xff] }
  0x16   : > { %v492_v30 = vadd.f32 %v460_v20, %v350_v19  ;;  %v493_v34 = vadd.f32 %v461_v25, %v351_v21  ;;  %v494_v35 = vadd.f32 %v462_v27, %v352_v26  ;;  %v463_v36 = vadd.f32 %v766_v3, %v424_v28  ;;  %v281_v60 = vld [vmem:[%s750_s30 + $0x48] sm:$0xff]  ;;  %v282_v6 = vld [vmem:[%s750_s30 + $0x50] sm:$0xff]  ;;  %v283_v12 = vld [vmem:[%s750_s30 + $0x58] sm:$0xff] }
  0x17   : > { %v354_v41 = vadd.f32 %v761_v2, %v315_v32  ;;  %v464_v42 = vadd.f32 %v766_v3, %v425_v33  ;;  %v426_v43 = vmul.f32 %v744_v1, %v387_v29  ;;  %v355_v50 = vadd.f32 %v761_v2, %v316_v37  ;;  %v391_v61 = vld [vmem:[%s756_s9 + $0x48] sm:$0xff]  ;;  %v392_v7 = vld [vmem:[%s756_s9 + $0x50] sm:$0xff]  ;;  %v393_v21 = vld [vmem:[%s756_s9 + $0x58] sm:$0xff] }
  0x18   : > { %v524_v40 = vmax.f32 %v492_v30, 0.0  ;;  %v525_v47 = vmax.f32 %v493_v34, 0.0  ;;  %v526_v48 = vmax.f32 %v494_v35, 0.0  ;;  %v495_v49 = vadd.f32 %v463_v36, %v353_v31  ;;  %v284_v22 = vld [vmem:[%s750_s30 + $0x60] sm:$0xff]  ;;  %v285_v28 = vld [vmem:[%s750_s30 + $0x68] sm:$0xff] }
  0x19   : > { %v496_v51 = vadd.f32 %v464_v42, %v354_v41  ;;  %v465_v52 = vadd.f32 %v766_v3, %v426_v43  ;;  %v317_v53 = vmul.f32 %v739_v0, %v278_v38  ;;  %v427_v54 = vmul.f32 %v744_v1, %v388_v39  ;;  %v394_v27 = vld [vmem:[%s756_s9 + $0x60] sm:$0xff]  ;;  %v395_v33 = vld [vmem:[%s756_s9 + $0x68] sm:$0xff]  ;;  %v286_v38 = vld [vmem:[%s750_s30 + $0x70] sm:$0xff] }
  0x1a   : > { %556 = vst [vmem:[%s801_s16] sm:$0xff] %v524_v40  ;;  %557 = vst [vmem:[%s801_s16 + $0x8] sm:$0xff] %v525_v47  ;;  %v527_v56 = vmax.f32 %v495_v49, 0.0  ;;  %v318_v57 = vmul.f32 %v739_v0, %v279_v44  ;;  %v428_v58 = vmul.f32 %v744_v1, %v389_v45  ;;  %v319_v59 = vmul.f32 %v739_v0, %v280_v46  ;;  %v396_v43 = vld [vmem:[%s756_s9 + $0x70] sm:$0xff]  ;;  %v287_v44 = vld [vmem:[%s750_s30 + $0x78] sm:$0xff] }
  0x1b   : > { %558 = vst [vmem:[%s801_s16 + $0x10] sm:$0xff] %v526_v48  ;;  %v528_v62 = vmax.f32 %v496_v51, 0.0  ;;  %v497_v63 = vadd.f32 %v465_v52, %v355_v50  ;;  %v356_v4 = vadd.f32 %v761_v2, %v317_v53  ;;  %v466_v5 = vadd.f32 %v766_v3, %v427_v54  ;;  %v397_v49 = vld [vmem:[%s756_s9 + $0x78] sm:$0xff]  ;;  %v288_v50 = vld [vmem:[%s750_s30 + $0x80] sm:$0xff] }
  0x1c   : > { %559 = vst [vmem:[%s801_s16 + $0x18] sm:$0xff] %v527_v56  ;;  %v357_v8 = vadd.f32 %v761_v2, %v318_v57  ;;  %v467_v9 = vadd.f32 %v766_v3, %v428_v58  ;;  %v358_v10 = vadd.f32 %v761_v2, %v319_v59  ;;  %v429_v11 = vmul.f32 %v744_v1, %v390_v55  ;;  %v398_v59 = vld [vmem:[%s756_s9 + $0x80] sm:$0xff] }
  0x1d   : > { %560 = vst [vmem:[%s801_s16 + $0x20] sm:$0xff] %v528_v62  ;;  %v529_v13 = vmax.f32 %v497_v63, 0.0  ;;  %v498_v14 = vadd.f32 %v466_v5, %v356_v4  ;;  %v320_v15 = vmul.f32 %v739_v0, %v281_v60  ;;  %v430_v16 = vmul.f32 %v744_v1, %v391_v61  ;;  %v289_v4 = vld [vmem:[%s750_s30 + $0x88] sm:$0xff] }
  0x1e   : > { %v499_v17 = vadd.f32 %v467_v9, %v357_v8  ;;  %v468_v18 = vadd.f32 %v766_v3, %v429_v11  ;;  %v321_v19 = vmul.f32 %v739_v0, %v282_v6  ;;  %v431_v20 = vmul.f32 %v744_v1, %v392_v7  ;;  %v399_v5 = vld [vmem:[%s756_s9 + $0x88] sm:$0xff]  ;;  %v400_v11 = vld [vmem:[%s756_s9 + $0x90] sm:$0xff] }
  0x1f   : > { %561 = vst [vmem:[%s801_s16 + $0x28] sm:$0xff] %v529_v13  ;;  %v530_v23 = vmax.f32 %v498_v14, 0.0  ;;  %v359_v24 = vadd.f32 %v761_v2, %v320_v15  ;;  %v469_v25 = vadd.f32 %v766_v3, %v430_v16  ;;  %v322_v26 = vmul.f32 %v739_v0, %v283_v12  ;;  %v291_v16 = vld [vmem:[%s750_s30 + $0x98] sm:$0xff] }
  0x20   : > { %v531_v29 = vmax.f32 %v499_v17, 0.0  ;;  %v500_v30 = vadd.f32 %v468_v18, %v358_v10  ;;  %v360_v31 = vadd.f32 %v761_v2, %v321_v19  ;;  %v470_v32 = vadd.f32 %v766_v3, %v431_v20  ;;  %v290_v10 = vld [vmem:[%s750_s30 + $0x90] sm:$0xff] }
  0x21   : > { %562 = vst [vmem:[%s801_s16 + $0x30] sm:$0xff] %v530_v23  ;;  %v501_v34 = vadd.f32 %v469_v25, %v359_v24  ;;  %v361_v35 = vadd.f32 %v761_v2, %v322_v26  ;;  %v432_v36 = vmul.f32 %v744_v1, %v393_v21  ;;  %v323_v37 = vmul.f32 %v739_v0, %v284_v22  ;;  %v401_v25 = vld [vmem:[%s756_s9 + $0x98] sm:$0xff]  ;;  %v292_v26 = vld [vmem:[%s750_s30 + $0xa0] sm:$0xff] }
  0x22   : > { %563 = vst [vmem:[%s801_s16 + $0x38] sm:$0xff] %v531_v29  ;;  %v532_v39 = vmax.f32 %v500_v30, 0.0  ;;  %v502_v40 = vadd.f32 %v470_v32, %v360_v31  ;;  %v433_v41 = vmul.f32 %v744_v1, %v394_v27  ;;  %v324_v42 = vmul.f32 %v739_v0, %v285_v28  ;;  %v402_v31 = vld [vmem:[%s756_s9 + $0xa0] sm:$0xff]  ;;  %v293_v32 = vld [vmem:[%s750_s30 + $0xa8] sm:$0xff] }
  0x23   : > { %v533_v45 = vmax.f32 %v501_v34, 0.0  ;;  %v471_v46 = vadd.f32 %v766_v3, %v432_v36  ;;  %v362_v47 = vadd.f32 %v761_v2, %v323_v37  ;;  %v434_v48 = vmul.f32 %v744_v1, %v395_v33  ;;  %v403_v37 = vld [vmem:[%s756_s9 + $0xa8] sm:$0xff] }
  0x24   : > { %564 = vst [vmem:[%s801_s16 + $0x40] sm:$0xff] %v532_v39  ;;  %v534_v51 = vmax.f32 %v502_v40, 0.0  ;;  %v472_v52 = vadd.f32 %v766_v3, %v433_v41  ;;  %v363_v53 = vadd.f32 %v761_v2, %v324_v42  ;;  %v325_v54 = vmul.f32 %v739_v0, %v286_v38  ;;  %v294_v42 = vld [vmem:[%s750_s30 + $0xb0] sm:$0xff] }
  0x25   : > { %565 = vst [vmem:[%s801_s16 + $0x48] sm:$0xff] %v533_v45  ;;  %v503_v55 = vadd.f32 %v471_v46, %v361_v35  ;;  %v473_v56 = vadd.f32 %v766_v3, %v434_v48  ;;  %v435_v57 = vmul.f32 %v744_v1, %v396_v43  ;;  %v326_v58 = vmul.f32 %v739_v0, %v287_v44  ;;  %v295_v48 = vld [vmem:[%s750_s30 + $0xb8] sm:$0xff] }
  0x26   : > { %566 = vst [vmem:[%s801_s16 + $0x50] sm:$0xff] %v534_v51  ;;  %v504_v60 = vadd.f32 %v472_v52, %v362_v47  ;;  %v364_v61 = vadd.f32 %v761_v2, %v325_v54  ;;  %v436_v62 = vmul.f32 %v744_v1, %v397_v49  ;;  %v327_v63 = vmul.f32 %v739_v0, %v288_v50  ;;  %v404_v47 = vld [vmem:[%s756_s9 + $0xb0] sm:$0xff]  ;;  %v296_v54 = vld [vmem:[%s750_s30 + $0xc0] sm:$0xff] }
  0x27   : > { %v535_v6 = vmax.f32 %v503_v55, 0.0  ;;  %v505_v7 = vadd.f32 %v473_v56, %v363_v53  ;;  %v474_v8 = vadd.f32 %v766_v3, %v435_v57  ;;  %v365_v9 = vadd.f32 %v761_v2, %v326_v58  ;;  %v405_v53 = vld [vmem:[%s756_s9 + $0xb8] sm:$0xff] }
  0x28   : > { %v536_v12 = vmax.f32 %v504_v60, 0.0  ;;  %v475_v13 = vadd.f32 %v766_v3, %v436_v62  ;;  %v366_v14 = vadd.f32 %v761_v2, %v327_v63  ;;  %v437_v15 = vmul.f32 %v744_v1, %v398_v59  ;;  %v406_v63 = vld [vmem:[%s756_s9 + $0xc0] sm:$0xff] }
  0x29   : > { %567 = vst [vmem:[%s801_s16 + $0x58] sm:$0xff] %v535_v6  ;;  %v537_v17 = vmax.f32 %v505_v7, 0.0  ;;  %v506_v18 = vadd.f32 %v474_v8, %v364_v61  ;;  %v328_v19 = vmul.f32 %v739_v0, %v289_v4  ;;  %v438_v20 = vmul.f32 %v744_v1, %v399_v5  ;;  %v297_v8 = vld [vmem:[%s750_s30 + $0xc8] sm:$0xff] }
  0x2a   : > { %568 = vst [vmem:[%s801_s16 + $0x60] sm:$0xff] %v536_v12  ;;  %v507_v21 = vadd.f32 %v475_v13, %v365_v9  ;;  %v476_v22 = vadd.f32 %v766_v3, %v437_v15  ;;  %v329_v23 = vmul.f32 %v739_v0, %v290_v10  ;;  %v439_v24 = vmul.f32 %v744_v1, %v400_v11  ;;  %v407_v9 = vld [vmem:[%s756_s9 + $0xc8] sm:$0xff]  ;;  %v408_v15 = vld [vmem:[%s756_s9 + $0xd0] sm:$0xff] }
  0x2b   : > { %569 = vst [vmem:[%s801_s16 + $0x68] sm:$0xff] %v537_v17  ;;  %v538_v27 = vmax.f32 %v506_v18, 0.0  ;;  %v367_v28 = vadd.f32 %v761_v2, %v328_v19  ;;  %v477_v29 = vadd.f32 %v766_v3, %v438_v20  ;;  %v330_v30 = vmul.f32 %v739_v0, %v291_v16  ;;  %v299_v20 = vld [vmem:[%s750_s30 + $0xd8] sm:$0xff] }
  0x2c   : > { %v539_v33 = vmax.f32 %v507_v21, 0.0  ;;  %v508_v34 = vadd.f32 %v476_v22, %v366_v14  ;;  %v368_v35 = vadd.f32 %v761_v2, %v329_v23  ;;  %v478_v36 = vadd.f32 %v766_v3, %v439_v24  ;;  %v298_v14 = vld [vmem:[%s750_s30 + $0xd0] sm:$0xff] }
  0x2d   : > { %570 = vst [vmem:[%s801_s16 + $0x70] sm:$0xff] %v538_v27  ;;  %v509_v38 = vadd.f32 %v477_v29, %v367_v28  ;;  %v369_v39 = vadd.f32 %v761_v2, %v330_v30  ;;  %v440_v40 = vmul.f32 %v744_v1, %v401_v25  ;;  %v331_v41 = vmul.f32 %v739_v0, %v292_v26  ;;  %v409_v29 = vld [vmem:[%s756_s9 + $0xd8] sm:$0xff]  ;;  %v300_v30 = vld [vmem:[%s750_s30 + $0xe0] sm:$0xff] }
  0x2e   : > { %571 = vst [vmem:[%s801_s16 + $0x78] sm:$0xff] %v539_v33  ;;  %v540_v43 = vmax.f32 %v508_v34, 0.0  ;;  %v510_v44 = vadd.f32 %v478_v36, %v368_v35  ;;  %v441_v45 = vmul.f32 %v744_v1, %v402_v31  ;;  %v332_v46 = vmul.f32 %v739_v0, %v293_v32  ;;  %v410_v35 = vld [vmem:[%s756_s9 + $0xe0] sm:$0xff]  ;;  %v301_v36 = vld [vmem:[%s750_s30 + $0xe8] sm:$0xff] }
  0x2f   : > { %v541_v49 = vmax.f32 %v509_v38, 0.0  ;;  %v479_v50 = vadd.f32 %v766_v3, %v440_v40  ;;  %v370_v51 = vadd.f32 %v761_v2, %v331_v41  ;;  %v442_v52 = vmul.f32 %v744_v1, %v403_v37  ;;  %v411_v41 = vld [vmem:[%s756_s9 + $0xe8] sm:$0xff] }
  0x30   : > { %572 = vst [vmem:[%s801_s16 + $0x80] sm:$0xff] %v540_v43  ;;  %v542_v55 = vmax.f32 %v510_v44, 0.0  ;;  %v480_v56 = vadd.f32 %v766_v3, %v441_v45  ;;  %v371_v57 = vadd.f32 %v761_v2, %v332_v46  ;;  %v333_v58 = vmul.f32 %v739_v0, %v294_v42  ;;  %v302_v46 = vld [vmem:[%s750_s30 + $0xf0] sm:$0xff] }
  0x31   : > { %573 = vst [vmem:[%s801_s16 + $0x88] sm:$0xff] %v541_v49  ;;  %v511_v59 = vadd.f32 %v479_v50, %v369_v39  ;;  %v481_v60 = vadd.f32 %v766_v3, %v442_v52  ;;  %v443_v61 = vmul.f32 %v744_v1, %v404_v47  ;;  %v334_v62 = vmul.f32 %v739_v0, %v295_v48  ;;  %v303_v52 = vld [vmem:[%s750_s30 + $0xf8] sm:$0xff] }
  0x32   : > { %574 = vst [vmem:[%s801_s16 + $0x90] sm:$0xff] %v542_v55  ;;  %v512_v4 = vadd.f32 %v480_v56, %v370_v51  ;;  %v372_v5 = vadd.f32 %v761_v2, %v333_v58  ;;  %v444_v6 = vmul.f32 %v744_v1, %v405_v53  ;;  %v335_v7 = vmul.f32 %v739_v0, %v296_v54  ;;  %v412_v51 = vld [vmem:[%s756_s9 + $0xf0] sm:$0xff] }
  0x33   : > { %v543_v10 = vmax.f32 %v511_v59, 0.0  ;;  %v513_v11 = vadd.f32 %v481_v60, %v371_v57  ;;  %v482_v12 = vadd.f32 %v766_v3, %v443_v61  ;;  %v373_v13 = vadd.f32 %v761_v2, %v334_v62  ;;  %v413_v57 = vld [vmem:[%s756_s9 + $0xf8] sm:$0xff] }
  0x34   : > { %v544_v16 = vmax.f32 %v512_v4, 0.0  ;;  %v483_v17 = vadd.f32 %v766_v3, %v444_v6  ;;  %v374_v18 = vadd.f32 %v761_v2, %v335_v7  ;;  %v445_v19 = vmul.f32 %v744_v1, %v406_v63 }
  0x35   : > { %575 = vst [vmem:[%s801_s16 + $0x98] sm:$0xff] %v543_v10  ;;  %v545_v21 = vmax.f32 %v513_v11, 0.0  ;;  %v514_v22 = vadd.f32 %v482_v12, %v372_v5  ;;  %v336_v23 = vmul.f32 %v739_v0, %v297_v8  ;;  %v446_v24 = vmul.f32 %v744_v1, %v407_v9 }
  0x36   : > { %576 = vst [vmem:[%s801_s16 + $0xa0] sm:$0xff] %v544_v16  ;;  %v515_v25 = vadd.f32 %v483_v17, %v373_v13  ;;  %v484_v26 = vadd.f32 %v766_v3, %v445_v19  ;;  %v337_v27 = vmul.f32 %v739_v0, %v298_v14  ;;  %v447_v28 = vmul.f32 %v744_v1, %v408_v15 }
  0x37   : > { %577 = vst [vmem:[%s801_s16 + $0xa8] sm:$0xff] %v545_v21  ;;  %v546_v31 = vmax.f32 %v514_v22, 0.0  ;;  %v375_v32 = vadd.f32 %v761_v2, %v336_v23  ;;  %v485_v33 = vadd.f32 %v766_v3, %v446_v24  ;;  %v338_v34 = vmul.f32 %v739_v0, %v299_v20 }
  0x38   : > { %v547_v37 = vmax.f32 %v515_v25, 0.0  ;;  %v516_v38 = vadd.f32 %v484_v26, %v374_v18  ;;  %v376_v39 = vadd.f32 %v761_v2, %v337_v27  ;;  %v486_v40 = vadd.f32 %v766_v3, %v447_v28 }
  0x39   : > { %578 = vst [vmem:[%s801_s16 + $0xb0] sm:$0xff] %v546_v31  ;;  %v517_v42 = vadd.f32 %v485_v33, %v375_v32  ;;  %v377_v43 = vadd.f32 %v761_v2, %v338_v34  ;;  %v448_v44 = vmul.f32 %v744_v1, %v409_v29  ;;  %v339_v45 = vmul.f32 %v739_v0, %v300_v30 }
  0x3a   : > { %579 = vst [vmem:[%s801_s16 + $0xb8] sm:$0xff] %v547_v37  ;;  %v548_v47 = vmax.f32 %v516_v38, 0.0  ;;  %v518_v48 = vadd.f32 %v486_v40, %v376_v39  ;;  %v449_v49 = vmul.f32 %v744_v1, %v410_v35  ;;  %v340_v50 = vmul.f32 %v739_v0, %v301_v36 }
  0x3b   : > { %v549_v53 = vmax.f32 %v517_v42, 0.0  ;;  %v487_v54 = vadd.f32 %v766_v3, %v448_v44  ;;  %v378_v55 = vadd.f32 %v761_v2, %v339_v45  ;;  %v450_v56 = vmul.f32 %v744_v1, %v411_v41 }
  0x3c   : > { %580 = vst [vmem:[%s801_s16 + $0xc0] sm:$0xff] %v548_v47  ;;  %v550_v58 = vmax.f32 %v518_v48, 0.0  ;;  %v488_v59 = vadd.f32 %v766_v3, %v449_v49  ;;  %v379_v60 = vadd.f32 %v761_v2, %v340_v50  ;;  %v341_v61 = vmul.f32 %v739_v0, %v302_v46 }
  0x3d   : > { %581 = vst [vmem:[%s801_s16 + $0xc8] sm:$0xff] %v549_v53  ;;  %v519_v62 = vadd.f32 %v487_v54, %v377_v43  ;;  %v489_v63 = vadd.f32 %v766_v3, %v450_v56  ;;  %v451_v4 = vmul.f32 %v744_v1, %v412_v51  ;;  %v342_v5 = vmul.f32 %v739_v0, %v303_v52 }
  0x3e   : > { %582 = vst [vmem:[%s801_s16 + $0xd0] sm:$0xff] %v550_v58  ;;  %v520_v6 = vadd.f32 %v488_v59, %v378_v55  ;;  %v380_v7 = vadd.f32 %v761_v2, %v341_v61  ;;  %v452_v8 = vmul.f32 %v744_v1, %v413_v57 }
  0x3f   : > { %v551_v9 = vmax.f32 %v519_v62, 0.0  ;;  %v521_v10 = vadd.f32 %v489_v63, %v379_v60  ;;  %v490_v11 = vadd.f32 %v766_v3, %v451_v4  ;;  %v381_v12 = vadd.f32 %v761_v2, %v342_v5 }
  0x40   : > { %v552_v13 = vmax.f32 %v520_v6, 0.0  ;;  %v491_v14 = vadd.f32 %v766_v3, %v452_v8 }
  0x41   : > { %583 = vst [vmem:[%s801_s16 + $0xd8] sm:$0xff] %v551_v9  ;;  %v553_v0 = vmax.f32 %v521_v10, 0.0  ;;  %v522_v15 = vadd.f32 %v490_v11, %v380_v7 }
  0x42   : > { %584 = vst [vmem:[%s801_s16 + $0xe0] sm:$0xff] %v552_v13  ;;  %v523_v16 = vadd.f32 %v491_v14, %v381_v12 }
  0x43   : > { %585 = vst [vmem:[%s801_s16 + $0xe8] sm:$0xff] %v553_v0  ;;  %v554_v17 = vmax.f32 %v522_v15, 0.0 }
  0x44   : > { %v555_v18 = vmax.f32 %v523_v16, 0.0 }
  0x45   : > { %586 = vst [vmem:[%s801_s16 + $0xf0] sm:$0xff] %v554_v17 }
  0x46   : > { %587 = vst [vmem:[%s801_s16 + $0xf8] sm:$0xff] %v555_v18 }
  0x47 PF: > { %s16_s21 = sadd.s32 1, %s689_s21  }
  0x48   : > { %p13_p4 = scmp.ge.s32.totalorder %s16_s21, 4  }
  0x4a   :  { %15 = sbr.rel (!%p13_p4) target bundleno = 1 (0x1), region = 77 }

// kernel: residual_block_forward.4
= control target key start
LH: loop header
LB: loop body
LE: loop exit
PB: predicated region body
PF: predicated region fallthrough
CT: control target
= control target key end

     0   :  { %s3253_s18 = smov 0   ;;  %s4288_s0 = inlined_call_operand.vmem [shape: f32[2,16,16,128], index: 0, kind: input, shape index: {}]   ;;  %s4289_s1 = inlined_call_operand.vmem [shape: f32[1,128], index: 1, kind: input, shape index: {}]   ;;  %s4290_s2 = inlined_call_operand.vmem [shape: f32[1,128], index: 2, kind: input, shape index: {}]   ;;  %s4291_s3 = inlined_call_operand.vmem [shape: bf16[1152,128], index: 3, kind: input, shape index: {}]   ;;  %s4292_s4 = inlined_call_operand.vmem [shape: f32[2,16,16,128], index: 4, kind: output, shape index: {0}]   ;;  %s4293_s5 = inlined_call_operand.vmem [shape: f32[2,2,128], index: 5, kind: output, shape index: {1}]  }
   0x1 LB: > { %s2507_s19 = sadd.s32 4294967295, %s3219_s18   ;;  %p2511_p0 = scmp.ge.s32.totalorder %s3219_s18, 1  ;;  %s3219_s18 = sphi %s3253_s18, %s16_s18  }
   0x2   : > { %p190_p1 = scmp.lt.s32.totalorder %s3219_s18, 3 }
   0x4   : > { %p191_p2 = pnand %p2511_p0, %p190_p1 }
   0x5   : > { %v3140_v0 = vld [vmem:[%s4291_s3 + $0x40] sm:$0xff] (!%p191_p2)   ;;  %v3221_v2 = vmov (!%p191_p2), 0.0   ;;  %v3142_v3 = vld [vmem:[%s4291_s3 + $0x48] sm:$0xff] (!%p191_p2)   ;;  %p222_p3 = scmp.lt.s32.totalorder (!%p191_p2), %s2507_s19, 1  ;;  %v3144_v5 = vld [vmem:[%s4291_s3 + $0x50] sm:$0xff] (!%p191_p2)   ;;  %v3222_v63 = vmov (!%p191_p2), 0.0|0.0  }
   0x6   : > { %194 = sbr.rel (%p191_p2) target bundleno = 562 (0x232), region = 36  ;;  %v3141_v1 = vld [vmem:[%s4291_s3] sm:$0xff] (!%p191_p2)   ;;  %379 = vst [vmem:[#allocation2] sm:$0xff] (!%p191_p2), %v3221_v2  ;;  %380 = vst [vmem:[#allocation2 + $0x8] sm:$0xff] (!%p191_p2), %v3221_v2  ;;  %2595 = vmatprep.subr.bf16.mxu0 (!%p191_p2), %v3140_v0  ;;  %3115 = vmatprep.subr.bf16.mxu1 (!%p191_p2), %v3140_v0  ;;  %v3143_v4 = vld [vmem:[%s4291_s3 + $0x8] sm:$0xff] (!%p191_p2)   ;;  %vm2418_vm0 = vcmask (!%p191_p2), 1040384  }
   0x7   : > { %381 = vst [vmem:[#allocation2 + $0x10] sm:$0x3] (!%p191_p2), %v3221_v2  ;;  %382 = vst [vmem:[#allocation2 + $0x18] sm:$0xff] (!%p191_p2), %v3221_v2  ;;  %2596 = vmatpush3.bf16.msra.mxu0 (!%p191_p2), %v3141_v1  ;;  %3123 = vmatpush3.bf16.msra.mxu1 (!%p191_p2), %v3141_v1  ;;  %v3145_v6 = vld [vmem:[%s4291_s3 + $0x10] sm:$0xff] (!%p191_p2)   ;;  %v3146_v7 = vld [vmem:[%s4291_s3 + $0x58] sm:$0xff] (!%p191_p2)  }
   0x8   : > { %383 = vst [vmem:[#allocation2 + $0x20] sm:$0xff] (!%p191_p2), %v3221_v2  ;;  %384 = vst [vmem:[#allocation2 + $0x28] sm:$0x3] (!%p191_p2), %v3221_v2  ;;  %2597 = vmatprep.subr.bf16.mxu0 (!%p191_p2), %v3142_v3  ;;  %3116 = vmatprep.subr.bf16.mxu1 (!%p191_p2), %v3142_v3  ;;  %v3147_v8 = vld [vmem:[%s4291_s3 + $0x18] sm:$0xff] (!%p191_p2)   ;;  %v3148_v9 = vld [vmem:[%s4291_s3 + $0x60] sm:$0xff] (!%p191_p2)  }
   0x9   : > { %385 = vst [vmem:[#allocation2 + $0x30] sm:$0xff] (!%p191_p2), %v3221_v2  ;;  %386 = vst [vmem:[#allocation2 + $0x38] sm:$0xff] (!%p191_p2), %v3221_v2  ;;  %v3149_v10 = vld [vmem:[%s4291_s3 + $0x20] sm:$0xff] (!%p191_p2)   ;;  %v3150_v11 = vld [vmem:[%s4291_s3 + $0x68] sm:$0xff] (!%p191_p2)  }
   0xa   : > { %387 = vst [vmem:[#allocation2 + $0x40] sm:$0x3] (!%p191_p2), %v3221_v2  ;;  %388 = vst [vmem:[#allocation2 + $0x48] sm:$0xff] (!%p191_p2), %v3221_v2  ;;  %v3313_v17 = vld [vmem:[%s4289_s1] ss:$0 sm:$0xff] (!%p191_p2)  ;;  %v3151_v21 = vld [vmem:[%s4291_s3 + $0x28] sm:$0xff] (!%p191_p2)  }
   0xb   : > { %389 = vst [vmem:[#allocation2 + $0x50] sm:$0xff] (!%p191_p2), %v3221_v2  ;;  %390 = vst [vmem:[#allocation2 + $0x58] sm:$0x3] (!%p191_p2), %v3221_v2  ;;  %2598 = vmatpush3.bf16.msra.mxu0 (!%p191_p2), %v3143_v4  ;;  %3124 = vmatpush3.bf16.msra.mxu1 (!%p191_p2), %v3143_v4  ;;  %v3318_v18 = vld [vmem:[%s4290_s2] ss:$0 sm:$0xff] (!%p191_p2)  ;;  %v3152_v22 = vld [vmem:[%s4291_s3 + $0x70] sm:$0xff] (!%p191_p2)  }
   0xc   : > { %391 = vst [vmem:[#allocation2 + $0x60] sm:$0xff] (!%p191_p2), %v3221_v2  ;;  %392 = vst [vmem:[#allocation2 + $0x68] sm:$0xff] (!%p191_p2), %v3221_v2  ;;  %2599 = vmatprep.subr.bf16.mxu0 (!%p191_p2), %v3144_v5  ;;  %3117 = vmatprep.subr.bf16.mxu1 (!%p191_p2), %v3144_v5  ;;  %v3153_v27 = vld [vmem:[%s4291_s3 + $0x30] sm:$0xff] (!%p191_p2)   ;;  %v3154_v28 = vld [vmem:[%s4291_s3 + $0x78] sm:$0xff] (!%p191_p2)  }
   0xd   : > { %393 = vst [vmem:[#allocation2 + $0x70] sm:$0x3] %v3221_v2  ;;  %394 = vst [vmem:[#allocation2 + $0x78] sm:$0xff] %v3221_v2  ;;  %s4295_s19 = smov (!%p222_p3, %s2507_s19), 1  ;;  %v514_v12 = vld [vmem:[#allocation2 + $0x1] sm:$0xff]  ;;  %v3155_v36 = vld [vmem:[%s4291_s3 + $0x38] sm:$0xff]  }
   0xe   : > { %395 = vst [vmem:[#allocation2 + $0x80] sm:$0xff] %v3221_v2  ;;  %396 = vst [vmem:[#allocation2 + $0x88] sm:$0x3] %v3221_v2  ;;  %s2593_s9 = sshll.u32 %s4295_s19, 8  ;;  %v515_v13 = vld [vmem:[#allocation2 + $0x9] sm:$0xff]  ;;  %v3156_v39 = vld [vmem:[%s4291_s3 + $0xc0] sm:$0xff]  }
   0xf   : > { %397 = vst [vmem:[#allocation2 + $0x90] sm:$0xff] %v3221_v2  ;;  %398 = vst [vmem:[#allocation2 + $0x98] sm:$0xff] %v3221_v2  ;;  %2600 = vmatpush3.bf16.msra.mxu0 %v3145_v6  ;;  %3125 = vmatpush3.bf16.msra.mxu1 %v3145_v6  ;;  %s3300_s16 = scalar_lea.vmem %s4288_s0, %s2593_s9  ;;  %v546_v15 = vpack.c.bf16 %v515_v13, %v514_v12  ;;  %v3157_v42 = vld [vmem:[%s4291_s3 + $0x140] sm:$0xff]   ;;  %v3160_v49 = vld [vmem:[%s4291_s3 + $0xc8] sm:$0xff]   ;;  %s4197_s24 = scalar_lea.vmem %s4292_s4, %s2593_s9 }
  0x10   : > { %399 = vst [vmem:[#allocation2 + $0xa0] sm:$0x3] %v3221_v2  ;;  %400 = vst [vmem:[#allocation2 + $0xa8] sm:$0xff] %v3221_v2  ;;  %2601 = vmatprep.subr.bf16.mxu0 %v3146_v7  ;;  %3118 = vmatprep.subr.bf16.mxu1 %v3146_v7  ;;  %v259_v14 = vld [vmem:[%s3300_s16 + $0xb0] sm:$0xff]  ;;  %v260_v16 = vld [vmem:[%s3300_s16 + $0xb8] sm:$0xff]  ;;  %s2516_s9 = sshll.u32 %s4295_s19, 1 }
  0x11   : > { %401 = vst [vmem:[#allocation2 + $0xb0] sm:$0xff] %v3221_v2  ;;  %402 = vst [vmem:[#allocation2 + $0xb8] sm:$0x3] %v3221_v2  ;;  %v298_v19 = vmul.f32 %v3313_v17, %v259_v14  ;;  %v299_v20 = vmul.f32 %v3313_v17, %v260_v16  ;;  %1507 = vmatprep.mubr.bf16.mxu0 %v546_v15  ;;  %v237_v30 = vld [vmem:[%s3300_s16] sm:$0xff]  ;;  %v238_v31 = vld [vmem:[%s3300_s16 + $0x8] sm:$0xff]  ;;  %s235_s27 = scalar_lea.vmem %s4293_s5, %s2516_s9 }
  0x12   : > { %403 = vst [vmem:[#allocation2 + $0xc0] sm:$0xff] %v3221_v2  ;;  %404 = vst [vmem:[#allocation2 + $0xc8] sm:$0xff] %v3221_v2  ;;  %v276_v32 = vmul.f32 %v3313_v17, %v237_v30  ;;  %v277_v33 = vmul.f32 %v3313_v17, %v238_v31  ;;  %v261_v34 = vld [vmem:[%s3300_s16 + $0xc0] sm:$0xff]  ;;  %v262_v35 = vld [vmem:[%s3300_s16 + $0xc8] sm:$0xff] }
  0x13   : > { %405 = vst [vmem:[#allocation2 + $0xd0] sm:$0x3] %v3221_v2  ;;  %406 = vst [vmem:[#allocation2 + $0xd8] sm:$0xff] %v3221_v2  ;;  %2602 = vmatpush3.bf16.msra.mxu0 %v3147_v8  ;;  %3126 = vmatpush3.bf16.msra.mxu1 %v3147_v8  ;;  %v337_v23 = vadd.f32 %v3318_v18, %v298_v19  ;;  %v338_v24 = vadd.f32 %v3318_v18, %v299_v20  ;;  %v3158_v45 = vld [vmem:[%s4291_s3 + $0x80] sm:$0xff]   ;;  %v3165_v56 = vld [vmem:[%s4291_s3 + $0x148] sm:$0xff]  }
  0x14   : > { %407 = vst [vmem:[#allocation2 + $0xe0] sm:$0xff] %v3221_v2  ;;  %408 = vst [vmem:[#allocation2 + $0xe8] sm:$0x3] %v3221_v2  ;;  %2603 = vmatprep.subr.bf16.mxu0 %v3148_v9  ;;  %3119 = vmatprep.subr.bf16.mxu1 %v3148_v9  ;;  %v300_v37 = vmul.f32 %v3313_v17, %v261_v34  ;;  %v301_v38 = vmul.f32 %v3313_v17, %v262_v35  ;;  %v3159_v46 = vld [vmem:[%s4291_s3 + $0x100] sm:$0xff]   ;;  %v239_v57 = vld [vmem:[%s3300_s16 + $0x10] sm:$0xff] }
  0x15   : > { %409 = vst [vmem:[#allocation2 + $0xf0] sm:$0xff] %v3221_v2  ;;  %410 = vst [vmem:[#allocation2 + $0xf8] sm:$0xff] %v3221_v2  ;;  %v369_v25 = vmax.f32 %v337_v23, 0.0  ;;  %v370_v26 = vmax.f32 %v338_v24, 0.0  ;;  %v315_v40 = vadd.f32 %v3318_v18, %v276_v32  ;;  %v316_v41 = vadd.f32 %v3318_v18, %v277_v33  ;;  %v240_v59 = vld [vmem:[%s3300_s16 + $0x18] sm:$0xff]  ;;  %v263_v61 = vld [vmem:[%s3300_s16 + $0xd0] sm:$0xff] }
  0x16   : > { %411 = vst [vmem:[#allocation2 + $0x100] sm:$0x3] %v3221_v2  ;;  %412 = vst [vmem:[#allocation2 + $0x108] sm:$0xff] %v3221_v2  ;;  %v339_v43 = vadd.f32 %v3318_v18, %v300_v37  ;;  %v340_v44 = vadd.f32 %v3318_v18, %v301_v38  ;;  %v278_v60 = vmul.f32 %v3313_v17, %v239_v57  ;;  %v264_v62 = vld [vmem:[%s3300_s16 + $0xd8] sm:$0xff]  ;;  %v3161_v0 = vld [vmem:[%s4291_s3 + $0x88] sm:$0xff]  }
  0x17   : > { %413 = vst [vmem:[#allocation2 + $0x110] sm:$0xff] %v3221_v2  ;;  %414 = vst [vmem:[#allocation2 + $0x118] sm:$0x3] %v3221_v2  ;;  %2604 = vmatpush3.bf16.msra.mxu0 %v3149_v10  ;;  %3127 = vmatpush3.bf16.msra.mxu1 %v3149_v10  ;;  %v558_v29 = vpack.c.bf16 %v370_v26, %v369_v25  ;;  %v347_v47 = vmax.f32 %v315_v40, 0.0  ;;  %v348_v48 = vmax.f32 %v316_v41, 0.0  ;;  %v3167_v4 = vld [vmem:[%s4291_s3 + $0x108] sm:$0xff]  }
  0x18   : > { %415 = vst [vmem:[#allocation2 + $0x120] sm:$0xff] %v3221_v2  ;;  %416 = vst [vmem:[#allocation2 + $0x128] sm:$0xff] %v3221_v2  ;;  %2605 = vmatprep.subr.bf16.mxu0 %v3150_v11  ;;  %3120 = vmatprep.subr.bf16.mxu1 %v3150_v11  ;;  %v371_v50 = vmax.f32 %v339_v43, 0.0  ;;  %v372_v51 = vmax.f32 %v340_v44, 0.0  ;;  %v279_v1 = vmul.f32 %v3313_v17, %v240_v59  ;;  %v3162_v6 = vld [vmem:[%s4291_s3 + $0xd0] sm:$0xff]   ;;  %v3164_v14 = vld [vmem:[%s4291_s3 + $0xd8] sm:$0xff]  }
  0x19   : > { %417 = vst [vmem:[#allocation2 + $0x130] sm:$0x3] %v3221_v2  ;;  %418 = vst [vmem:[#allocation2 + $0x138] sm:$0xff] %v3221_v2  ;;  %1603 = vmatprep.mubr.bf16.mxu1 %v558_v29  ;;  %v3366_v55 = vpack.c.bf16 %v348_v48, %v347_v47  ;;  %v303_v3 = vmul.f32 %v3313_v17, %v264_v62  ;;  %v317_v5 = vadd.f32 %v3318_v18, %v278_v60  ;;  %v3163_v10 = vld [vmem:[%s4291_s3 + $0x90] sm:$0xff]   ;;  %v241_v20 = vld [vmem:[%s3300_s16 + $0x20] sm:$0xff] }
  0x1a   : > { %419 = vst [vmem:[#allocation2 + $0x140] sm:$0xff] %v3221_v2  ;;  %420 = vst [vmem:[#allocation2 + $0x148] sm:$0x3] %v3221_v2  ;;  %v559_v58 = vpack.c.bf16 %v372_v51, %v371_v50  ;;  %v318_v7 = vadd.f32 %v3318_v18, %v279_v1  ;;  %v242_v24 = vld [vmem:[%s3300_s16 + $0x28] sm:$0xff]  ;;  %v265_v30 = vld [vmem:[%s3300_s16 + $0xe0] sm:$0xff] }
  0x1b   : > { %421 = vst [vmem:[#allocation2 + $0x150] sm:$0xff] %v3221_v2  ;;  %422 = vst [vmem:[#allocation2 + $0x158] sm:$0xff] %v3221_v2  ;;  %2606 = vmatpush3.bf16.msra.mxu0 %v3151_v21  ;;  %3128 = vmatpush3.bf16.msra.mxu1 %v3151_v21  ;;  %v342_v9 = vadd.f32 %v3318_v18, %v303_v3  ;;  %v349_v11 = vmax.f32 %v317_v5, 0.0  ;;  %v281_v29 = vmul.f32 %v3313_v17, %v242_v24  ;;  %v266_v31 = vld [vmem:[%s3300_s16 + $0xe8] sm:$0xff]  ;;  %v3166_v32 = vld [vmem:[%s4291_s3 + $0x98] sm:$0xff]  }
  0x1c   : > { %423 = vst [vmem:[#allocation2 + $0x160] sm:$0x3] %v3221_v2  ;;  %424 = vst [vmem:[#allocation2 + $0x168] sm:$0xff] %v3221_v2  ;;  %2607 = vmatprep.subr.bf16.mxu0 %v3152_v22  ;;  %3121 = vmatprep.subr.bf16.mxu1 %v3152_v22  ;;  %v350_v15 = vmax.f32 %v318_v7, 0.0  ;;  %v304_v34 = vmul.f32 %v3313_v17, %v265_v30  ;;  %v305_v35 = vmul.f32 %v3313_v17, %v266_v31  ;;  %v3173_v37 = vld [vmem:[%s4291_s3 + $0x150] sm:$0xff]   ;;  %v3168_v38 = vld [vmem:[%s4291_s3 + $0xe0] sm:$0xff]  }
  0x1d   : > { %425 = vst [vmem:[#allocation2 + $0x170] sm:$0xff] %v3221_v2  ;;  %426 = vst [vmem:[#allocation2 + $0x178] sm:$0x3] %v3221_v2  ;;  %v374_v19 = vmax.f32 %v342_v9, 0.0  ;;  %v3175_v43 = vld [vmem:[%s4291_s3 + $0x110] sm:$0xff]   ;;  %v3169_v44 = vld [vmem:[%s4291_s3 + $0xa0] sm:$0xff]  }
  0x1e   : > { %427 = vst [vmem:[#allocation2 + $0x180] sm:$0xff] %v3221_v2  ;;  %428 = vst [vmem:[#allocation2 + $0x188] sm:$0xff] %v3221_v2  ;;  %v343_v40 = vadd.f32 %v3318_v18, %v304_v34  ;;  %v344_v41 = vadd.f32 %v3318_v18, %v305_v35  ;;  %v243_v57 = vld [vmem:[%s3300_s16 + $0x30] sm:$0xff]  ;;  %v562_v24 = vld [vmem:[#allocation2 + $0x2] sm:$0xff] }
  0x1f   : > { %429 = vst [vmem:[#allocation2 + $0x190] sm:$0x3] %v3221_v2  ;;  %430 = vst [vmem:[#allocation2 + $0x198] sm:$0xff] %v3221_v2  ;;  %2608 = vmatpush3.bf16.msra.mxu0 %v3153_v27  ;;  %3129 = vmatpush3.bf16.msra.mxu1 %v3153_v27  ;;  %v3406_v27 = vpack.c.bf16 %v350_v15, %v349_v11  ;;  %v282_v59 = vmul.f32 %v3313_v17, %v243_v57  ;;  %v3172_v62 = vld [vmem:[%s4291_s3 + $0xf0] sm:$0xff]  }
  0x20   : > { %431 = vst [vmem:[#allocation2 + $0x1a0] sm:$0xff] %v3221_v2  ;;  %432 = vst [vmem:[#allocation2 + $0x1a8] sm:$0x3] %v3221_v2  ;;  %2609 = vmatprep.subr.bf16.mxu0 %v3154_v28  ;;  %3122 = vmatprep.subr.bf16.mxu1 %v3154_v28  ;;  %v302_v2 = vmul.f32 %v3313_v17, %v263_v61  ;;  %v3171_v61 = vld [vmem:[%s4291_s3 + $0xa8] sm:$0xff]  }
  0x21   : > { %456 = vst [vmem:[#allocation2 + $0x121] sm:$0xff] %v369_v25  ;;  %457 = vst [vmem:[#allocation2 + $0x129] sm:$0xff] %v370_v26  ;;  %v280_v25 = vmul.f32 %v3313_v17, %v241_v20  ;;  %v247_v20 = vld [vmem:[%s3300_s16 + $0x50] sm:$0xff] }
  0x22   : > { %434 = vst [vmem:[#allocation2 + $0x19] sm:$0xff] %v347_v47  ;;  %435 = vst [vmem:[#allocation2 + $0x21] sm:$0xff] %v348_v48  ;;  %v341_v8 = vadd.f32 %v3318_v18, %v302_v2  ;;  %v3180_v2 = vld [vmem:[%s4291_s3 + $0x158] sm:$0xff]  }
  0x23   : > { %2610 = vmatpush3.bf16.msra.mxu0 %v3155_v36  ;;  %3130 = vmatpush3.bf16.msra.mxu1 %v3155_v36  ;;  %458 = vst [vmem:[#allocation2 + $0x139] sm:$0xff] %v371_v50  ;;  %459 = vst [vmem:[#allocation2 + $0x141] sm:$0xff] %v372_v51  ;;  %v319_v33 = vadd.f32 %v3318_v18, %v280_v25  ;;  %v320_v36 = vadd.f32 %v3318_v18, %v281_v29  ;;  %v563_v25 = vld [vmem:[#allocation2 + $0xa] sm:$0xff] }
  0x24   : > { %2707 = vmatprep.subr.bf16.mxu1 %v3156_v39  ;;  %2819 = vmatprep.subr.bf16.mxu0 %v3157_v42  ;;  %v373_v16 = vmax.f32 %v341_v8, 0.0  ;;  %436 = vst [vmem:[#allocation2 + $0x31] sm:$0xff] %v349_v11  ;;  %437 = vst [vmem:[#allocation2 + $0x39] sm:$0xff] %v350_v15  ;;  %v286_v29 = vmul.f32 %v3313_v17, %v247_v20 }
  0x25   : > { %461 = vst [vmem:[#allocation2 + $0x159] sm:$0xff] %v374_v19  ;;  %v351_v39 = vmax.f32 %v319_v33, 0.0  ;;  %v352_v42 = vmax.f32 %v320_v36, 0.0  ;;  %v3178_v33 = vld [vmem:[%s4291_s3 + $0x1c0] sm:$0xff]  }
  0x26   : > { %1508 = vmatmul.mubr.bf16.vlgmr.msra.gmra.mrb[0].mxu0 %v3222_v63  ;;  %460 = vst [vmem:[#allocation2 + $0x151] sm:$0xff] %v373_v16  ;;  %v560_v28 = vpack.c.bf16 %v374_v19, %v373_v16  ;;  %v321_v63 = vadd.f32 %v3318_v18, %v282_v59  ;;  %v3176_v16 = vld [vmem:[%s4291_s3 + $0xf8] sm:$0xff]   ;;  %v3500_v35 = vadd.f32 %v3318_v18, %v286_v29  ;;  %v251_v59 = vld [vmem:[%s3300_s16 + $0x70] sm:$0xff] }
  0x27   : > { %2820 = vmatpush3.bf16.msra.mxu0 %v3159_v46  ;;  %1515 = vmatprep.mubr.bf16.mxu0 %v3366_v55  ;;  %438 = vst [vmem:[#allocation2 + $0x49] sm:$0xff] %v351_v39  ;;  %v376_v46 = vmax.f32 %v344_v41, 0.0  ;;  %439 = vst [vmem:[#allocation2 + $0x51] sm:$0xff] %v352_v42  ;;  %v3435_v51 = vpack.c.bf16 %v352_v42, %v351_v39  ;;  %v249_v41 = vld [vmem:[%s3300_s16 + $0x60] sm:$0xff]  ;;  %v250_v42 = vld [vmem:[%s3300_s16 + $0x68] sm:$0xff] }
  0x28   : > { %v490_v52 = vld [vmem:[#allocation2 + $0x120] sm:$0xff]  ;;  %v491_v53 = vld [vmem:[#allocation2 + $0x128] sm:$0xff]  ;;  %2821 = vmatprep.subr.bf16.mxu0 %v3165_v56  ;;  %v357_v39 = vmax.f32 %v3500_v35, 0.0  ;;  %v3191_v29 = vld [vmem:[%s4291_s3 + $0x130] sm:$0xff]  }
  0x29   : > { %v510_v54 = vpack.c.bf16 %v491_v53, %v490_v52  ;;  %v468_v12 = vld [vmem:[#allocation2 + $0x18] sm:$0xff]  ;;  %v469_v13 = vld [vmem:[#allocation2 + $0x20] sm:$0xff]  ;;  %463 = vst [vmem:[#allocation2 + $0x171] sm:$0xff] %v376_v46 }
  0x2a   : > { %v3400_v21 = vpack.c.bf16 %v469_v13, %v468_v12  ;;  %v492_v22 = vld [vmem:[#allocation2 + $0x138] sm:$0xff]  ;;  %v493_v23 = vld [vmem:[#allocation2 + $0x140] sm:$0xff]  ;;  %v3174_v12 = vld [vmem:[%s4291_s3 + $0xb0] sm:$0xff]   ;;  %444 = vst [vmem:[#allocation2 + $0x91] sm:$0xff] %v357_v39 }
  0x2b   : > { %1604 = vmatmul.mubr.bf16.vlgmr.msra.gmra.mrb[0].mxu1 %v510_v54  ;;  %2822 = vmatpush3.bf16.msra.mxu0 %v3167_v4  ;;  %v3404_v26 = vpack.c.bf16 %v493_v23, %v492_v22  ;;  %v470_v47 = vld [vmem:[#allocation2 + $0x30] sm:$0xff]  ;;  %v471_v48 = vld [vmem:[#allocation2 + $0x38] sm:$0xff]  ;;  %v3170_v54 = vld [vmem:[%s4291_s3 + $0xe8] sm:$0xff]   ;;  %v353_v4 = vmax.f32 %v321_v63, 0.0 }
  0x2c   : > { %2708 = vmatpush3.bf16.msra.mxu1 %v3158_v45  ;;  %1611 = vmatprep.mubr.bf16.mxu1 %v559_v58  ;;  %v375_v45 = vmax.f32 %v343_v40, 0.0  ;;  %v3437_v52 = vpack.c.bf16 %v471_v48, %v470_v47  ;;  %v244_v58 = vld [vmem:[%s3300_s16 + $0x38] sm:$0xff]  ;;  %v3179_v48 = vld [vmem:[%s4291_s3 + $0x180] sm:$0xff]  }
  0x2d   : > { %2709 = vmatprep.subr.bf16.mxu1 %v3160_v49  ;;  %2823 = vmatprep.subr.bf16.mxu0 %v3173_v37  ;;  %v494_v49 = vld [vmem:[#allocation2 + $0x150] sm:$0xff]  ;;  %v495_v50 = vld [vmem:[#allocation2 + $0x158] sm:$0xff]  ;;  %v283_v60 = vmul.f32 %v3313_v17, %v244_v58  ;;  %440 = vst [vmem:[#allocation2 + $0x61] sm:$0xff] %v353_v4  ;;  %v3186_v58 = vld [vmem:[%s4291_s3 + $0x168] sm:$0xff]  }
  0x2e   : > { %1516 = vmatmul.mubr.bf16.gmra.mrb[4].mxu0 %v3400_v21  ;;  %462 = vst [vmem:[#allocation2 + $0x169] sm:$0xff] %v375_v45  ;;  %v3439_v53 = vpack.c.bf16 %v495_v50, %v494_v49  ;;  %v561_v56 = vpack.c.bf16 %v376_v46, %v375_v45  ;;  %v472_v1 = vld [vmem:[#allocation2 + $0x48] sm:$0xff]  ;;  %v473_v3 = vld [vmem:[#allocation2 + $0x50] sm:$0xff]  ;;  %v248_v22 = vld [vmem:[%s3300_s16 + $0x58] sm:$0xff]  ;;  %v594_v45 = vpack.c.bf16 %v563_v25, %v562_v24 }
  0x2f   : > { %1523 = vmatprep.mubr.bf16.mxu0 %v3406_v27  ;;  %2824 = vmatpush3.bf16.msra.mxu0 %v3175_v43  ;;  %v3465_v7 = vpack.c.bf16 %v473_v3, %v472_v1  ;;  %v3177_v23 = vld [vmem:[%s4291_s3 + $0xb8] sm:$0xff]   ;;  %v287_v30 = vmul.f32 %v3313_v17, %v248_v22  ;;  %v289_v46 = vmul.f32 %v3313_v17, %v250_v42  ;;  %v3185_v3 = vld [vmem:[%s4291_s3 + $0x188] sm:$0xff]   ;;  %v3189_v22 = vld [vmem:[%s4291_s3 + $0x190] sm:$0xff]  }
  0x30   : > { %2710 = vmatpush3.bf16.msra.mxu1 %v3161_v0  ;;  %v322_v0 = vadd.f32 %v3318_v18, %v283_v60  ;;  %2825 = vmatprep.subr.bf16.mxu0 %v3180_v2  ;;  %v564_v50 = vld [vmem:[#allocation2 + $0x1a] sm:$0xff]  ;;  %v290_v1 = vmul.f32 %v3313_v17, %v251_v59  ;;  %v3190_v25 = vld [vmem:[%s4291_s3 + $0x170] sm:$0xff]  }
  0x31   : > { %2711 = vmatprep.subr.bf16.mxu1 %v3162_v6  ;;  %v3181_v6 = vld [vmem:[%s4291_s3 + $0x118] sm:$0xff]   ;;  %v326_v36 = vadd.f32 %v3318_v18, %v287_v30  ;;  %v3526_v57 = vadd.f32 %v3318_v18, %v289_v46  ;;  %v255_v30 = vld [vmem:[%s3300_s16 + $0x90] sm:$0xff] }
  0x32   : > { %v354_v5 = vmax.f32 %v322_v0, 0.0  ;;  %v252_v60 = vld [vmem:[%s3300_s16 + $0x78] sm:$0xff]  ;;  %v3187_v0 = vld [vmem:[%s4291_s3 + $0x128] sm:$0xff]   ;;  %v294_v35 = vmul.f32 %v3313_v17, %v255_v30 }
  0x33   : > { %1612 = vmatmul.mubr.bf16.gmra.mrb[4].mxu1 %v3404_v26  ;;  %2826 = vmatpush3.bf16.msra.mxu0 %v3181_v6  ;;  %v358_v40 = vmax.f32 %v326_v36, 0.0  ;;  %v360_v63 = vmax.f32 %v3526_v57, 0.0  ;;  %v291_v2 = vmul.f32 %v3313_v17, %v252_v60  ;;  %v3192_v42 = vld [vmem:[%s4291_s3 + $0x1d8] sm:$0xff]   ;;  %v568_v60 = vld [vmem:[#allocation2 + $0x4a] sm:$0xff] }
  0x34   : > { %2712 = vmatpush3.bf16.msra.mxu1 %v3163_v10  ;;  %1619 = vmatprep.mubr.bf16.mxu1 %v560_v28  ;;  %v245_v10 = vld [vmem:[%s3300_s16 + $0x40] sm:$0xff]  ;;  %441 = vst [vmem:[#allocation2 + $0x69] sm:$0xff] %v354_v5  ;;  %v3473_v13 = vpack.c.bf16 %v354_v5, %v353_v4  ;;  %v3551_v5 = vadd.f32 %v3318_v18, %v290_v1  ;;  %v3194_v46 = vld [vmem:[%s4291_s3 + $0x178] sm:$0xff]  }
  0x35   : > { %2713 = vmatprep.subr.bf16.mxu1 %v3164_v14  ;;  %v496_v8 = vld [vmem:[#allocation2 + $0x168] sm:$0xff]  ;;  %v497_v9 = vld [vmem:[#allocation2 + $0x170] sm:$0xff]  ;;  %v284_v15 = vmul.f32 %v3313_v17, %v245_v10  ;;  %v474_v43 = vld [vmem:[#allocation2 + $0x60] sm:$0xff]  ;;  %445 = vst [vmem:[#allocation2 + $0x99] sm:$0xff] %v358_v40  ;;  %v3554_v6 = vadd.f32 %v3318_v18, %v291_v2  ;;  %v3568_v20 = vpack.c.bf16 %v358_v40, %v357_v39 }
  0x36   : > { %1524 = vmatmul.mubr.bf16.gmra.mrb[8].mxu0 %v3437_v52  ;;  %v3468_v11 = vpack.c.bf16 %v497_v9, %v496_v8  ;;  %v246_v14 = vld [vmem:[%s3300_s16 + $0x48] sm:$0xff]  ;;  %447 = vst [vmem:[#allocation2 + $0xb1] sm:$0xff] %v360_v63  ;;  %v3188_v8 = vld [vmem:[%s4291_s3 + $0x1d0] sm:$0xff]   ;;  %v253_v10 = vld [vmem:[%s3300_s16 + $0x80] sm:$0xff]  ;;  %v3603_v40 = vadd.f32 %v3318_v18, %v294_v35 }
  0x37   : > { %1531 = vmatprep.mubr.bf16.mxu0 %v3435_v51  ;;  %v285_v19 = vmul.f32 %v3313_v17, %v246_v14  ;;  %v323_v28 = vadd.f32 %v3318_v18, %v284_v15  ;;  %v361_v15 = vmax.f32 %v3551_v5, 0.0  ;;  %v3658_v2 = vld [vmem:[%s4291_s3 + $0x200] sm:$0xff]  }
  0x38   : > { %2714 = vmatpush3.bf16.msra.mxu1 %v3166_v32  ;;  %v3182_v32 = vld [vmem:[%s4291_s3 + $0x160] sm:$0xff]  }
  0x39   : > { %2715 = vmatprep.subr.bf16.mxu1 %v3168_v38  ;;  %v324_v31 = vadd.f32 %v3318_v18, %v285_v19  ;;  %v355_v34 = vmax.f32 %v323_v28, 0.0  ;;  %v3184_v38 = vld [vmem:[%s4291_s3 + $0x120] sm:$0xff]   ;;  %2827 = vmatprep.subr.bf16.mxu0 %v3182_v32  ;;  %v292_v19 = vmul.f32 %v3313_v17, %v253_v10  ;;  %448 = vst [vmem:[#allocation2 + $0xc1] sm:$0xff] %v361_v15  ;;  %v566_v32 = vld [vmem:[#allocation2 + $0x32] sm:$0xff] }
  0x3a   : > { %2828 = vmatpush3.bf16.msra.mxu0 %v3184_v38 }
  0x3b   : > { %1620 = vmatmul.mubr.bf16.gmra.mrb[8].mxu1 %v3439_v53  ;;  %v356_v37 = vmax.f32 %v324_v31, 0.0  ;;  %442 = vst [vmem:[#allocation2 + $0x79] sm:$0xff] %v355_v34  ;;  %2829 = vmatprep.subr.bf16.mxu0 %v3186_v58  ;;  %v3579_v24 = vadd.f32 %v3318_v18, %v292_v19  ;;  %v256_v31 = vld [vmem:[%s3300_s16 + $0x98] sm:$0xff]  ;;  %v258_v58 = vld [vmem:[%s3300_s16 + $0xa8] sm:$0xff] }
  0x3c   : > { %2716 = vmatpush3.bf16.msra.mxu1 %v3169_v44  ;;  %1627 = vmatprep.mubr.bf16.mxu1 %v561_v56  ;;  %v475_v44 = vld [vmem:[#allocation2 + $0x68] sm:$0xff]  ;;  %v295_v36 = vmul.f32 %v3313_v17, %v256_v31  ;;  %v479_v38 = vld [vmem:[#allocation2 + $0x98] sm:$0xff]  ;;  %v297_v57 = vmul.f32 %v3313_v17, %v258_v58  ;;  %v3204_v31 = vld [vmem:[%s4291_s3 + $0x1b0] sm:$0xff]  }
  0x3d   : > { %2717 = vmatprep.subr.bf16.mxu1 %v3170_v54  ;;  %443 = vst [vmem:[#allocation2 + $0x81] sm:$0xff] %v356_v37  ;;  %v3512_v47 = vpack.c.bf16 %v475_v44, %v474_v43  ;;  %v3517_v49 = vpack.c.bf16 %v356_v37, %v355_v34  ;;  %v3183_v54 = vld [vmem:[%s4291_s3 + $0x1c8] sm:$0xff]   ;;  %v363_v34 = vmax.f32 %v3579_v24, 0.0  ;;  %v478_v37 = vld [vmem:[#allocation2 + $0x90] sm:$0xff]  ;;  %v3205_v24 = vld [vmem:[%s4291_s3 + $0x1f8] sm:$0xff]  }
  0x3e   : > { %1532 = vmatmul.mubr.bf16.gmra.mrb[12].mxu0 %v3465_v7  ;;  %v3616_v43 = vpack.c.bf16 %v479_v38, %v478_v37  ;;  %v3653_v1 = vadd.f32 %v3318_v18, %v297_v57  ;;  %v3199_v19 = vld [vmem:[%s4291_s3 + $0x1e8] sm:$0xff]   ;;  %v268_v37 = vld [vmem:[%s3300_s16 + $0xf8] sm:$0xff] }
  0x3f   : > { %1539 = vmatprep.mubr.bf16.mxu0 %v3473_v13  ;;  %2830 = vmatpush3.bf16.msra.mxu0 %v3187_v0  ;;  %450 = vst [vmem:[#allocation2 + $0xd9] sm:$0xff] %v363_v34  ;;  %v570_v5 = vld [vmem:[#allocation2 + $0x62] sm:$0xff] }
  0x40   : > { %2718 = vmatpush3.bf16.msra.mxu1 %v3171_v61  ;;  %v565_v61 = vld [vmem:[#allocation2 + $0x22] sm:$0xff]  ;;  %2831 = vmatprep.subr.bf16.mxu0 %v3190_v25 }
  0x41   : > { %2719 = vmatprep.subr.bf16.mxu1 %v3172_v62 }
  0x42   : > { %v476_v4 = vld [vmem:[#allocation2 + $0x78] sm:$0xff] }
  0x43   : > { %1628 = vmatmul.mubr.bf16.gmra.mrb[12].mxu1 %v3468_v11  ;;  %2832 = vmatpush3.bf16.msra.mxu0 %v3191_v29 }
  0x44   : > { %2720 = vmatpush3.bf16.msra.mxu1 %v3174_v12  ;;  %1668 = vmatprep.mubr.bf16.mxu1 %v3400_v21  ;;  %v288_v21 = vmul.f32 %v3313_v17, %v249_v41  ;;  %v477_v9 = vld [vmem:[#allocation2 + $0x80] sm:$0xff]  ;;  %v254_v12 = vld [vmem:[%s3300_s16 + $0x88] sm:$0xff]  ;;  %v3606_v41 = vadd.f32 %v3318_v18, %v295_v36  ;;  %v267_v36 = vld [vmem:[%s3300_s16 + $0xf0] sm:$0xff] }
  0x45   : > { %2721 = vmatprep.subr.bf16.mxu1 %v3176_v16  ;;  %v3563_v14 = vpack.c.bf16 %v477_v9, %v476_v4  ;;  %v362_v16 = vmax.f32 %v3554_v6, 0.0  ;;  %2833 = vmatprep.subr.bf16.mxu0 %v3194_v46  ;;  %v368_v4 = vmax.f32 %v3653_v1, 0.0  ;;  %v3201_v6 = vld [vmem:[%s4291_s3 + $0x1a8] sm:$0xff]   ;;  %v306_v38 = vmul.f32 %v3313_v17, %v267_v36 }
  0x46   : > { %v3523_v56 = vadd.f32 %v3318_v18, %v288_v21  ;;  %1540 = vmatmul.mubr.bf16.gmra.mrb[16].mxu0 %v3512_v47  ;;  %v366_v21 = vmax.f32 %v3606_v41, 0.0  ;;  %v573_v35 = vld [vmem:[#allocation2 + $0x82] sm:$0xff]  ;;  %v575_v41 = vld [vmem:[#allocation2 + $0x9a] sm:$0xff] }
  0x47   : > { %1547 = vmatprep.mubr.bf16.mxu0 %v3517_v49  ;;  %449 = vst [vmem:[#allocation2 + $0xc9] sm:$0xff] %v362_v16  ;;  %455 = vst [vmem:[#allocation2 + $0x111] sm:$0xff] %v368_v4 }
  0x48   : > { %2722 = vmatpush3.bf16.msra.mxu1 %v3177_v23  ;;  %v359_v62 = vmax.f32 %v3523_v56, 0.0  ;;  %v293_v23 = vmul.f32 %v3313_v17, %v254_v12  ;;  %453 = vst [vmem:[#allocation2 + $0xf9] sm:$0xff] %v366_v21  ;;  %v3674_v12 = vpack.c.bf16 %v362_v16, %v361_v15  ;;  %v482_v15 = vld [vmem:[#allocation2 + $0xc0] sm:$0xff] }
  0x49   : > { %2931 = vmatprep.subr.bf16.mxu1 %v3178_v33  ;;  %v567_v33 = vld [vmem:[#allocation2 + $0x3a] sm:$0xff] }
  0x4a   : > { %446 = vst [vmem:[#allocation2 + $0xa9] sm:$0xff] %v359_v62  ;;  %v3585_v28 = vadd.f32 %v3318_v18, %v293_v23  ;;  %v3618_v44 = vpack.c.bf16 %v567_v33, %v566_v32  ;;  %v3202_v23 = vld [vmem:[%s4291_s3 + $0x1f0] sm:$0xff]   ;;  %v484_v32 = vld [vmem:[#allocation2 + $0xd8] sm:$0xff] }
  0x4b   : > { %1669 = vmatmul.mubr.bf16.vlgmr.msra.gmra.mrb[16].mxu1 %v594_v45  ;;  %v365_v45 = vmax.f32 %v3603_v40, 0.0  ;;  %v572_v33 = vld [vmem:[#allocation2 + $0x7a] sm:$0xff] }
  0x4c   : > { %2932 = vmatpush3.bf16.msra.mxu1 %v3179_v48  ;;  %1676 = vmatprep.mubr.bf16.mxu1 %v3437_v52  ;;  %v3559_v52 = vpack.c.bf16 %v565_v61, %v564_v50  ;;  %v364_v39 = vmax.f32 %v3585_v28, 0.0  ;;  %v3195_v48 = vld [vmem:[%s4291_s3 + $0x138] sm:$0xff]   ;;  %v3632_v50 = vpack.c.bf16 %v360_v63, %v359_v62  ;;  %v3196_v62 = vld [vmem:[%s4291_s3 + $0x1e0] sm:$0xff]  }
  0x4d   : > { %2933 = vmatprep.subr.bf16.mxu1 %v3183_v54  ;;  %452 = vst [vmem:[#allocation2 + $0xf1] sm:$0xff] %v365_v45  ;;  %v257_v54 = vld [vmem:[%s3300_s16 + $0xa0] sm:$0xff]  ;;  %v569_v61 = vld [vmem:[#allocation2 + $0x52] sm:$0xff]  ;;  %2834 = vmatpush3.bf16.msra.mxu0 %v3195_v48  ;;  %v3728_v46 = vpack.c.bf16 %v366_v21, %v365_v45  ;;  %v345_v48 = vadd.f32 %v3318_v18, %v306_v38 }
  0x4e   : > { %1548 = vmatmul.mubr.bf16.gmra.mrb[20].mxu0 %v3563_v14  ;;  %451 = vst [vmem:[#allocation2 + $0xe1] sm:$0xff] %v364_v39  ;;  %v296_v56 = vmul.f32 %v3313_v17, %v257_v54  ;;  %v3667_v10 = vpack.c.bf16 %v569_v61, %v568_v60  ;;  %3067 = vmatprep.subr.bf16.mxu0 %v3658_v2  ;;  %v483_v16 = vld [vmem:[#allocation2 + $0xc8] sm:$0xff] }
  0x4f   : > { %1555 = vmatprep.mubr.bf16.mxu0 %v3568_v20  ;;  %v3693_v25 = vpack.c.bf16 %v483_v16, %v482_v15  ;;  %v3701_v30 = vpack.c.bf16 %v364_v39, %v363_v34  ;;  %v3207_v34 = vld [vmem:[%s4291_s3 + $0x1b8] sm:$0xff]   ;;  %v377_v58 = vmax.f32 %v345_v48, 0.0  ;;  %v578_v1 = vld [vmem:[#allocation2 + $0xc2] sm:$0xff] }
  0x50   : > { %2934 = vmatpush3.bf16.msra.mxu1 %v3185_v3  ;;  %v3650_v0 = vadd.f32 %v3318_v18, %v296_v56  ;;  %v632_v16 = vld [vmem:[#allocation2 + $0x120] sm:$0xff] }
  0x51   : > { %2935 = vmatprep.subr.bf16.mxu1 %v3188_v8  ;;  %v480_v59 = vld [vmem:[#allocation2 + $0xa8] sm:$0xff]  ;;  %v481_v63 = vld [vmem:[#allocation2 + $0xb0] sm:$0xff]  ;;  %v3198_v8 = vld [vmem:[%s4291_s3 + $0x1a0] sm:$0xff]   ;;  %464 = vst [vmem:[#allocation2 + $0x181] sm:$0xff] %v377_v58 }
  0x52   : > { %v367_v3 = vmax.f32 %v3650_v0, 0.0  ;;  %v3665_v9 = vpack.c.bf16 %v481_v63, %v480_v59  ;;  %v574_v59 = vld [vmem:[#allocation2 + $0x92] sm:$0xff]  ;;  %v576_v61 = vld [vmem:[#allocation2 + $0xaa] sm:$0xff]  ;;  %v589_v38 = vld [vmem:[#allocation2 + $0x142] sm:$0xff] }
  0x53   : > { %1677 = vmatmul.mubr.bf16.gmra.mrb[20].mxu1 %v3559_v52  ;;  %v3738_v21 = vpack.c.bf16 %v575_v41, %v574_v59  ;;  %v591_v48 = vld [vmem:[#allocation2 + $0x15a] sm:$0xff] }
  0x54   : > { %1684 = vmatprep.mubr.bf16.mxu1 %v3465_v7  ;;  %2936 = vmatpush3.bf16.msra.mxu1 %v3189_v22  ;;  %v3193_v7 = vld [vmem:[%s4291_s3 + $0x198] sm:$0xff]   ;;  %454 = vst [vmem:[#allocation2 + $0x109] sm:$0xff] %v367_v3  ;;  %v571_v22 = vld [vmem:[#allocation2 + $0x6a] sm:$0xff] }
  0x55   : > { %2937 = vmatprep.subr.bf16.mxu1 %v3192_v42  ;;  %v3695_v29 = vpack.c.bf16 %v571_v22, %v570_v5  ;;  %v485_v28 = vld [vmem:[#allocation2 + $0xe0] sm:$0xff]  ;;  %v3721_v42 = vpack.c.bf16 %v573_v35, %v572_v33  ;;  %v487_v40 = vld [vmem:[#allocation2 + $0xf8] sm:$0xff]  ;;  %v633_v22 = vld [vmem:[#allocation2 + $0x128] sm:$0xff] }
  0x56   : > { %1556 = vmatmul.mubr.bf16.gmra.mrb[24].mxu0 %v3616_v43  ;;  %v3719_v39 = vpack.c.bf16 %v485_v28, %v484_v32  ;;  %v580_v5 = vld [vmem:[#allocation2 + $0xda] sm:$0xff]  ;;  %v3787_v32 = vpack.c.bf16 %v633_v22, %v632_v16  ;;  %v585_v33 = vld [vmem:[#allocation2 + $0x112] sm:$0xff]  ;;  %v586_v28 = vld [vmem:[#allocation2 + $0x122] sm:$0xff] }
  0x57   : > { %1563 = vmatprep.mubr.bf16.mxu0 %v3632_v50  ;;  %v3210_v35 = vld [vmem:[%s4291_s3 + $0x230] sm:$0xff]   ;;  %v683_v16 = vld [vmem:[#allocation2 + $0x141] sm:$0xff] }
  0x58   : > { %2938 = vmatpush3.bf16.msra.mxu1 %v3193_v7  ;;  %v307_v7 = vmul.f32 %v3313_v17, %v268_v37  ;;  %v486_v17 = vld [vmem:[#allocation2 + $0xf0] sm:$0xff]  ;;  %v588_v37 = vld [vmem:[#allocation2 + $0x13a] sm:$0xff] }
  0x59   : > { %2939 = vmatprep.subr.bf16.mxu1 %v3196_v62  ;;  %v3736_v45 = vpack.c.bf16 %v487_v40, %v486_v17  ;;  %v577_v62 = vld [vmem:[#allocation2 + $0xb2] sm:$0xff] }
  0x5a   : > { %v346_v54 = vadd.f32 %v3318_v18, %v307_v7  ;;  %v3744_v18 = vpack.c.bf16 %v368_v4, %v367_v3  ;;  %v579_v3 = vld [vmem:[#allocation2 + $0xca] sm:$0xff]  ;;  %v590_v7 = vld [vmem:[#allocation2 + $0x152] sm:$0xff] }
  0x5b   : > { %1685 = vmatmul.mubr.bf16.gmra.mrb[24].mxu1 %v3618_v44  ;;  %v488_v56 = vld [vmem:[#allocation2 + $0x108] sm:$0xff]  ;;  %v489_v57 = vld [vmem:[#allocation2 + $0x110] sm:$0xff]  ;;  %v3760_v4 = vpack.c.bf16 %v579_v3, %v578_v1  ;;  %v3820_v59 = vpack.c.bf16 %v591_v48, %v590_v7  ;;  %v804_v40 = vld [vmem:[#allocation2 + $0x39] sm:$0xff] }
  0x5c   : > { %1692 = vmatprep.mubr.bf16.mxu1 %v3512_v47  ;;  %2940 = vmatpush3.bf16.msra.mxu1 %v3198_v8  ;;  %v378_v60 = vmax.f32 %v346_v54, 0.0  ;;  %v3750_v63 = vpack.c.bf16 %v489_v57, %v488_v56  ;;  %v3752_v8 = vpack.c.bf16 %v577_v62, %v576_v61  ;;  %v640_v54 = vld [vmem:[#allocation2 + $0x180] sm:$0xff]  ;;  %v803_v17 = vld [vmem:[#allocation2 + $0x31] sm:$0xff]  ;;  %v805_v62 = vld [vmem:[#allocation2 + $0x49] sm:$0xff] }
  0x5d   : > { %2941 = vmatprep.subr.bf16.mxu1 %v3199_v19  ;;  %v3200_v19 = vld [vmem:[%s4291_s3 + $0x208] sm:$0xff]   ;;  %v835_v61 = vpack.c.bf16 %v804_v40, %v803_v17  ;;  %v755_v56 = vld [vmem:[#allocation2 + $0x30] sm:$0xff]  ;;  %v756_v57 = vld [vmem:[#allocation2 + $0x38] sm:$0xff] }
  0x5e   : > { %1564 = vmatmul.mubr.bf16.gmra.mrb[28].mxu0 %v3665_v9  ;;  %465 = vst [vmem:[#allocation2 + $0x189] sm:$0xff] %v378_v60  ;;  %v3754_v0 = vpack.c.bf16 %v378_v60, %v377_v58  ;;  %v592_v60 = vld [vmem:[#allocation2 + $0x16a] sm:$0xff]  ;;  %v787_v3 = vpack.c.bf16 %v756_v57, %v755_v56 }
  0x5f   : > { %1571 = vmatprep.mubr.bf16.mxu0 %v3674_v12  ;;  %v806_v1 = vld [vmem:[#allocation2 + $0x51] sm:$0xff] }
  0x60   : > { %2942 = vmatpush3.bf16.msra.mxu1 %v3201_v6  ;;  %v581_v6 = vld [vmem:[#allocation2 + $0xe2] sm:$0xff] }
  0x61   : > { %2943 = vmatprep.subr.bf16.mxu1 %v3202_v23  ;;  %v3773_v15 = vpack.c.bf16 %v581_v6, %v580_v5  ;;  %v3208_v23 = vld [vmem:[%s4291_s3 + $0x220] sm:$0xff]   ;;  %v757_v5 = vld [vmem:[#allocation2 + $0x48] sm:$0xff]  ;;  %v758_v6 = vld [vmem:[#allocation2 + $0x50] sm:$0xff] }
  0x63   : > { %1693 = vmatmul.mubr.bf16.gmra.mrb[28].mxu1 %v3667_v10 }
  0x64   : > { %1700 = vmatprep.mubr.bf16.mxu1 %v3563_v14  ;;  %2944 = vmatpush3.bf16.msra.mxu1 %v3204_v31 }
  0x65   : > { %2945 = vmatprep.subr.bf16.mxu1 %v3205_v24  ;;  %v641_v58 = vld [vmem:[#allocation2 + $0x188] sm:$0xff] }
  0x66   : > { %1572 = vmatmul.mubr.bf16.gmra.mrb[32].mxu0 %v3693_v25 }
  0x67   : > { %1579 = vmatprep.mubr.bf16.mxu0 %v3701_v30 }
  0x68   : > { %2946 = vmatpush3.bf16.msra.mxu1 %v3207_v34  ;;  %v587_v34 = vld [vmem:[#allocation2 + $0x12a] sm:$0xff] }
  0x69   : > { %v3808_v36 = vpack.c.bf16 %v587_v34, %v586_v28 }
  0x6b   : > { %1701 = vmatmul.mubr.bf16.gmra.mrb[32].mxu1 %v3695_v29 }
  0x6c   : > { %1708 = vmatprep.mubr.bf16.mxu1 %v3616_v43 }
  0x6e   : > { %1580 = vmatmul.mubr.bf16.gmra.mrb[36].mxu0 %v3719_v39 }
  0x6f   : > { %1587 = vmatprep.mubr.bf16.mxu0 %v3728_v46 }
  0x73   : > { %1709 = vmatmul.mubr.bf16.gmra.mrb[36].mxu1 %v3721_v42 }
  0x74   : > { %1716 = vmatprep.mubr.bf16.mxu1 %v3665_v9 }
  0x76   : > { %1588 = vmatmul.mubr.bf16.gmra.mrb[40].mxu0 %v3736_v45 }
  0x77   : > { %1595 = vmatprep.mubr.bf16.mxu0 %v3744_v18 }
  0x7b   : > { %1717 = vmatmul.mubr.bf16.gmra.mrb[40].mxu1 %v3738_v21 }
  0x7c   : > { %1724 = vmatprep.mubr.bf16.mxu1 %v3693_v25 }
  0x7e   : > { %1596 = vmatmul.mubr.bf16.gmra.mrb[44].mxu0 %v3750_v63 }
  0x7f   : > { %1829 = vmatprep.mubr.bf16.mxu0 %v3559_v52  ;;  %v3203_v52 = vld [vmem:[%s4291_s3 + $0x210] sm:$0xff]  }
  0x83   : > { %1725 = vmatmul.mubr.bf16.gmra.mrb[44].mxu1 %v3752_v8 }
  0x84   : > { %1732 = vmatprep.mubr.bf16.mxu1 %v3719_v39 }
  0x86   : > { %1830 = vmatmul.mubr.bf16.vlgmr.msra.gmra.mrb[48].mxu0 %v3366_v55  ;;  %v3206_v55 = vld [vmem:[%s4291_s3 + $0x218] sm:$0xff]  }
  0x87   : > { %3068 = vmatpush3.bf16.msra.mxu0 %v3658_v2  ;;  %1837 = vmatprep.mubr.bf16.mxu0 %v3618_v44  ;;  %v582_v44 = vld [vmem:[#allocation2 + $0xf2] sm:$0xff]  ;;  %v583_v2 = vld [vmem:[#allocation2 + $0xfa] sm:$0xff] }
  0x88   : > { %3069 = vmatprep.subr.bf16.mxu0 %v3200_v19  ;;  %v3785_v31 = vpack.c.bf16 %v583_v2, %v582_v44  ;;  %v681_v44 = vld [vmem:[#allocation2 + $0x129] sm:$0xff] }
  0x8b   : > { %1733 = vmatmul.mubr.bf16.gmra.mrb[48].mxu1 %v3760_v4  ;;  %3070 = vmatpush3.bf16.msra.mxu0 %v3200_v19  ;;  %v836_v19 = vpack.c.bf16 %v806_v1, %v805_v62 }
  0x8c   : > { %1740 = vmatprep.mubr.bf16.mxu1 %v3736_v45  ;;  %3071 = vmatprep.subr.bf16.mxu0 %v3203_v52 }
  0x8e   : > { %1838 = vmatmul.mubr.bf16.gmra.mrb[52].mxu0 %v3406_v27  ;;  %v3209_v27 = vld [vmem:[%s4291_s3 + $0x228] sm:$0xff]  }
  0x8f   : > { %1845 = vmatprep.mubr.bf16.mxu0 %v3667_v10  ;;  %3072 = vmatpush3.bf16.msra.mxu0 %v3203_v52  ;;  %v584_v10 = vld [vmem:[#allocation2 + $0x10a] sm:$0xff]  ;;  %v788_v52 = vpack.c.bf16 %v758_v6, %v757_v5 }
  0x90   : > { %3073 = vmatprep.subr.bf16.mxu0 %v3206_v55  ;;  %v3799_v24 = vpack.c.bf16 %v585_v33, %v584_v10 }
  0x93   : > { %1741 = vmatmul.mubr.bf16.gmra.mrb[52].mxu1 %v3773_v15  ;;  %3074 = vmatpush3.bf16.msra.mxu0 %v3206_v55  ;;  %v680_v55 = vld [vmem:[#allocation2 + $0x121] sm:$0xff] }
  0x94   : > { %1748 = vmatprep.mubr.bf16.mxu1 %v3750_v63  ;;  %3075 = vmatprep.subr.bf16.mxu0 %v3208_v23  ;;  %v3842_v2 = vpack.c.bf16 %v681_v44, %v680_v55 }
  0x96   : > { %1846 = vmatmul.mubr.bf16.gmra.mrb[56].mxu0 %v3435_v51  ;;  %v3211_v51 = vld [vmem:[%s4291_s3 + $0x238] sm:$0xff]  }
  0x97   : > { %1853 = vmatprep.mubr.bf16.mxu0 %v3695_v29  ;;  %3076 = vmatpush3.bf16.msra.mxu0 %v3208_v23 }
  0x98   : > { %3077 = vmatprep.subr.bf16.mxu0 %v3209_v27 }
  0x9b   : > { %1749 = vmatmul.mubr.bf16.gmra.mrb[56].mxu1 %v3785_v31  ;;  %3078 = vmatpush3.bf16.msra.mxu0 %v3209_v27  ;;  %v736_v27 = vld [vmem:[#allocation2 + $0x182] sm:$0xff] }
  0x9c   : > { %1756 = vmatprep.mubr.bf16.mxu1 %v3787_v32  ;;  %3079 = vmatprep.subr.bf16.mxu0 %v3210_v35 }
  0x9e   : > { %1854 = vmatmul.mubr.bf16.gmra.mrb[60].mxu0 %v3473_v13 }
  0x9f   : > { %1861 = vmatprep.mubr.bf16.mxu0 %v3721_v42  ;;  %3080 = vmatpush3.bf16.msra.mxu0 %v3210_v35 }
  0xa0   : > { %3081 = vmatprep.subr.bf16.mxu0 %v3211_v51 }
  0xa3   : > { %1757 = vmatmul.mubr.bf16.gmra.mrb[60].mxu1 %v3799_v24  ;;  %3082 = vmatpush3.bf16.msra.mxu0 %v3211_v51 }
  0xa4   : > { %1764 = vmatprep.mubr.bf16.mxu1 %v3404_v26  ;;  %v3814_v26 = vpack.c.bf16 %v589_v38, %v588_v37 }
  0xa6   : > { %1862 = vmatmul.mubr.bf16.gmra.mrb[64].mxu0 %v3517_v49 }
  0xa7   : > { %1869 = vmatprep.mubr.bf16.mxu0 %v3738_v21 }
  0xab   : > { %1765 = vmatmul.mubr.bf16.gmra.mrb[64].mxu1 %v3808_v36 }
  0xac   : > { %1772 = vmatprep.mubr.bf16.mxu1 %v3439_v53  ;;  %v3822_v53 = vpack.c.bf16 %v641_v58, %v640_v54 }
  0xae   : > { %1870 = vmatmul.mubr.bf16.gmra.mrb[68].mxu0 %v3568_v20 }
  0xaf   : > { %1877 = vmatprep.mubr.bf16.mxu0 %v3752_v8 }
  0xb3   : > { %1773 = vmatmul.mubr.bf16.gmra.mrb[68].mxu1 %v3814_v26 }
  0xb4   : > { %1780 = vmatprep.mubr.bf16.mxu1 %v3468_v11  ;;  %v593_v11 = vld [vmem:[#allocation2 + $0x172] sm:$0xff] }
  0xb5   : > { %v3828_v41 = vpack.c.bf16 %v593_v11, %v592_v60  ;;  %v854_v11 = vld [vmem:[#allocation2 + $0x52] sm:$0xff] }
  0xb6   : > { %1878 = vmatmul.mubr.bf16.gmra.mrb[72].mxu0 %v3632_v50 }
  0xb7   : > { %1885 = vmatprep.mubr.bf16.mxu0 %v3760_v4 }
  0xbb   : > { %1781 = vmatmul.mubr.bf16.gmra.mrb[72].mxu1 %v3820_v59 }
  0xbc   : > { %1788 = vmatprep.mubr.bf16.mxu1 %v3822_v53 }
  0xbe   : > { %1886 = vmatmul.mubr.bf16.gmra.mrb[76].mxu0 %v3674_v12 }
  0xbf   : > { %1893 = vmatprep.mubr.bf16.mxu0 %v3773_v15 }
  0xc3   : > { %1789 = vmatmul.mubr.bf16.gmra.mrb[76].mxu1 %v3828_v41 }
  0xc4   : > { %1990 = vmatprep.mubr.bf16.mxu1 %v835_v61 }
  0xc6   : > { %1894 = vmatmul.mubr.bf16.gmra.mrb[80].mxu0 %v3701_v30 }
  0xc7   : > { %1901 = vmatprep.mubr.bf16.mxu0 %v3785_v31 }
  0xcb   : > { %1991 = vmatmul.mubr.bf16.vlgmr.msra.gmra.mrb[80].mxu1 %v787_v3 }
  0xcc   : > { %1998 = vmatprep.mubr.bf16.mxu1 %v836_v19 }
  0xce   : > { %1902 = vmatmul.mubr.bf16.gmra.mrb[84].mxu0 %v3728_v46 }
  0xcf   : > { %1909 = vmatprep.mubr.bf16.mxu0 %v3799_v24 }
  0xd3   : > { %1999 = vmatmul.mubr.bf16.gmra.mrb[84].mxu1 %v788_v52 }
  0xd4   : > { %2006 = vmatprep.mubr.bf16.mxu1 %v3473_v13  ;;  %v682_v13 = vld [vmem:[#allocation2 + $0x139] sm:$0xff] }
  0xd5   : > { %v3848_v22 = vpack.c.bf16 %v683_v16, %v682_v13 }
  0xd6   : > { %1910 = vmatmul.mubr.bf16.gmra.mrb[88].mxu0 %v3744_v18 }
  0xd7   : > { %1917 = vmatprep.mubr.bf16.mxu0 %v3808_v36 }
  0xdb   : > { %2007 = vmatmul.mubr.bf16.gmra.mrb[88].mxu1 %v3512_v47  ;;  %v684_v47 = vld [vmem:[#allocation2 + $0x151] sm:$0xff] }
  0xdc   : > { %2014 = vmatprep.mubr.bf16.mxu1 %v3517_v49  ;;  %v685_v49 = vld [vmem:[#allocation2 + $0x159] sm:$0xff] }
  0xdd   : > { %v3854_v23 = vpack.c.bf16 %v685_v49, %v684_v47 }
  0xde   : > { %1918 = vmatmul.mubr.bf16.gmra.mrb[92].mxu0 %v3842_v2 }
  0xdf   : > { %1925 = vmatprep.mubr.bf16.mxu0 %v3814_v26 }
  0xe3   : > { %2015 = vmatmul.mubr.bf16.gmra.mrb[92].mxu1 %v3563_v14  ;;  %v686_v14 = vld [vmem:[#allocation2 + $0x169] sm:$0xff] }
  0xe4   : > { %2022 = vmatprep.mubr.bf16.mxu1 %v3568_v20  ;;  %v687_v20 = vld [vmem:[#allocation2 + $0x171] sm:$0xff] }
  0xe5   : > { %v3860_v10 = vpack.c.bf16 %v687_v20, %v686_v14 }
  0xe6   : > { %1926 = vmatmul.mubr.bf16.gmra.mrb[96].mxu0 %v3848_v22 }
  0xe7   : > { %1933 = vmatprep.mubr.bf16.mxu0 %v3820_v59 }
  0xeb   : > { %2023 = vmatmul.mubr.bf16.gmra.mrb[96].mxu1 %v3616_v43  ;;  %v737_v43 = vld [vmem:[#allocation2 + $0x18a] sm:$0xff] }
  0xec   : > { %2030 = vmatprep.mubr.bf16.mxu1 %v3632_v50  ;;  %v3862_v33 = vpack.c.bf16 %v737_v43, %v736_v27  ;;  %v851_v50 = vld [vmem:[#allocation2 + $0x32] sm:$0xff] }
  0xee   : > { %1934 = vmatmul.mubr.bf16.gmra.mrb[100].mxu0 %v3854_v23 }
  0xef   : > { %1941 = vmatprep.mubr.bf16.mxu0 %v3828_v41 }
  0xf3   : > { %2031 = vmatmul.mubr.bf16.gmra.mrb[100].mxu1 %v3665_v9  ;;  %v852_v9 = vld [vmem:[#allocation2 + $0x3a] sm:$0xff] }
  0xf4   : > { %2038 = vmatprep.mubr.bf16.mxu1 %v3674_v12  ;;  %v883_v48 = vpack.c.bf16 %v852_v9, %v851_v50 }
  0xf6   : > { %1942 = vmatmul.mubr.bf16.gmra.mrb[104].mxu0 %v3860_v10 }
  0xf7   : > { %1949 = vmatprep.mubr.bf16.mxu0 %v3862_v33 }
  0xf9   : > { %v2611_v35 = vpop.f32.mrb[0].mxu0 }
  0xfa   : > { %v2612_v51 = vpop.f32.mrb[1].mxu0 }
  0xfb   : > { %2039 = vmatmul.mubr.bf16.gmra.mrb[104].mxu1 %v3693_v25  ;;  %v3868_v34 = vadd.f32 %v2612_v51, %v2611_v35  ;;  %v2614_v38 = vpop.f32.mrb[2].mxu0 }
  0xfc   : > { %2046 = vmatprep.mubr.bf16.mxu1 %v3701_v30  ;;  %v2615_v54 = vpop.f32.mrb[3].mxu0  ;;  %v853_v30 = vld [vmem:[#allocation2 + $0x4a] sm:$0xff] }
  0xfd   : > { %v3872_v25 = vadd.f32 %v2615_v54, %v2614_v38  ;;  %v884_v57 = vpack.c.bf16 %v854_v11, %v853_v30 }
  0xfe   : > { %v2683_v12 = vpop.f32.mrb[0].mxu1  ;;  %1950 = vmatmul.mubr.bf16.gmra.mrb[108].mxu0 %v3754_v0 }
  0xff   : > { %v2684_v28 = vpop.f32.mrb[1].mxu1  ;;  %3083 = vmatprep.mubr.bf16.mxu0 %v883_v48 }
 0x100   : > { %v3870_v37 = vadd.f32 %v2684_v28, %v2683_v12  ;;  %v2686_v7 = vpop.f32.mrb[2].mxu1 }
 0x101   : > { %v2687_v58 = vpop.f32.mrb[3].mxu1  ;;  %v2617_v17 = vpop.f32.mrb[4].mxu0 }
 0x102   : > { %v3874_v60 = vadd.f32 %v2687_v58, %v2686_v7  ;;  %v2618_v61 = vpop.f32.mrb[5].mxu0 }
 0x103   : > { %2047 = vmatmul.mubr.bf16.gmra.mrb[108].mxu1 %v3719_v39  ;;  %v3879_v62 = vadd.f32 %v2618_v61, %v2617_v17  ;;  %v2620_v3 = vpop.f32.mrb[6].mxu0 }
 0x104   : > { %2054 = vmatprep.mubr.bf16.mxu1 %v3728_v46  ;;  %v2621_v5 = vpop.f32.mrb[7].mxu0 }
 0x105   : > { %v3883_v52 = vadd.f32 %v2621_v5, %v2620_v3  ;;  %v780_v5 = vld [vmem:[#allocation2 + $0x158] sm:$0xff] }
 0x106   : > { %v2689_v40 = vpop.f32.mrb[4].mxu1  ;;  %3084 = vmatmul.mubr.bf16.vlgmr.msra.gmra.mrb[112].mxu0 %v884_v57 }
 0x107   : > { %v2690_v56 = vpop.f32.mrb[5].mxu1  ;;  %3087 = vmatprep.mubr.bf16.mxu0 %v3695_v29 }
 0x108   : > { %v3881_v1 = vadd.f32 %v2690_v56, %v2689_v40  ;;  %v2692_v19 = vpop.f32.mrb[6].mxu1 }
 0x109   : > { %v2693_v6 = vpop.f32.mrb[7].mxu1  ;;  %v2623_v46 = vpop.f32.mrb[8].mxu0 }
 0x10a   : > { %v3885_v39 = vadd.f32 %v2693_v6, %v2692_v19  ;;  %v2624_v44 = vpop.f32.mrb[9].mxu0  ;;  %v779_v19 = vld [vmem:[#allocation2 + $0x150] sm:$0xff] }
 0x10b   : > { %2055 = vmatmul.mubr.bf16.gmra.mrb[112].mxu1 %v3736_v45  ;;  %v3890_v16 = vadd.f32 %v2624_v44, %v2623_v46  ;;  %v2626_v49 = vpop.f32.mrb[10].mxu0  ;;  %v799_v44 = vpack.c.bf16 %v780_v5, %v779_v19 }
 0x10c   : > { %2062 = vmatprep.mubr.bf16.mxu1 %v3744_v18  ;;  %v2627_v20 = vpop.f32.mrb[11].mxu0 }
 0x10d   : > { %v3894_v43 = vadd.f32 %v2627_v20, %v2626_v49 }
 0x10e   : > { %v2695_v55 = vpop.f32.mrb[8].mxu1  ;;  %3088 = vmatmul.mubr.bf16.gmra.mrb[116].mxu0 %v3721_v42  ;;  %v777_v42 = vld [vmem:[#allocation2 + $0x138] sm:$0xff] }
 0x10f   : > { %v2696_v13 = vpop.f32.mrb[9].mxu1  ;;  %3091 = vmatprep.mubr.bf16.mxu0 %v3738_v21  ;;  %v778_v21 = vld [vmem:[#allocation2 + $0x140] sm:$0xff] }
 0x110   : > { %v3892_v47 = vadd.f32 %v2696_v13, %v2695_v55  ;;  %v2698_v14 = vpop.f32.mrb[10].mxu1  ;;  %v798_v11 = vpack.c.bf16 %v778_v21, %v777_v42 }
 0x111   : > { %v2699_v27 = vpop.f32.mrb[11].mxu1  ;;  %v2629_v29 = vpop.f32.mrb[12].mxu0 }
 0x112   : > { %v3896_v45 = vadd.f32 %v2699_v27, %v2698_v14  ;;  %v2630_v50 = vpop.f32.mrb[13].mxu0 }
 0x113   : > { %2063 = vmatmul.mubr.bf16.gmra.mrb[116].mxu1 %v3750_v63  ;;  %v3902_v35 = vadd.f32 %v2630_v50, %v2629_v29  ;;  %v2632_v51 = vpop.f32.mrb[14].mxu0  ;;  %v782_v50 = vld [vmem:[#allocation2 + $0x170] sm:$0xff] }
 0x114   : > { %2070 = vmatprep.mubr.bf16.mxu1 %v3842_v2  ;;  %v2633_v38 = vpop.f32.mrb[15].mxu0 }
 0x115   : > { %v3906_v48 = vadd.f32 %v2633_v38, %v2632_v51 }
 0x116   : > { %v2701_v18 = vpop.f32.mrb[12].mxu1  ;;  %3092 = vmatmul.mubr.bf16.gmra.mrb[120].mxu0 %v3752_v8 }
 0x117   : > { %v2702_v9 = vpop.f32.mrb[13].mxu1  ;;  %3095 = vmatprep.mubr.bf16.mxu0 %v3760_v4 }
 0x118   : > { %v3904_v12 = vadd.f32 %v2702_v9, %v2701_v18  ;;  %v2704_v28 = vpop.f32.mrb[14].mxu1  ;;  %v781_v18 = vld [vmem:[#allocation2 + $0x168] sm:$0xff] }
 0x119   : > { %v2705_v7 = vpop.f32.mrb[15].mxu1  ;;  %v2635_v2 = vpop.f32.mrb[16].mxu0  ;;  %v800_v38 = vpack.c.bf16 %v782_v50, %v781_v18 }
 0x11a   : > { %v3908_v63 = vadd.f32 %v2705_v7, %v2704_v28  ;;  %v2636_v58 = vpop.f32.mrb[17].mxu0 }
 0x11b   : > { %2071 = vmatmul.mubr.bf16.gmra.mrb[120].mxu1 %v3787_v32  ;;  %v3914_v17 = vadd.f32 %v2636_v58, %v2635_v2  ;;  %v2638_v61 = vpop.f32.mrb[18].mxu0 }
 0x11c   : > { %2078 = vmatprep.mubr.bf16.mxu1 %v3848_v22  ;;  %v2639_v57 = vpop.f32.mrb[19].mxu0 }
 0x11d   : > { %v3919_v22 = vadd.f32 %v2639_v57, %v2638_v61 }
 0x11e   : > { %v2723_v54 = vpop.f32.mrb[16].mxu1  ;;  %3096 = vmatmul.mubr.bf16.gmra.mrb[124].mxu0 %v3773_v15 }
 0x11f   : > { %v2724_v30 = vpop.f32.mrb[17].mxu1  ;;  %3099 = vmatprep.mubr.bf16.mxu0 %v3785_v31 }
 0x120   : > { %v2725_v40 = vadd.f32 %v2724_v30, %v2723_v54  ;;  %v2726_v56 = vpop.f32.mrb[18].mxu1  ;;  %v833_v30 = vld [vmem:[#allocation2 + $0x199] sm:$0xff] }
 0x121   : > { %v2727_v32 = vpop.f32.mrb[19].mxu1  ;;  %v2641_v6 = vpop.f32.mrb[20].mxu0 }
 0x122   : > { %v3917_v8 = vadd.f32 %v2725_v40, %v3868_v34  ;;  %v2728_v4 = vadd.f32 %v2727_v32, %v2726_v56  ;;  %v2642_v55 = vpop.f32.mrb[21].mxu0 }
 0x123   : > { %2079 = vmatmul.mubr.bf16.gmra.mrb[124].mxu1 %v798_v11  ;;  %v3927_v13 = vadd.f32 %v2642_v55, %v2641_v6  ;;  %v2644_v14 = vpop.f32.mrb[22].mxu0  ;;  %v834_v11 = vld [vmem:[#allocation2 + $0x1a1] sm:$0xff] }
 0x124   : > { %v3923_v3 = vadd.f32 %v2728_v4, %v3872_v25  ;;  %2086 = vmatprep.mubr.bf16.mxu1 %v3854_v23  ;;  %v2645_v15 = vpop.f32.mrb[23].mxu0  ;;  %v850_v5 = vpack.c.bf16 %v834_v11, %v833_v30  ;;  %v881_v55 = vld [vmem:[#allocation2 + $0x19a] sm:$0xff] }
 0x125   : > { %v3932_v23 = vadd.f32 %v2645_v15, %v2644_v14 }
 0x126   : > { %v2729_v46 = vpop.f32.mrb[20].mxu1  ;;  %3100 = vmatmul.mubr.bf16.gmra.mrb[128].mxu0 %v3799_v24 }
 0x127   : > { %v2730_v34 = vpop.f32.mrb[21].mxu1  ;;  %3103 = vmatprep.mubr.bf16.mxu0 %v3808_v36 }
 0x128   : > { %v2731_v49 = vadd.f32 %v2730_v34, %v2729_v46  ;;  %v2732_v20 = vpop.f32.mrb[22].mxu1  ;;  %v882_v34 = vld [vmem:[#allocation2 + $0x1a2] sm:$0xff] }
 0x129   : > { %v2733_v27 = vpop.f32.mrb[23].mxu1  ;;  %v2647_v9 = vpop.f32.mrb[24].mxu0 }
 0x12a   : > { %v3930_v25 = vadd.f32 %v2731_v49, %v3879_v62  ;;  %v2734_v31 = vadd.f32 %v2733_v27, %v2732_v20  ;;  %v2648_v28 = vpop.f32.mrb[25].mxu0  ;;  %v3212_v20 = vld [vmem:[#allocation2] sm:$0xff]  ;;  %v898_v27 = vpack.c.bf16 %v882_v34, %v881_v55 }
 0x12b   : > { %2087 = vmatmul.mubr.bf16.gmra.mrb[128].mxu1 %v799_v44  ;;  %v3940_v7 = vadd.f32 %v2648_v28, %v2647_v9  ;;  %v2650_v21 = vpop.f32.mrb[26].mxu0  ;;  %v802_v15 = vpack.c.bf16 %v3212_v20, %v3212_v20 }
 0x12c   : > { %v3936_v29 = vadd.f32 %v2734_v31, %v3883_v52  ;;  %2094 = vmatprep.mubr.bf16.mxu1 %v3860_v10  ;;  %v2651_v24 = vpop.f32.mrb[27].mxu0 }
 0x12d   : > { %v3945_v10 = vadd.f32 %v2651_v24, %v2650_v21 }
 0x12e   : > { %v2735_v51 = vpop.f32.mrb[24].mxu1  ;;  %3104 = vmatmul.mubr.bf16.gmra.mrb[132].mxu0 %v3814_v26 }
 0x12f   : > { %v2736_v62 = vpop.f32.mrb[25].mxu1  ;;  %3107 = vmatprep.mubr.bf16.mxu0 %v3820_v59 }
 0x130   : > { %v2737_v42 = vadd.f32 %v2736_v62, %v2735_v51  ;;  %v2738_v2 = vpop.f32.mrb[26].mxu1 }
 0x131   : > { %v2739_v54 = vpop.f32.mrb[27].mxu1  ;;  %v2653_v40 = vpop.f32.mrb[28].mxu0 }
 0x132   : > { %v3943_v52 = vadd.f32 %v2737_v42, %v3890_v16  ;;  %v2740_v36 = vadd.f32 %v2739_v54, %v2738_v2  ;;  %v2654_v56 = vpop.f32.mrb[29].mxu0 }
 0x133   : > { %2095 = vmatmul.mubr.bf16.gmra.mrb[132].mxu1 %v800_v38  ;;  %v3953_v57 = vadd.f32 %v2654_v56, %v2653_v40  ;;  %v2656_v4 = vpop.f32.mrb[30].mxu0 }
 0x134   : > { %v3949_v58 = vadd.f32 %v2740_v36, %v3894_v43  ;;  %2102 = vmatprep.mubr.bf16.mxu1 %v3754_v0  ;;  %v2657_v26 = vpop.f32.mrb[31].mxu0 }
 0x135   : > { %v3958_v0 = vadd.f32 %v2657_v26, %v2656_v4 }
 0x136   : > { %v2741_v61 = vpop.f32.mrb[28].mxu1  ;;  %3108 = vmatmul.mubr.bf16.gmra.mrb[136].mxu0 %v3828_v41 }
 0x137   : > { %v2742_v16 = vpop.f32.mrb[29].mxu1  ;;  %3111 = vmatprep.mubr.bf16.mxu0 %v3862_v33 }
 0x138   : > { %v2743_v32 = vadd.f32 %v2742_v16, %v2741_v61  ;;  %v2744_v19 = vpop.f32.mrb[30].mxu1 }
 0x139   : > { %v2745_v6 = vpop.f32.mrb[31].mxu1  ;;  %v2659_v44 = vpop.f32.mrb[32].mxu0 }
 0x13a   : > { %v3956_v43 = vadd.f32 %v2743_v32, %v3902_v35  ;;  %v2746_v59 = vadd.f32 %v2745_v6, %v2744_v19  ;;  %v2660_v14 = vpop.f32.mrb[33].mxu0 }
 0x13b   : > { %2103 = vmatmul.mubr.bf16.gmra.mrb[136].mxu1 %v3822_v53  ;;  %v3966_v31 = vadd.f32 %v2660_v14, %v2659_v44  ;;  %v2662_v18 = vpop.f32.mrb[34].mxu0 }
 0x13c   : > { %v3963_v46 = vadd.f32 %v2746_v59, %v3906_v48  ;;  %2110 = vmatprep.mubr.bf16.mxu1 %v850_v5  ;;  %v2663_v50 = vpop.f32.mrb[35].mxu0 }
 0x13d   : > { %v2664_v33 = vadd.f32 %v2663_v50, %v2662_v18 }
 0x13e   : > { %v2747_v49 = vpop.f32.mrb[32].mxu1  ;;  %3112 = vmatmul.mubr.bf16.gmra.mrb[140].mxu0 %v898_v27 }
 0x13f   : > { %v2748_v35 = vpop.f32.mrb[33].mxu1 }
 0x140   : > { %v2749_v53 = vadd.f32 %v2748_v35, %v2747_v49  ;;  %v2750_v41 = vpop.f32.mrb[34].mxu1 }
 0x141   : > { %v2751_v48 = vpop.f32.mrb[35].mxu1  ;;  %v2665_v62 = vpop.f32.mrb[36].mxu0 }
 0x142   : > { %v3969_v9 = vadd.f32 %v2749_v53, %v3914_v17  ;;  %v2752_v51 = vadd.f32 %v2751_v48, %v2750_v41  ;;  %v2666_v42 = vpop.f32.mrb[37].mxu0 }
 0x143   : > { %2111 = vmatmul.mubr.bf16.gmra.mrb[140].mxu1 %v802_v15  ;;  %v3974_v2 = vadd.f32 %v2666_v42, %v2665_v62  ;;  %v2668_v54 = vpop.f32.mrb[38].mxu0 }
 0x144   : > { %v3972_v28 = vadd.f32 %v2752_v51, %v3919_v22  ;;  %v2669_v30 = vpop.f32.mrb[39].mxu0 }
 0x145   : > { %v2670_v40 = vadd.f32 %v2669_v30, %v2668_v54 }
 0x146   : > { %v2753_v38 = vpop.f32.mrb[36].mxu1 }
 0x147   : > { %v2754_v21 = vpop.f32.mrb[37].mxu1 }
 0x148   : > { %v2755_v24 = vadd.f32 %v2754_v21, %v2753_v38  ;;  %v2756_v36 = vpop.f32.mrb[38].mxu1 }
 0x149   : > { %v2757_v11 = vpop.f32.mrb[39].mxu1  ;;  %v2671_v22 = vpop.f32.mrb[40].mxu0 }
 0x14a   : > { %v3977_v17 = vadd.f32 %v2755_v24, %v3927_v13  ;;  %v2758_v61 = vadd.f32 %v2757_v11, %v2756_v36  ;;  %v2672_v32 = vpop.f32.mrb[41].mxu0 }
 0x14b   : > { %v3982_v19 = vadd.f32 %v2672_v32, %v2671_v22  ;;  %v2674_v26 = vpop.f32.mrb[42].mxu0 }
 0x14c   : > { %v3980_v56 = vadd.f32 %v2758_v61, %v3932_v23  ;;  %v2675_v59 = vpop.f32.mrb[43].mxu0 }
 0x14d   : > { %v3987_v13 = vadd.f32 %v2675_v59, %v2674_v26 }
 0x14e   : > { %v2759_v16 = vpop.f32.mrb[40].mxu1 }
 0x14f   : > { %v2760_v4 = vpop.f32.mrb[41].mxu1 }
 0x150   : > { %v2761_v5 = vadd.f32 %v2760_v4, %v2759_v16  ;;  %v2762_v6 = vpop.f32.mrb[42].mxu1 }
 0x151   : > { %v2763_v55 = vpop.f32.mrb[43].mxu1  ;;  %v2677_v49 = vpop.f32.mrb[44].mxu0 }
 0x152   : > { %v3985_v34 = vadd.f32 %v2761_v5, %v3940_v7  ;;  %v2764_v44 = vadd.f32 %v2763_v55, %v2762_v6  ;;  %v2678_v35 = vpop.f32.mrb[45].mxu0 }
 0x153   : > { %v3992_v15 = vadd.f32 %v2678_v35, %v2677_v49  ;;  %v2680_v53 = vpop.f32.mrb[46].mxu0 }
 0x154   : > { %v3990_v23 = vadd.f32 %v2764_v44, %v3945_v10  ;;  %v2681_v41 = vpop.f32.mrb[47].mxu0 }
 0x155   : > { %v3997_v48 = vadd.f32 %v2681_v41, %v2680_v53 }
 0x156   : > { %v2765_v14 = vpop.f32.mrb[44].mxu1 }
 0x157   : > { %v2766_v20 = vpop.f32.mrb[45].mxu1 }
 0x158   : > { %v2767_v27 = vadd.f32 %v2766_v20, %v2765_v14  ;;  %v2768_v18 = vpop.f32.mrb[46].mxu1 }
 0x159   : > { %v2769_v50 = vpop.f32.mrb[47].mxu1  ;;  %v2835_v38 = vpop.f32.mrb[48].mxu0 }
 0x15a   : > { %v3995_v7 = vadd.f32 %v2767_v27, %v3953_v57  ;;  %v2770_v51 = vadd.f32 %v2769_v50, %v2768_v18  ;;  %v2836_v21 = vpop.f32.mrb[49].mxu0 }
 0x15b   : > { %v2837_v54 = vadd.f32 %v2836_v21, %v2835_v38  ;;  %v2838_v30 = vpop.f32.mrb[50].mxu0 }
 0x15c   : > { %v4000_v10 = vadd.f32 %v2770_v51, %v3958_v0  ;;  %v2839_v61 = vpop.f32.mrb[51].mxu0 }
 0x15d   : > { %v4006_v57 = vadd.f32 %v2837_v54, %v3917_v8  ;;  %v2840_v32 = vadd.f32 %v2839_v61, %v2838_v30 }
 0x15e   : > { %v2771_v62 = vpop.f32.mrb[48].mxu1 }
 0x15f   : > { %v2772_v42 = vpop.f32.mrb[49].mxu1  ;;  %v4011_v4 = vadd.f32 %v2840_v32, %v3923_v3 }
 0x160   : > { %v2773_v24 = vadd.f32 %v2772_v42, %v2771_v62  ;;  %v2774_v36 = vpop.f32.mrb[50].mxu1 }
 0x161   : > { %v2775_v11 = vpop.f32.mrb[51].mxu1  ;;  %v2841_v26 = vpop.f32.mrb[52].mxu0 }
 0x162   : > { %v4003_v22 = vadd.f32 %v2773_v24, %v3966_v31  ;;  %v2776_v16 = vadd.f32 %v2775_v11, %v2774_v36  ;;  %v2842_v59 = vpop.f32.mrb[53].mxu0 }
 0x163   : > { %v2843_v44 = vadd.f32 %v2842_v59, %v2841_v26  ;;  %v2844_v14 = vpop.f32.mrb[54].mxu0 }
 0x164   : > { %v4008_v0 = vadd.f32 %v2776_v16, %v2664_v33  ;;  %v2845_v35 = vpop.f32.mrb[55].mxu0 }
 0x165   : > { %v4017_v20 = vadd.f32 %v2843_v44, %v3930_v25  ;;  %v2846_v27 = vadd.f32 %v2845_v35, %v2844_v14 }
 0x166   : > { %v2777_v5 = vpop.f32.mrb[52].mxu1 }
 0x167   : > { %v2778_v6 = vpop.f32.mrb[53].mxu1  ;;  %v4022_v53 = vadd.f32 %v2846_v27, %v3936_v29 }
 0x168   : > { %v2779_v55 = vadd.f32 %v2778_v6, %v2777_v5  ;;  %v2780_v49 = vpop.f32.mrb[54].mxu1 }
 0x169   : > { %v2781_v31 = vpop.f32.mrb[55].mxu1  ;;  %v2847_v41 = vpop.f32.mrb[56].mxu0 }
 0x16a   : > { %v4014_v8 = vadd.f32 %v2779_v55, %v3974_v2  ;;  %v2782_v33 = vadd.f32 %v2781_v31, %v2780_v49  ;;  %v2848_v51 = vpop.f32.mrb[57].mxu0 }
 0x16b   : > { %v2849_v38 = vadd.f32 %v2848_v51, %v2847_v41  ;;  %v2850_v21 = vpop.f32.mrb[58].mxu0 }
 0x16c   : > { %v4019_v3 = vadd.f32 %v2782_v33, %v2670_v40  ;;  %v2851_v24 = vpop.f32.mrb[59].mxu0 }
 0x16d   : > { %v4028_v54 = vadd.f32 %v2849_v38, %v3943_v52  ;;  %v2852_v36 = vadd.f32 %v2851_v24, %v2850_v21 }
 0x16e   : > { %v2783_v18 = vpop.f32.mrb[56].mxu1 }
 0x16f   : > { %v2784_v50 = vpop.f32.mrb[57].mxu1  ;;  %v4034_v30 = vadd.f32 %v2852_v36, %v3949_v58 }
 0x170   : > { %v2785_v62 = vadd.f32 %v2784_v50, %v2783_v18  ;;  %v2786_v42 = vpop.f32.mrb[58].mxu1 }
 0x171   : > { %v2787_v2 = vpop.f32.mrb[59].mxu1  ;;  %v2853_v61 = vpop.f32.mrb[60].mxu0 }
 0x172   : > { %v4025_v25 = vadd.f32 %v2785_v62, %v3982_v19  ;;  %v2788_v40 = vadd.f32 %v2787_v2, %v2786_v42  ;;  %v2854_v32 = vpop.f32.mrb[61].mxu0 }
 0x173   : > { %v2855_v26 = vadd.f32 %v2854_v32, %v2853_v61  ;;  %v2856_v19 = vpop.f32.mrb[62].mxu0 }
 0x174   : > { %v4031_v29 = vadd.f32 %v2788_v40, %v3987_v13  ;;  %v2857_v55 = vpop.f32.mrb[63].mxu0 }
 0x175   : > { %v4040_v44 = vadd.f32 %v2855_v26, %v3956_v43  ;;  %v2858_v49 = vadd.f32 %v2857_v55, %v2856_v19 }
 0x176   : > { %v2789_v11 = vpop.f32.mrb[60].mxu1 }
 0x177   : > { %v2790_v16 = vpop.f32.mrb[61].mxu1  ;;  %v4046_v14 = vadd.f32 %v2858_v49, %v3963_v46 }
 0x178   : > { %v2791_v5 = vadd.f32 %v2790_v16, %v2789_v11  ;;  %v2792_v6 = vpop.f32.mrb[62].mxu1 }
 0x179   : > { %v2793_v59 = vpop.f32.mrb[63].mxu1  ;;  %v2859_v35 = vpop.f32.mrb[64].mxu0 }
 0x17a   : > { %v4037_v52 = vadd.f32 %v2791_v5, %v3992_v15  ;;  %v2794_v13 = vadd.f32 %v2793_v59, %v2792_v6  ;;  %v2860_v27 = vpop.f32.mrb[65].mxu0 }
 0x17b   : > { %v2861_v41 = vadd.f32 %v2860_v27, %v2859_v35  ;;  %v2862_v15 = vpop.f32.mrb[66].mxu0 }
 0x17c   : > { %v4043_v58 = vadd.f32 %v2794_v13, %v3997_v48  ;;  %v2863_v62 = vpop.f32.mrb[67].mxu0 }
 0x17d   : > { %v4052_v38 = vadd.f32 %v2861_v41, %v3969_v9  ;;  %v2864_v42 = vadd.f32 %v2863_v62, %v2862_v15 }
 0x17e   : > { %v2795_v31 = vpop.f32.mrb[64].mxu1 }
 0x17f   : > { %v2796_v33 = vpop.f32.mrb[65].mxu1  ;;  %v4058_v21 = vadd.f32 %v2864_v42, %v3972_v28 }
 0x180   : > { %v2797_v18 = vadd.f32 %v2796_v33, %v2795_v31  ;;  %v2798_v50 = vpop.f32.mrb[66].mxu1 }
 0x181   : > { %v2799_v51 = vpop.f32.mrb[67].mxu1  ;;  %v2865_v24 = vpop.f32.mrb[68].mxu0 }
 0x182   : > { %v4049_v43 = vadd.f32 %v2797_v18, %v3870_v37  ;;  %v2800_v48 = vadd.f32 %v2799_v51, %v2798_v50  ;;  %v2866_v36 = vpop.f32.mrb[69].mxu0 }
 0x183   : > { %v2867_v61 = vadd.f32 %v2866_v36, %v2865_v24  ;;  %v2868_v37 = vpop.f32.mrb[70].mxu0 }
 0x184   : > { %v4055_v46 = vadd.f32 %v2800_v48, %v3874_v60  ;;  %v2869_v5 = vpop.f32.mrb[71].mxu0 }
 0x185   : > { %v4064_v26 = vadd.f32 %v2867_v61, %v3977_v17  ;;  %v2870_v6 = vadd.f32 %v2869_v5, %v2868_v37 }
 0x186   : > { %v2801_v2 = vpop.f32.mrb[68].mxu1 }
 0x187   : > { %v2802_v40 = vpop.f32.mrb[69].mxu1  ;;  %v4070_v19 = vadd.f32 %v2870_v6, %v3980_v56 }
 0x188   : > { %v2803_v11 = vadd.f32 %v2802_v40, %v2801_v2  ;;  %v2804_v16 = vpop.f32.mrb[70].mxu1 }
 0x189   : > { %v2805_v32 = vpop.f32.mrb[71].mxu1  ;;  %v2871_v55 = vpop.f32.mrb[72].mxu0 }
 0x18a   : > { %v4061_v9 = vadd.f32 %v2803_v11, %v3881_v1  ;;  %v2806_v60 = vadd.f32 %v2805_v32, %v2804_v16  ;;  %v2872_v49 = vpop.f32.mrb[73].mxu0 }
 0x18b   : > { %v2873_v35 = vadd.f32 %v2872_v49, %v2871_v55  ;;  %v2874_v1 = vpop.f32.mrb[74].mxu0 }
 0x18c   : > { %v4067_v28 = vadd.f32 %v2806_v60, %v3885_v39  ;;  %v2875_v18 = vpop.f32.mrb[75].mxu0 }
 0x18d   : > { %v4076_v41 = vadd.f32 %v2873_v35, %v3985_v34  ;;  %v2876_v50 = vadd.f32 %v2875_v18, %v2874_v1 }
 0x18e   : > { %v2807_v59 = vpop.f32.mrb[72].mxu1 }
 0x18f   : > { %v2808_v13 = vpop.f32.mrb[73].mxu1  ;;  %v4082_v15 = vadd.f32 %v2876_v50, %v3990_v23 }
 0x190   : > { %v2809_v31 = vadd.f32 %v2808_v13, %v2807_v59  ;;  %v2810_v33 = vpop.f32.mrb[74].mxu1 }
 0x191   : > { %v2811_v27 = vpop.f32.mrb[75].mxu1  ;;  %v2877_v62 = vpop.f32.mrb[76].mxu0 }
 0x192   : > { %v4073_v17 = vadd.f32 %v2809_v31, %v3892_v47  ;;  %v2812_v39 = vadd.f32 %v2811_v27, %v2810_v33  ;;  %v2878_v42 = vpop.f32.mrb[77].mxu0 }
 0x193   : > { %v2879_v24 = vadd.f32 %v2878_v42, %v2877_v62  ;;  %v2880_v47 = vpop.f32.mrb[78].mxu0 }
 0x194   : > { %v4079_v56 = vadd.f32 %v2812_v39, %v3896_v45  ;;  %v2881_v11 = vpop.f32.mrb[79].mxu0 }
 0x195   : > { %v4088_v61 = vadd.f32 %v2879_v24, %v3995_v7  ;;  %v2882_v16 = vadd.f32 %v2881_v11, %v2880_v47 }
 0x196   : > { %v2813_v51 = vpop.f32.mrb[76].mxu1 }
 0x197   : > { %v2814_v48 = vpop.f32.mrb[77].mxu1  ;;  %v4094_v37 = vadd.f32 %v2882_v16, %v4000_v10 }
 0x198   : > { %v2815_v2 = vadd.f32 %v2814_v48, %v2813_v51  ;;  %v2816_v40 = vpop.f32.mrb[78].mxu1 }
 0x199   : > { %v2817_v36 = vpop.f32.mrb[79].mxu1  ;;  %v2883_v32 = vpop.f32.mrb[80].mxu0 }
 0x19a   : > { %v4085_v34 = vadd.f32 %v2815_v2, %v3904_v12  ;;  %v2818_v45 = vadd.f32 %v2817_v36, %v2816_v40  ;;  %v2884_v60 = vpop.f32.mrb[81].mxu0 }
 0x19b   : > { %v2885_v59 = vadd.f32 %v2884_v60, %v2883_v32  ;;  %v2886_v13 = vpop.f32.mrb[82].mxu0 }
 0x19c   : > { %v4091_v23 = vadd.f32 %v2818_v45, %v3908_v63  ;;  %v2887_v49 = vpop.f32.mrb[83].mxu0 }
 0x19d   : > { %v4097_v7 = vadd.f32 %v2885_v59, %v4003_v22  ;;  %v2888_v35 = vadd.f32 %v2887_v49, %v2886_v13 }
 0x19e   : > { %v2947_v5 = vpop.f32.mrb[80].mxu1 }
 0x19f   : > { %v2948_v6 = vpop.f32.mrb[81].mxu1  ;;  %v4103_v10 = vadd.f32 %v2888_v35, %v4008_v0 }
 0x1a0   : > { %v2949_v55 = vadd.f32 %v2948_v6, %v2947_v5  ;;  %v2950_v12 = vpop.f32.mrb[82].mxu1 }
 0x1a1   : > { %v2951_v31 = vpop.f32.mrb[83].mxu1  ;;  %v2889_v27 = vpop.f32.mrb[84].mxu0 }
 0x1a2   : > { %v2952_v33 = vadd.f32 %v2951_v31, %v2950_v12  ;;  %v4100_v63 = vadd.f32 %v2949_v55, %v4006_v57  ;;  %v2890_v39 = vpop.f32.mrb[85].mxu0 }
 0x1a3   : > { %v2891_v51 = vadd.f32 %v2890_v39, %v2889_v27  ;;  %v2892_v48 = vpop.f32.mrb[86].mxu0 }
 0x1a4   : > { %v4106_v1 = vadd.f32 %v2952_v33, %v4011_v4  ;;  %v2893_v42 = vpop.f32.mrb[87].mxu0 }
 0x1a5   : > { %v4109_v24 = vadd.f32 %v2891_v51, %v4014_v8  ;;  %v2894_v57 = vadd.f32 %v2893_v42, %v2892_v48 }
 0x1a6   : > { %v2953_v18 = vpop.f32.mrb[84].mxu1 }
 0x1a7   : > { %v2954_v50 = vpop.f32.mrb[85].mxu1  ;;  %v4115_v4 = vadd.f32 %v2894_v57, %v4019_v3 }
 0x1a8   : > { %v2955_v62 = vadd.f32 %v2954_v50, %v2953_v18  ;;  %v2956_v22 = vpop.f32.mrb[86].mxu1 }
 0x1a9   : > { %v2957_v2 = vpop.f32.mrb[87].mxu1  ;;  %v2895_v36 = vpop.f32.mrb[88].mxu0 }
 0x1aa   : > { %v2958_v40 = vadd.f32 %v2957_v2, %v2956_v22  ;;  %v4112_v0 = vadd.f32 %v2955_v62, %v4017_v20  ;;  %v2896_v45 = vpop.f32.mrb[89].mxu0 }
 0x1ab   : > { %v2897_v32 = vadd.f32 %v2896_v45, %v2895_v36  ;;  %v2898_v60 = vpop.f32.mrb[90].mxu0 }
 0x1ac   : > { %v4118_v47 = vadd.f32 %v2958_v40, %v4022_v53  ;;  %v2899_v6 = vpop.f32.mrb[91].mxu0 }
 0x1ad   : > { %v4121_v55 = vadd.f32 %v2897_v32, %v4025_v25  ;;  %v2900_v20 = vadd.f32 %v2899_v6, %v2898_v60 }
 0x1ae   : > { %v2959_v11 = vpop.f32.mrb[88].mxu1 }
 0x1af   : > { %v2960_v16 = vpop.f32.mrb[89].mxu1  ;;  %v4127_v53 = vadd.f32 %v2900_v20, %v4031_v29 }
 0x1b0   : > { %v2961_v5 = vadd.f32 %v2960_v16, %v2959_v11  ;;  %v2962_v8 = vpop.f32.mrb[90].mxu1 }
 0x1b1   : > { %v2963_v59 = vpop.f32.mrb[91].mxu1  ;;  %v2901_v49 = vpop.f32.mrb[92].mxu0 }
 0x1b2   : > { %v2964_v13 = vadd.f32 %v2963_v59, %v2962_v8  ;;  %v4124_v3 = vadd.f32 %v2961_v5, %v4028_v54  ;;  %v2902_v35 = vpop.f32.mrb[93].mxu0 }
 0x1b3   : > { %v2903_v27 = vadd.f32 %v2902_v35, %v2901_v49  ;;  %v2904_v39 = vpop.f32.mrb[94].mxu0 }
 0x1b4   : > { %v4130_v12 = vadd.f32 %v2964_v13, %v4034_v30  ;;  %v2905_v50 = vpop.f32.mrb[95].mxu0 }
 0x1b5   : > { %v4133_v62 = vadd.f32 %v2903_v27, %v4037_v52  ;;  %v2906_v54 = vadd.f32 %v2905_v50, %v2904_v39 }
 0x1b6   : > { %v2965_v31 = vpop.f32.mrb[92].mxu1 }
 0x1b7   : > { %v2966_v33 = vpop.f32.mrb[93].mxu1  ;;  %v4139_v30 = vadd.f32 %v2906_v54, %v4043_v58 }
 0x1b8   : > { %v2967_v18 = vadd.f32 %v2966_v33, %v2965_v31  ;;  %v2968_v25 = vpop.f32.mrb[94].mxu1 }
 0x1b9   : > { %v2969_v51 = vpop.f32.mrb[95].mxu1  ;;  %v2907_v42 = vpop.f32.mrb[96].mxu0 }
 0x1ba   : > { %v2970_v48 = vadd.f32 %v2969_v51, %v2968_v25  ;;  %v4136_v29 = vadd.f32 %v2967_v18, %v4040_v44  ;;  %v2908_v57 = vpop.f32.mrb[97].mxu0 }
 0x1bb   : > { %v2909_v36 = vadd.f32 %v2908_v57, %v2907_v42  ;;  %v2910_v45 = vpop.f32.mrb[98].mxu0 }
 0x1bc   : > { %v4142_v22 = vadd.f32 %v2970_v48, %v4046_v14  ;;  %v2911_v16 = vpop.f32.mrb[99].mxu0 }
 0x1bd   : > { %v4145_v5 = vadd.f32 %v2909_v36, %v4049_v43  ;;  %v2912_v44 = vadd.f32 %v2911_v16, %v2910_v45 }
 0x1be   : > { %v2971_v2 = vpop.f32.mrb[96].mxu1 }
 0x1bf   : > { %v2972_v40 = vpop.f32.mrb[97].mxu1  ;;  %v4151_v14 = vadd.f32 %v2912_v44, %v4055_v46 }
 0x1c0   : > { %v2973_v11 = vadd.f32 %v2972_v40, %v2971_v2  ;;  %v2974_v52 = vpop.f32.mrb[98].mxu1 }
 0x1c1   : > { %v2975_v32 = vpop.f32.mrb[99].mxu1  ;;  %v2913_v6 = vpop.f32.mrb[100].mxu0 }
 0x1c2   : > { %v2976_v60 = vadd.f32 %v2975_v32, %v2974_v52  ;;  %v4148_v58 = vadd.f32 %v2973_v11, %v4052_v38  ;;  %v2914_v20 = vpop.f32.mrb[101].mxu0 }
 0x1c3   : > { %v2915_v49 = vadd.f32 %v2914_v20, %v2913_v6  ;;  %v2916_v35 = vpop.f32.mrb[102].mxu0 }
 0x1c4   : > { %v4154_v8 = vadd.f32 %v2976_v60, %v4058_v21  ;;  %v2917_v33 = vpop.f32.mrb[103].mxu0 }
 0x1c5   : > { %v4157_v18 = vadd.f32 %v2915_v49, %v4061_v9  ;;  %v2918_v38 = vadd.f32 %v2917_v33, %v2916_v35 }
 0x1c6   : > { %v2977_v59 = vpop.f32.mrb[100].mxu1 }
 0x1c7   : > { %v2978_v13 = vpop.f32.mrb[101].mxu1  ;;  %v4163_v21 = vadd.f32 %v2918_v38, %v4067_v28 }
 0x1c8   : > { %v2979_v31 = vadd.f32 %v2978_v13, %v2977_v59  ;;  %v2980_v43 = vpop.f32.mrb[102].mxu1 }
 0x1c9   : > { %v2981_v27 = vpop.f32.mrb[103].mxu1  ;;  %v2919_v50 = vpop.f32.mrb[104].mxu0 }
 0x1ca   : > { %v2982_v39 = vadd.f32 %v2981_v27, %v2980_v43  ;;  %v4160_v46 = vadd.f32 %v2979_v31, %v4064_v26  ;;  %v2920_v54 = vpop.f32.mrb[105].mxu0 }
 0x1cb   : > { %v2921_v42 = vadd.f32 %v2920_v54, %v2919_v50  ;;  %v2922_v57 = vpop.f32.mrb[106].mxu0 }
 0x1cc   : > { %v4166_v25 = vadd.f32 %v2982_v39, %v4070_v19  ;;  %v2923_v40 = vpop.f32.mrb[107].mxu0 }
 0x1cd   : > { %v4169_v11 = vadd.f32 %v2921_v42, %v4073_v17  ;;  %v2924_v26 = vadd.f32 %v2923_v40, %v2922_v57 }
 0x1ce   : > { %v2983_v51 = vpop.f32.mrb[104].mxu1 }
 0x1cf   : > { %v2984_v48 = vpop.f32.mrb[105].mxu1  ;;  %v4175_v19 = vadd.f32 %v2924_v26, %v4079_v56 }
 0x1d0   : > { %v2985_v2 = vadd.f32 %v2984_v48, %v2983_v51  ;;  %v2986_v9 = vpop.f32.mrb[106].mxu1 }
 0x1d1   : > { %v2987_v36 = vpop.f32.mrb[107].mxu1  ;;  %v2925_v16 = vpop.f32.mrb[108].mxu0 }
 0x1d2   : > { %v2988_v45 = vadd.f32 %v2987_v36, %v2986_v9  ;;  %v4172_v28 = vadd.f32 %v2985_v2, %v4076_v41  ;;  %v2926_v44 = vpop.f32.mrb[109].mxu0 }
 0x1d3   : > { %v2927_v6 = vadd.f32 %v2926_v44, %v2925_v16  ;;  %v2928_v17 = vpop.f32.mrb[110].mxu0 }
 0x1d4   : > { %v4178_v52 = vadd.f32 %v2988_v45, %v4082_v15  ;;  %v2929_v13 = vpop.f32.mrb[111].mxu0 }
 0x1d5   : > { %v4181_v41 = vadd.f32 %v2927_v6, %v4085_v34  ;;  %v2930_v31 = vadd.f32 %v2929_v13, %v2928_v17 }
 0x1d6   : > { %v2989_v32 = vpop.f32.mrb[108].mxu1 }
 0x1d7   : > { %v2990_v60 = vpop.f32.mrb[109].mxu1  ;;  %v4187_v15 = vadd.f32 %v2930_v31, %v4091_v23 }
 0x1d8   : > { %v2991_v59 = vadd.f32 %v2990_v60, %v2989_v32  ;;  %v2992_v20 = vpop.f32.mrb[110].mxu1 }
 0x1d9   : > { %v2993_v49 = vpop.f32.mrb[111].mxu1  ;;  %v3085_v34 = vpop.f32.mrb[112].mxu0 }
 0x1da   : > { %v2994_v56 = vadd.f32 %v2993_v49, %v2992_v20  ;;  %v4184_v35 = vadd.f32 %v2991_v59, %v4088_v61  ;;  %v2162_v61 = vadd.f32 %v3085_v34, %v4112_v0  ;;  %v2153_v23 = vpop.f32.mrb[113].mxu0 }
 0x1db   : > { %v3086_v50 = vpop.f32.mrb[114].mxu0 }
 0x1dc   : > { %v4190_v43 = vadd.f32 %v2994_v56, %v4094_v37  ;;  %v2154_v37 = vadd.f32 %v2153_v23, %v4100_v63  ;;  %2282 = vst [vmem:[%s4197_s24 + $0x10] sm:$0xff] %v2162_v61  ;;  %v2165_v51 = vadd.f32 %v3086_v50, %v4118_v47  ;;  %v2156_v48 = vpop.f32.mrb[115].mxu0  ;;  %v2351_v36 = vmul.f32 %v2162_v61, %v2162_v61 }
 0x1dd   : > { %v2157_v2 = vadd.f32 %v2156_v48, %v4106_v1 }
 0x1de   : > { %v2995_v33 = vpop.f32.mrb[112].mxu1  ;;  %2280 = vst [vmem:[%s4197_s24] sm:$0xff] %v2154_v37  ;;  %2283 = vst [vmem:[%s4197_s24 + $0x18] sm:$0xff] %v2165_v51  ;;  %v2349_v0 = vmul.f32 %v2154_v37, %v2154_v37  ;;  %v2352_v32 = vmul.f32 %v2165_v51, %v2165_v51 }
 0x1df   : > { %v2996_v27 = vpop.f32.mrb[113].mxu1  ;;  %2281 = vst [vmem:[%s4197_s24 + $0x8] sm:$0xff] %v2157_v2  ;;  %v2312_v9 = vadd.f32 %v2157_v2, %v2154_v37  ;;  %v2350_v40 = vmul.f32 %v2157_v2, %v2157_v2 }
 0x1e0   : > { %v2997_v38 = vadd.f32 %v2996_v27, %v2995_v33  ;;  %v2998_v39 = vpop.f32.mrb[114].mxu1 }
 0x1e1   : > { %v2999_v54 = vpop.f32.mrb[115].mxu1  ;;  %v2313_v47 = vadd.f32 %v2312_v9, %v2162_v61  ;;  %v2381_v26 = vadd.f32 %v2350_v40, %v2349_v0  ;;  %v3089_v16 = vpop.f32.mrb[116].mxu0 }
 0x1e2   : > { %v3000_v42 = vadd.f32 %v2999_v54, %v2998_v39  ;;  %v4206_v57 = vadd.f32 %v2997_v38, %v4097_v7  ;;  %v2178_v1 = vadd.f32 %v3089_v16, %v4136_v29  ;;  %v2169_v44 = vpop.f32.mrb[117].mxu0 }
 0x1e3   : > { %v2382_v60 = vadd.f32 %v2381_v26, %v2351_v36  ;;  %v2170_v59 = vadd.f32 %v2169_v44, %v4124_v3  ;;  %v2314_v17 = vadd.f32 %v2313_v47, %v2165_v51  ;;  %v3090_v20 = vpop.f32.mrb[118].mxu0 }
 0x1e4   : > { %v4211_v63 = vadd.f32 %v3000_v42, %v4103_v10  ;;  %2286 = vst [vmem:[%s4197_s24 + $0x30] sm:$0xff] %v2178_v1  ;;  %v2181_v13 = vadd.f32 %v3090_v20, %v4142_v22  ;;  %v2172_v31 = vpop.f32.mrb[119].mxu0  ;;  %v2355_v50 = vmul.f32 %v2178_v1, %v2178_v1 }
 0x1e5   : > { %2284 = vst [vmem:[%s4197_s24 + $0x20] sm:$0xff] %v2170_v59  ;;  %v2315_v56 = vadd.f32 %v2314_v17, %v2170_v59  ;;  %v2353_v33 = vmul.f32 %v2170_v59, %v2170_v59  ;;  %v2383_v29 = vadd.f32 %v2382_v60, %v2352_v32  ;;  %v2173_v61 = vadd.f32 %v2172_v31, %v4130_v12 }
 0x1e6   : > { %v3001_v45 = vpop.f32.mrb[116].mxu1  ;;  %2287 = vst [vmem:[%s4197_s24 + $0x38] sm:$0xff] %v2181_v13  ;;  %v2356_v9 = vmul.f32 %v2181_v13, %v2181_v13 }
 0x1e7   : > { %v3002_v7 = vpop.f32.mrb[117].mxu1  ;;  %v2384_v3 = vadd.f32 %v2383_v29, %v2353_v33  ;;  %2285 = vst [vmem:[%s4197_s24 + $0x28] sm:$0xff] %v2173_v61  ;;  %v2316_v38 = vadd.f32 %v2315_v56, %v2173_v61  ;;  %v2354_v22 = vmul.f32 %v2173_v61, %v2173_v61 }
 0x1e8   : > { %v3003_v6 = vadd.f32 %v3002_v7, %v3001_v45  ;;  %v3004_v10 = vpop.f32.mrb[118].mxu1 }
 0x1e9   : > { %v3005_v49 = vpop.f32.mrb[119].mxu1  ;;  %v3093_v39 = vpop.f32.mrb[120].mxu0  ;;  %v2317_v51 = vadd.f32 %v2316_v38, %v2178_v1  ;;  %v2385_v54 = vadd.f32 %v2384_v3, %v2354_v22 }
 0x1ea   : > { %v3006_v34 = vadd.f32 %v3005_v49, %v3004_v10  ;;  %v4221_v27 = vadd.f32 %v3003_v6, %v4109_v24  ;;  %v2194_v48 = vadd.f32 %v3093_v39, %v4160_v46  ;;  %v2185_v42 = vpop.f32.mrb[121].mxu0 }
 0x1eb   : > { %v2186_v2 = vadd.f32 %v2185_v42, %v4148_v58  ;;  %v2386_v40 = vadd.f32 %v2385_v54, %v2355_v50  ;;  %v2318_v36 = vadd.f32 %v2317_v51, %v2181_v13 }
 0x1ec   : > { %v4224_v23 = vadd.f32 %v3006_v34, %v4115_v4  ;;  %v3094_v4 = vpop.f32.mrb[122].mxu0  ;;  %2290 = vst [vmem:[%s4197_s24 + $0x50] sm:$0xff] %v2194_v48  ;;  %v2359_v10 = vmul.f32 %v2194_v48, %v2194_v48 }
 0x1ed   : > { %v2197_v47 = vadd.f32 %v3094_v4, %v4166_v25  ;;  %v2188_v45 = vpop.f32.mrb[123].mxu0  ;;  %2288 = vst [vmem:[%s4197_s24 + $0x40] sm:$0xff] %v2186_v2  ;;  %v2357_v16 = vmul.f32 %v2186_v2, %v2186_v2  ;;  %v2319_v58 = vadd.f32 %v2318_v36, %v2186_v2  ;;  %v2387_v7 = vadd.f32 %v2386_v40, %v2356_v9 }
 0x1ee   : > { %v3007_v37 = vpop.f32.mrb[120].mxu1  ;;  %v2189_v32 = vadd.f32 %v2188_v45, %v4154_v8 }
 0x1ef   : > { %v3008_v12 = vpop.f32.mrb[121].mxu1  ;;  %2291 = vst [vmem:[%s4197_s24 + $0x58] sm:$0xff] %v2197_v47  ;;  %v2388_v6 = vadd.f32 %v2387_v7, %v2357_v16  ;;  %v2360_v29 = vmul.f32 %v2197_v47, %v2197_v47 }
 0x1f0   : > { %v3009_v24 = vadd.f32 %v3008_v12, %v3007_v37  ;;  %v3010_v0 = vpop.f32.mrb[122].mxu1  ;;  %2289 = vst [vmem:[%s4197_s24 + $0x48] sm:$0xff] %v2189_v32  ;;  %v2358_v44 = vmul.f32 %v2189_v32, %v2189_v32  ;;  %v2320_v25 = vadd.f32 %v2319_v58, %v2189_v32 }
 0x1f1   : > { %v3011_v26 = vpop.f32.mrb[123].mxu1  ;;  %v3097_v17 = vpop.f32.mrb[124].mxu0 }
 0x1f2   : > { %v3012_v46 = vadd.f32 %v3011_v26, %v3010_v0  ;;  %v4234_v1 = vadd.f32 %v3009_v24, %v4121_v55  ;;  %v2321_v20 = vadd.f32 %v2320_v25, %v2194_v48  ;;  %v2389_v8 = vadd.f32 %v2388_v6, %v2358_v44  ;;  %v2201_v49 = vpop.f32.mrb[125].mxu0 }
 0x1f3   : > { %v2210_v55 = vadd.f32 %v3097_v17, %v4184_v35  ;;  %v2202_v56 = vadd.f32 %v2201_v49, %v4172_v28 }
 0x1f4   : > { %v4239_v60 = vadd.f32 %v3012_v46, %v4127_v53  ;;  %v3098_v53 = vpop.f32.mrb[126].mxu0  ;;  %v2390_v34 = vadd.f32 %v2389_v8, %v2359_v10  ;;  %v2322_v61 = vadd.f32 %v2321_v20, %v2197_v47 }
 0x1f5   : > { %2294 = vst [vmem:[%s4197_s24 + $0x70] sm:$0xff] %v2210_v55  ;;  %v2213_v3 = vadd.f32 %v3098_v53, %v4190_v43  ;;  %v2204_v22 = vpop.f32.mrb[127].mxu0  ;;  %2292 = vst [vmem:[%s4197_s24 + $0x60] sm:$0xff] %v2202_v56  ;;  %v2361_v37 = vmul.f32 %v2202_v56, %v2202_v56  ;;  %v2363_v2 = vmul.f32 %v2210_v55, %v2210_v55 }
 0x1f6   : > { %v3013_v59 = vpop.f32.mrb[124].mxu1  ;;  %v2205_v39 = vadd.f32 %v2204_v22, %v4178_v52  ;;  %v2323_v28 = vadd.f32 %v2322_v61, %v2202_v56  ;;  %v2391_v51 = vadd.f32 %v2390_v34, %v2360_v29 }
 0x1f7   : > { %v3014_v13 = vpop.f32.mrb[125].mxu1  ;;  %2295 = vst [vmem:[%s4197_s24 + $0x78] sm:$0xff] %v2213_v3 }
 0x1f8   : > { %v3015_v31 = vadd.f32 %v3014_v13, %v3013_v59  ;;  %v3016_v33 = vpop.f32.mrb[126].mxu1  ;;  %2293 = vst [vmem:[%s4197_s24 + $0x68] sm:$0xff] %v2205_v39  ;;  %v2362_v54 = vmul.f32 %v2205_v39, %v2205_v39  ;;  %v2392_v12 = vadd.f32 %v2391_v51, %v2361_v37  ;;  %v2324_v42 = vadd.f32 %v2323_v28, %v2205_v39 }
 0x1f9   : > { %v3017_v38 = vpop.f32.mrb[127].mxu1  ;;  %v3101_v24 = vpop.f32.mrb[128].mxu0 }
 0x1fa   : > { %v3018_v35 = vadd.f32 %v3017_v38, %v3016_v33  ;;  %v2081_v50 = vadd.f32 %v3015_v31, %v4133_v62  ;;  %v2325_v0 = vadd.f32 %v2324_v42, %v2210_v55  ;;  %v2393_v4 = vadd.f32 %v2392_v12, %v2362_v54  ;;  %v2217_v62 = vpop.f32.mrb[129].mxu0 }
 0x1fb   : > { %v2226_v52 = vadd.f32 %v3101_v24, %v4221_v27  ;;  %v2218_v36 = vadd.f32 %v2217_v62, %v4206_v57  ;;  %v3102_v26 = vpop.f32.mrb[130].mxu0 }
 0x1fc   : > { %v2084_v48 = vadd.f32 %v3018_v35, %v4139_v30  ;;  %v2364_v30 = vmul.f32 %v2213_v3, %v2213_v3  ;;  %v2394_v45 = vadd.f32 %v2393_v4, %v2363_v2  ;;  %v2326_v16 = vadd.f32 %v2325_v0, %v2213_v3  ;;  %v2220_v58 = vpop.f32.mrb[131].mxu0 }
 0x1fd   : > { %2298 = vst [vmem:[%s4197_s24 + $0x90] sm:$0xff] %v2226_v52  ;;  %v2229_v46 = vadd.f32 %v3102_v26, %v4224_v23  ;;  %2296 = vst [vmem:[%s4197_s24 + $0x80] sm:$0xff] %v2218_v36  ;;  %v2365_v7 = vmul.f32 %v2218_v36, %v2218_v36  ;;  %v2221_v44 = vadd.f32 %v2220_v58, %v4211_v63 }
 0x1fe   : > { %v3019_v43 = vpop.f32.mrb[128].mxu1  ;;  %v2327_v57 = vadd.f32 %v2326_v16, %v2218_v36  ;;  %v2395_v25 = vadd.f32 %v2394_v45, %v2364_v30  ;;  %v2367_v55 = vmul.f32 %v2226_v52, %v2226_v52 }
 0x1ff   : > { %v3020_v9 = vpop.f32.mrb[129].mxu1  ;;  %2299 = vst [vmem:[%s4197_s24 + $0x98] sm:$0xff] %v2229_v46  ;;  %2297 = vst [vmem:[%s4197_s24 + $0x88] sm:$0xff] %v2221_v44  ;;  %v2366_v59 = vmul.f32 %v2221_v44, %v2221_v44 }
 0x200   : > { %v3021_v40 = vadd.f32 %v3020_v9, %v3019_v43  ;;  %v3022_v47 = vpop.f32.mrb[130].mxu1  ;;  %v2396_v10 = vadd.f32 %v2395_v25, %v2365_v7  ;;  %v2328_v20 = vadd.f32 %v2327_v57, %v2221_v44 }
 0x201   : > { %v3023_v32 = vpop.f32.mrb[131].mxu1  ;;  %v3105_v8 = vpop.f32.mrb[132].mxu0 }
 0x202   : > { %v3024_v27 = vadd.f32 %v3023_v32, %v3022_v47  ;;  %v2089_v6 = vadd.f32 %v3021_v40, %v4145_v5  ;;  %v2329_v13 = vadd.f32 %v2328_v20, %v2226_v52  ;;  %v2397_v49 = vadd.f32 %v2396_v10, %v2366_v59  ;;  %v2233_v56 = vpop.f32.mrb[133].mxu0 }
 0x203   : > { %v2242_v31 = vadd.f32 %v3105_v8, %v2081_v50  ;;  %v2234_v33 = vadd.f32 %v2233_v56, %v4234_v1  ;;  %v3106_v29 = vpop.f32.mrb[134].mxu0 }
 0x204   : > { %v2092_v17 = vadd.f32 %v3024_v27, %v4151_v14  ;;  %v2368_v14 = vmul.f32 %v2229_v46, %v2229_v46  ;;  %v2398_v34 = vadd.f32 %v2397_v49, %v2367_v55  ;;  %v2330_v61 = vadd.f32 %v2329_v13, %v2229_v46  ;;  %v2236_v22 = vpop.f32.mrb[135].mxu0 }
 0x205   : > { %2302 = vst [vmem:[%s4197_s24 + $0xb0] sm:$0xff] %v2242_v31  ;;  %v2245_v3 = vadd.f32 %v3106_v29, %v2084_v48  ;;  %2300 = vst [vmem:[%s4197_s24 + $0xa0] sm:$0xff] %v2234_v33  ;;  %v2369_v37 = vmul.f32 %v2234_v33, %v2234_v33  ;;  %v2237_v39 = vadd.f32 %v2236_v22, %v4239_v60 }
 0x206   : > { %v3025_v23 = vpop.f32.mrb[132].mxu1  ;;  %v2331_v28 = vadd.f32 %v2330_v61, %v2234_v33  ;;  %v2399_v1 = vadd.f32 %v2398_v34, %v2368_v14  ;;  %v2371_v24 = vmul.f32 %v2242_v31, %v2242_v31 }
 0x207   : > { %v3026_v63 = vpop.f32.mrb[133].mxu1  ;;  %2303 = vst [vmem:[%s4197_s24 + $0xb8] sm:$0xff] %v2245_v3  ;;  %2301 = vst [vmem:[%s4197_s24 + $0xa8] sm:$0xff] %v2237_v39  ;;  %v2370_v51 = vmul.f32 %v2237_v39, %v2237_v39  ;;  %v2372_v36 = vmul.f32 %v2245_v3, %v2245_v3 }
 0x208   : > { %v3027_v5 = vadd.f32 %v3026_v63, %v3025_v23  ;;  %v3028_v53 = vpop.f32.mrb[134].mxu1  ;;  %v2400_v12 = vadd.f32 %v2399_v1, %v2369_v37  ;;  %v2332_v42 = vadd.f32 %v2331_v28, %v2237_v39 }
 0x209   : > { %v3029_v38 = vpop.f32.mrb[135].mxu1  ;;  %v3109_v43 = vpop.f32.mrb[136].mxu0 }
 0x20a   : > { %v3030_v35 = vadd.f32 %v3029_v38, %v3028_v53  ;;  %v2097_v50 = vadd.f32 %v3027_v5, %v4157_v18  ;;  %v2333_v2 = vadd.f32 %v2332_v42, %v2242_v31  ;;  %v2401_v0 = vadd.f32 %v2400_v12, %v2370_v51  ;;  %v2249_v52 = vpop.f32.mrb[137].mxu0 }
 0x20b   : > { %v2250_v9 = vadd.f32 %v2249_v52, %v2089_v6  ;;  %v3110_v40 = vpop.f32.mrb[138].mxu0 }
 0x20c   : > { %v2100_v54 = vadd.f32 %v3030_v35, %v4163_v21  ;;  %v2258_v4 = vadd.f32 %v3109_v43, %v2097_v50  ;;  %v2402_v21 = vadd.f32 %v2401_v0, %v2371_v24  ;;  %v2334_v47 = vadd.f32 %v2333_v2, %v2245_v3  ;;  %v2252_v45 = vpop.f32.mrb[139].mxu0 }
 0x20d   : > { %2304 = vst [vmem:[%s4197_s24 + $0xc0] sm:$0xff] %v2250_v9  ;;  %v2373_v16 = vmul.f32 %v2250_v9, %v2250_v9  ;;  %v2253_v32 = vadd.f32 %v2252_v45, %v2092_v17 }
 0x20e   : > { %v3031_v48 = vpop.f32.mrb[136].mxu1  ;;  %2306 = vst [vmem:[%s4197_s24 + $0xd0] sm:$0xff] %v2258_v4  ;;  %v2261_v26 = vadd.f32 %v3110_v40, %v2100_v54  ;;  %v2335_v7 = vadd.f32 %v2334_v47, %v2250_v9  ;;  %v2403_v27 = vadd.f32 %v2402_v21, %v2372_v36  ;;  %v2375_v20 = vmul.f32 %v2258_v4, %v2258_v4 }
 0x20f   : > { %v3032_v60 = vpop.f32.mrb[137].mxu1  ;;  %2305 = vst [vmem:[%s4197_s24 + $0xc8] sm:$0xff] %v2253_v32  ;;  %v2374_v44 = vmul.f32 %v2253_v32, %v2253_v32 }
 0x210   : > { %v3033_v18 = vadd.f32 %v3032_v60, %v3031_v48  ;;  %v3034_v62 = vpop.f32.mrb[138].mxu1  ;;  %2307 = vst [vmem:[%s4197_s24 + $0xd8] sm:$0xff] %v2261_v26  ;;  %v2404_v57 = vadd.f32 %v2403_v27, %v2373_v16  ;;  %v2336_v25 = vadd.f32 %v2335_v7, %v2253_v32  ;;  %v2376_v63 = vmul.f32 %v2261_v26, %v2261_v26 }
 0x211   : > { %v3035_v30 = vpop.f32.mrb[139].mxu1  ;;  %v3113_v10 = vpop.f32.mrb[140].mxu0 }
 0x212   : > { %v3036_v46 = vadd.f32 %v3035_v30, %v3034_v62  ;;  %v2105_v58 = vadd.f32 %v3033_v18, %v4169_v11  ;;  %v2337_v23 = vadd.f32 %v2336_v25, %v2258_v4  ;;  %v2405_v8 = vadd.f32 %v2404_v57, %v2374_v44  ;;  %v2265_v13 = vpop.f32.mrb[141].mxu0 }
 0x213   : > { %v3114_v31 = vpop.f32.mrb[142].mxu0 }
 0x214   : > { %v2108_v6 = vadd.f32 %v3036_v46, %v4175_v19  ;;  %v2266_v49 = vadd.f32 %v2265_v13, %v2105_v58  ;;  %v2406_v56 = vadd.f32 %v2405_v8, %v2375_v20  ;;  %v2338_v5 = vadd.f32 %v2337_v23, %v2261_v26  ;;  %v2268_v33 = vpop.f32.mrb[143].mxu0 }
 0x216   : > { %v3037_v59 = vpop.f32.mrb[140].mxu1  ;;  %2308 = vst [vmem:[%s4197_s24 + $0xe0] sm:$0xff] %v2266_v49  ;;  %v2377_v29 = vmul.f32 %v2266_v49, %v2266_v49  ;;  %v2269_v34 = vadd.f32 %v2268_v33, %v2108_v6  ;;  %v2339_v61 = vadd.f32 %v2338_v5, %v2266_v49  ;;  %v2407_v3 = vadd.f32 %v2406_v56, %v2376_v63 }
 0x217   : > { %v3038_v55 = vpop.f32.mrb[141].mxu1 }
 0x218   : > { %v3039_v17 = vadd.f32 %v3038_v55, %v3037_v59  ;;  %v3040_v11 = vpop.f32.mrb[142].mxu1  ;;  %2309 = vst [vmem:[%s4197_s24 + $0xe8] sm:$0xff] %v2269_v34  ;;  %v2378_v37 = vmul.f32 %v2269_v34, %v2269_v34  ;;  %v2408_v35 = vadd.f32 %v2407_v3, %v2377_v29  ;;  %v2340_v39 = vadd.f32 %v2339_v61, %v2269_v34 }
 0x219   : > { %v3041_v19 = vpop.f32.mrb[143].mxu1 }
 0x21a   : > { %v2113_v53 = vadd.f32 %v3039_v17, %v4181_v41  ;;  %v3042_v14 = vadd.f32 %v3041_v19, %v3040_v11  ;;  %v2409_v41 = vadd.f32 %v2408_v35, %v2378_v37 }
 0x21c   : > { %v2274_v38 = vadd.f32 %v3113_v10, %v2113_v53  ;;  %v2116_v22 = vadd.f32 %v3042_v14, %v4187_v15 }
 0x21e   : > { %2310 = vst [vmem:[%s4197_s24 + $0xf0] sm:$0xff] %v2274_v38  ;;  %v2379_v50 = vmul.f32 %v2274_v38, %v2274_v38  ;;  %v2277_v28 = vadd.f32 %v3114_v31, %v2116_v22  ;;  %v2341_v1 = vadd.f32 %v2340_v39, %v2274_v38 }
 0x220   : > { %2311 = vst [vmem:[%s4197_s24 + $0xf8] sm:$0xff] %v2277_v28  ;;  %v2380_v51 = vmul.f32 %v2277_v28, %v2277_v28  ;;  %v2342_v54 = vadd.f32 %v2341_v1, %v2277_v28  ;;  %v2410_v12 = vadd.f32 %v2409_v41, %v2379_v50 }
 0x222   : > { %v2343_v42 = vrot.slane %v2342_v54, 4  ;;  %v2411_v48 = vadd.f32 %v2410_v12, %v2380_v51 }
 0x224   : > { %v2344_v43 = vadd.f32 %v2343_v42, %v2342_v54  ;;  %v2412_v24 = vrot.slane %v2411_v48, 4 }
 0x226   : > { %v2345_v2 = vrot.slane %v2344_v43, 2  ;;  %v2413_v15 = vadd.f32 %v2412_v24, %v2411_v48 }
 0x228   : > { %v2346_v0 = vadd.f32 %v2345_v2, %v2344_v43  ;;  %v2414_v4 = vrot.slane %v2413_v15, 2 }
 0x22a   : > { %v2347_v60 = vrot.slane %v2346_v0, 1  ;;  %v2415_v52 = vadd.f32 %v2414_v4, %v2413_v15 }
 0x22c   : > { %v2416_v18 = vrot.slane %v2415_v52, 1  ;;  %v2348_v9 = vadd.f32 %v2347_v60, %v2346_v0 }
 0x22e   : > { %v2417_v62 = vadd.f32 %v2416_v18, %v2415_v52 }
 0x230   : > { %v2419_v40 = vsel %vm2418_vm0, %v2348_v9, %v2417_v62 }
 0x231   : > { %2420 = vst [vmem:[%s235_s27] sm:$0x3] %v2419_v40 }
 0x232 PF: > { %s16_s18 = sadd.s32 1, %s3219_s18  }
 0x233   : > { %p13_p4 = scmp.ge.s32.totalorder %s16_s18, 4  }
 0x235   :  { %15 = sbr.rel (!%p13_p4) target bundleno = 1 (0x1), region = 80 }

// kernel: residual_block_forward.3
= control target key start
LH: loop header
LB: loop body
LE: loop exit
PB: predicated region body
PF: predicated region fallthrough
CT: control target
= control target key end

     0   :  { %s3849_s21 = smov 0   ;;  %s4777_s0 = inlined_call_operand.vmem [shape: f32[2,18,18,128], index: 0, kind: input, shape index: {}]   ;;  %s4778_s1 = inlined_call_operand.vmem [shape: bf16[1152,128], index: 1, kind: input, shape index: {}]   ;;  %s4779_s2 = inlined_call_operand.vmem [shape: bf16[128,128], index: 2, kind: input, shape index: {}]   ;;  %s4780_s3 = inlined_call_operand.vmem [shape: f32[2,16,16,128], index: 3, kind: output, shape index: {0}]   ;;  %s4781_s4 = inlined_call_operand.vmem [shape: f32[2,2,128], index: 4, kind: output, shape index: {1}]   ;;  %s4782_s5 = inlined_call_operand.vmem [shape: f32[2,16,16,128], index: 5, kind: output, shape index: {2}]   ;;  %s4783_s6 = inlined_call_operand.vmem [shape: f32[2,2,128], index: 6, kind: output, shape index: {3}]  }
   0x1 LB: > { %s2805_s22 = sadd.s32 4294967295, %s3812_s21   ;;  %p2809_p0 = scmp.ge.s32.totalorder %s3812_s21, 1  ;;  %s3812_s21 = sphi %s3849_s21, %s17_s21  }
   0x2   : > { %p219_p1 = scmp.lt.s32.totalorder %s3812_s21, 3 }
   0x4   : > { %p220_p2 = pnand %p2809_p0, %p219_p1 }
   0x5   : > { %v3726_v0 = vld [vmem:[%s4778_s1 + $0x40] sm:$0xff] (!%p220_p2)   ;;  %v3730_v4 = vld [vmem:[%s4778_s1 + $0x48] sm:$0xff] (!%p220_p2)   ;;  %v3734_v8 = vld [vmem:[%s4778_s1 + $0x50] sm:$0xff] (!%p220_p2)   ;;  %p262_p3 = scmp.lt.s32.totalorder (!%p220_p2), %s2805_s22, 1  ;;  %vm2239_vm0 = vcmask (!%p220_p2), 1040384  }
   0x6   : > { %223 = sbr.rel (%p220_p2) target bundleno = 591 (0x24f), region = 32  ;;  %v3727_v1 = vld [vmem:[%s4778_s1 + $0xc0] sm:$0xff] (!%p220_p2)   ;;  %3125 = vmatprep.subr.bf16.mxu0 (!%p220_p2), %v3726_v0  ;;  %v3731_v5 = vld [vmem:[%s4778_s1 + $0xc8] sm:$0xff] (!%p220_p2)   ;;  %v3735_v9 = vld [vmem:[%s4778_s1 + $0xd0] sm:$0xff] (!%p220_p2)  }
   0x7   : > { %v3728_v2 = vld [vmem:[%s4778_s1] sm:$0xff] (!%p220_p2)   ;;  %3237 = vmatprep.subr.bf16.mxu1 (!%p220_p2), %v3727_v1  ;;  %v3732_v6 = vld [vmem:[%s4778_s1 + $0x8] sm:$0xff] (!%p220_p2)   ;;  %v3736_v10 = vld [vmem:[%s4778_s1 + $0x10] sm:$0xff] (!%p220_p2)  }
   0x8   : > { %v3729_v3 = vld [vmem:[%s4778_s1 + $0x80] sm:$0xff] (!%p220_p2)   ;;  %3126 = vmatpush3.bf16.msra.mxu0 (!%p220_p2), %v3728_v2  ;;  %v3733_v7 = vld [vmem:[%s4778_s1 + $0x88] sm:$0xff] (!%p220_p2)   ;;  %v3737_v11 = vld [vmem:[%s4778_s1 + $0x90] sm:$0xff] (!%p220_p2)  }
   0x9   : > { %3238 = vmatpush3.bf16.msra.mxu1 (!%p220_p2), %v3729_v3  ;;  %3127 = vmatprep.subr.bf16.mxu0 (!%p220_p2), %v3730_v4  ;;  %v3738_v12 = vld [vmem:[%s4778_s1 + $0x58] sm:$0xff] (!%p220_p2)   ;;  %v3742_v16 = vld [vmem:[%s4778_s1 + $0x60] sm:$0xff] (!%p220_p2)   ;;  %v3746_v20 = vld [vmem:[%s4778_s1 + $0x68] sm:$0xff] (!%p220_p2)  }
   0xa   : > { %3239 = vmatprep.subr.bf16.mxu1 (!%p220_p2), %v3731_v5  ;;  %v3739_v13 = vld [vmem:[%s4778_s1 + $0xd8] sm:$0xff] (!%p220_p2)   ;;  %v3743_v17 = vld [vmem:[%s4778_s1 + $0xe0] sm:$0xff] (!%p220_p2)   ;;  %v3747_v21 = vld [vmem:[%s4778_s1 + $0xe8] sm:$0xff] (!%p220_p2)  }
   0xb   : > { %v3740_v14 = vld [vmem:[%s4778_s1 + $0x18] sm:$0xff] (!%p220_p2)   ;;  %v3744_v18 = vld [vmem:[%s4778_s1 + $0x20] sm:$0xff] (!%p220_p2)   ;;  %v3748_v22 = vld [vmem:[%s4778_s1 + $0x28] sm:$0xff] (!%p220_p2)  }
   0xc   : > { %3128 = vmatpush3.bf16.msra.mxu0 (!%p220_p2), %v3732_v6  ;;  %v3741_v15 = vld [vmem:[%s4778_s1 + $0x98] sm:$0xff] (!%p220_p2)   ;;  %v3745_v19 = vld [vmem:[%s4778_s1 + $0xa0] sm:$0xff] (!%p220_p2)   ;;  %v3749_v23 = vld [vmem:[%s4778_s1 + $0xa8] sm:$0xff] (!%p220_p2)  }
   0xd   : > { %3240 = vmatpush3.bf16.msra.mxu1 %v3733_v7  ;;  %3129 = vmatprep.subr.bf16.mxu0 %v3734_v8  ;;  %s4785_s22 = smov (!%p262_p3, %s2805_s22), 1  ;;  %v3750_v24 = vld [vmem:[%s4778_s1 + $0x70] sm:$0xff]   ;;  %v3754_v28 = vld [vmem:[%s4778_s1 + $0x78] sm:$0xff]   ;;  %v3758_v44 = vld [vmem:[%s4778_s1 + $0x140] sm:$0xff]  }
   0xe   : > { %3241 = vmatprep.subr.bf16.mxu1 %v3735_v9  ;;  %v3751_v25 = vld [vmem:[%s4778_s1 + $0xf0] sm:$0xff]   ;;  %s3717_s7 = smul.u32 432, %s4785_s22  ;;  %v3755_v29 = vld [vmem:[%s4778_s1 + $0xf8] sm:$0xff]   ;;  %v3759_v45 = vld [vmem:[%s4778_s1 + $0x100] sm:$0xff]   ;;  %s2813_s20 = sshll.u32 %s4785_s22, 1 }
   0xf   : > { %v3752_v26 = vld [vmem:[%s4778_s1 + $0x30] sm:$0xff]   ;;  %v3756_v30 = vld [vmem:[%s4778_s1 + $0x38] sm:$0xff]   ;;  %v3760_v46 = vld [vmem:[%s4778_s1 + $0x1c0] sm:$0xff]   ;;  %s284_s25 = scalar_lea.vmem %s4783_s6, %s2813_s20  ;;  %s275_s28 = scalar_lea.vmem %s4781_s4, %s2813_s20 }
  0x10   : > { %3130 = vmatpush3.bf16.msra.mxu0 %v3736_v10  ;;  %v3753_v27 = vld [vmem:[%s4778_s1 + $0xb0] sm:$0xff]   ;;  %s3957_s18 = scalar_lea.vmem %s4777_s0, %s3717_s7  ;;  %v3757_v31 = vld [vmem:[%s4778_s1 + $0xb8] sm:$0xff]   ;;  %v3761_v47 = vld [vmem:[%s4778_s1 + $0x180] sm:$0xff]  }
  0x11   : > { %3242 = vmatpush3.bf16.msra.mxu1 %v3737_v11  ;;  %3131 = vmatprep.subr.bf16.mxu0 %v3738_v12  ;;  %v334_v32 = vld [vmem:[%s3957_s18 + $0x1] sm:$0xff]  ;;  %v335_v33 = vld [vmem:[%s3957_s18 + $0x9] sm:$0xff]  ;;  %v2817_v34 = vld [vmem:[%s3957_s18 + $0x18] sm:$0xff] }
  0x12   : > { %3243 = vmatprep.subr.bf16.mxu1 %v3739_v13  ;;  %v366_v35 = vpack.c.bf16 %v335_v33, %v334_v32  ;;  %v2818_v36 = vld [vmem:[%s3957_s18 + $0x20] sm:$0xff]  ;;  %v287_v38 = vld [vmem:[%s3957_s18 + $0x8] sm:$0xff]  ;;  %v2819_v50 = vld [vmem:[%s3957_s18 + $0x30] sm:$0xff] }
  0x13   : > { %v286_v37 = vld [vmem:[%s3957_s18] sm:$0xff]  ;;  %v463_v39 = vpack.c.bf16 %v2818_v36, %v2817_v34  ;;  %v383_v42 = vld [vmem:[%s3957_s18 + $0xa] sm:$0xff]  ;;  %v2820_v51 = vld [vmem:[%s3957_s18 + $0x38] sm:$0xff] }
  0x14   : > { %3132 = vmatpush3.bf16.msra.mxu0 %v3740_v14  ;;  %v318_v40 = vpack.c.bf16 %v287_v38, %v286_v37  ;;  %v382_v41 = vld [vmem:[%s3957_s18 + $0x2] sm:$0xff]  ;;  %1328 = vmatprep.mubr.bf16.mxu0 %v366_v35  ;;  %v336_v48 = vld [vmem:[%s3957_s18 + $0x19] sm:$0xff]  ;;  %v3991_v53 = vpack.c.bf16 %v2820_v51, %v2819_v50  ;;  %v338_v56 = vld [vmem:[%s3957_s18 + $0x31] sm:$0xff] }
  0x15   : > { %3244 = vmatpush3.bf16.msra.mxu1 %v3741_v15  ;;  %3133 = vmatprep.subr.bf16.mxu0 %v3742_v16  ;;  %v414_v43 = vpack.c.bf16 %v383_v42, %v382_v41  ;;  %v337_v49 = vld [vmem:[%s3957_s18 + $0x21] sm:$0xff]  ;;  %v339_v58 = vld [vmem:[%s3957_s18 + $0x39] sm:$0xff]  ;;  %v2822_v60 = vld [vmem:[%s3957_s18 + $0x50] sm:$0xff] }
  0x16   : > { %3245 = vmatprep.subr.bf16.mxu1 %v3743_v17  ;;  %1489 = vmatprep.mubr.bf16.mxu1 %v463_v39  ;;  %v3989_v52 = vpack.c.bf16 %v337_v49, %v336_v48  ;;  %v384_v54 = vld [vmem:[%s3957_s18 + $0x1a] sm:$0xff]  ;;  %v385_v55 = vld [vmem:[%s3957_s18 + $0x22] sm:$0xff]  ;;  %v4003_v61 = vpack.c.bf16 %v339_v58, %v338_v56  ;;  %v386_v0 = vld [vmem:[%s3957_s18 + $0x32] sm:$0xff] }
  0x17   : > { %v3996_v57 = vpack.c.bf16 %v385_v55, %v384_v54  ;;  %v2821_v59 = vld [vmem:[%s3957_s18 + $0x48] sm:$0xff]  ;;  %v387_v1 = vld [vmem:[%s3957_s18 + $0x3a] sm:$0xff]  ;;  %v341_v6 = vld [vmem:[%s3957_s18 + $0x51] sm:$0xff] }
  0x18   : > { %3134 = vmatpush3.bf16.msra.mxu0 %v3744_v18  ;;  %v4005_v62 = vpack.c.bf16 %v2822_v60, %v2821_v59  ;;  %v3762_v63 = vld [vmem:[%s4778_s1 + $0x148] sm:$0xff]   ;;  %v2823_v7 = vld [vmem:[%s3957_s18 + $0x60] sm:$0xff]  ;;  %v4028_v9 = vpack.c.bf16 %v387_v1, %v386_v0  ;;  %v3766_v12 = vld [vmem:[%s4778_s1 + $0x150] sm:$0xff]  }
  0x19   : > { %3246 = vmatpush3.bf16.msra.mxu1 %v3745_v19  ;;  %3135 = vmatprep.subr.bf16.mxu0 %v3746_v20  ;;  %v3763_v2 = vld [vmem:[%s4778_s1 + $0x108] sm:$0xff]   ;;  %v389_v14 = vld [vmem:[%s3957_s18 + $0x52] sm:$0xff]  ;;  %v3774_v38 = vld [vmem:[%s4778_s1 + $0x160] sm:$0xff]  }
  0x1a   : > { %3247 = vmatprep.subr.bf16.mxu1 %v3747_v21  ;;  %v3764_v3 = vld [vmem:[%s4778_s1 + $0x1c8] sm:$0xff]   ;;  %v3767_v16 = vld [vmem:[%s4778_s1 + $0x110] sm:$0xff]   ;;  %v2825_v20 = vld [vmem:[%s3957_s18 + $0x78] sm:$0xff] }
  0x1b   : > { %v3765_v4 = vld [vmem:[%s4778_s1 + $0x188] sm:$0xff]   ;;  %v3768_v17 = vld [vmem:[%s4778_s1 + $0x1d0] sm:$0xff]   ;;  %v2826_v21 = vld [vmem:[%s3957_s18 + $0x80] sm:$0xff] }
  0x1c   : > { %3136 = vmatpush3.bf16.msra.mxu0 %v3748_v22  ;;  %v340_v5 = vld [vmem:[%s3957_s18 + $0x49] sm:$0xff]  ;;  %v342_v15 = vld [vmem:[%s3957_s18 + $0x61] sm:$0xff]  ;;  %v3773_v32 = vld [vmem:[%s4778_s1 + $0x198] sm:$0xff]  }
  0x1d   : > { %3248 = vmatpush3.bf16.msra.mxu1 %v3749_v23  ;;  %3137 = vmatprep.subr.bf16.mxu0 %v3750_v24  ;;  %v2824_v8 = vld [vmem:[%s3957_s18 + $0x68] sm:$0xff]  ;;  %v4030_v10 = vpack.c.bf16 %v341_v6, %v340_v5  ;;  %v3769_v19 = vld [vmem:[%s4778_s1 + $0x190] sm:$0xff]   ;;  %v4060_v24 = vpack.c.bf16 %v2826_v21, %v2825_v20  ;;  %v2828_v34 = vld [vmem:[%s3957_s18 + $0x98] sm:$0xff] }
  0x1e   : > { %3249 = vmatprep.subr.bf16.mxu1 %v3751_v25  ;;  %v4032_v11 = vpack.c.bf16 %v2824_v8, %v2823_v7  ;;  %v388_v13 = vld [vmem:[%s3957_s18 + $0x4a] sm:$0xff]  ;;  %v3770_v25 = vld [vmem:[%s4778_s1 + $0x158] sm:$0xff]   ;;  %v3775_v42 = vld [vmem:[%s4778_s1 + $0x120] sm:$0xff]  }
  0x1f   : > { %v343_v18 = vld [vmem:[%s3957_s18 + $0x69] sm:$0xff]  ;;  %v4056_v22 = vpack.c.bf16 %v389_v14, %v388_v13  ;;  %v346_v41 = vld [vmem:[%s3957_s18 + $0x91] sm:$0xff]  ;;  %v395_v55 = vld [vmem:[%s3957_s18 + $0x9a] sm:$0xff] }
  0x20   : > { %3138 = vmatpush3.bf16.msra.mxu0 %v3752_v26  ;;  %v4058_v23 = vpack.c.bf16 %v343_v18, %v342_v15  ;;  %v390_v26 = vld [vmem:[%s3957_s18 + $0x62] sm:$0xff]  ;;  %v2827_v33 = vld [vmem:[%s3957_s18 + $0x90] sm:$0xff]  ;;  %v3786_v21 = vld [vmem:[%s4778_s1 + $0x178] sm:$0xff]  }
  0x21   : > { %3250 = vmatpush3.bf16.msra.mxu1 %v3753_v27  ;;  %3139 = vmatprep.subr.bf16.mxu0 %v3754_v28  ;;  %v391_v27 = vld [vmem:[%s3957_s18 + $0x6a] sm:$0xff]  ;;  %v344_v28 = vld [vmem:[%s3957_s18 + $0x79] sm:$0xff]  ;;  %v4088_v37 = vpack.c.bf16 %v2828_v34, %v2827_v33  ;;  %v350_v8 = vld [vmem:[%s3957_s18 + $0xc1] sm:$0xff] }
  0x22   : > { %3251 = vmatprep.subr.bf16.mxu1 %v3755_v29  ;;  %v3771_v29 = vld [vmem:[%s4778_s1 + $0x118] sm:$0xff]   ;;  %v4084_v35 = vpack.c.bf16 %v391_v27, %v390_v26  ;;  %v3778_v51 = vld [vmem:[%s4778_s1 + $0x168] sm:$0xff]   ;;  %v2831_v0 = vld [vmem:[%s3957_s18 + $0xc0] sm:$0xff] }
  0x23   : > { %v394_v54 = vld [vmem:[%s3957_s18 + $0x92] sm:$0xff]  ;;  %v348_v56 = vld [vmem:[%s3957_s18 + $0xa9] sm:$0xff] }
  0x24   : > { %3140 = vmatpush3.bf16.msra.mxu0 %v3756_v30  ;;  %v3772_v30 = vld [vmem:[%s4778_s1 + $0x1d8] sm:$0xff]   ;;  %v3779_v58 = vld [vmem:[%s4778_s1 + $0x128] sm:$0xff]   ;;  %v3782_v5 = vld [vmem:[%s4778_s1 + $0x170] sm:$0xff]  }
  0x25   : > { %3252 = vmatpush3.bf16.msra.mxu1 %v3757_v31  ;;  %3349 = vmatprep.subr.bf16.mxu0 %v3758_v44  ;;  %v345_v31 = vld [vmem:[%s3957_s18 + $0x81] sm:$0xff]  ;;  %v347_v44 = vld [vmem:[%s3957_s18 + $0x99] sm:$0xff]  ;;  %v349_v60 = vld [vmem:[%s3957_s18 + $0xb1] sm:$0xff] }
  0x26   : > { %3461 = vmatprep.subr.bf16.mxu1 %v3760_v46  ;;  %v4086_v36 = vpack.c.bf16 %v345_v31, %v344_v28  ;;  %v2829_v46 = vld [vmem:[%s3957_s18 + $0xa8] sm:$0xff]  ;;  %v4114_v49 = vpack.c.bf16 %v347_v44, %v346_v41  ;;  %v397_v7 = vld [vmem:[%s3957_s18 + $0xb2] sm:$0xff]  ;;  %v4210_v41 = vld [vmem:[%s4779_s2] sm:$0xff]  }
  0x27   : > { %1329 = vmatmul.mubr.bf16.vlgmr.msra.gmra.mrb[0].mxu0 %v318_v40  ;;  %v393_v40 = vld [vmem:[%s3957_s18 + $0x82] sm:$0xff]  ;;  %v396_v6 = vld [vmem:[%s3957_s18 + $0xaa] sm:$0xff]  ;;  %v352_v27 = vld [vmem:[%s3957_s18 + $0xd9] sm:$0xff] }
  0x28   : > { %1490 = vmatmul.mubr.bf16.vlgmr.msra.gmra.mrb[0].mxu1 %v414_v43  ;;  %3350 = vmatpush3.bf16.msra.mxu0 %v3759_v45  ;;  %v3776_v43 = vld [vmem:[%s4778_s1 + $0x1e0] sm:$0xff]   ;;  %v3780_v59 = vld [vmem:[%s4778_s1 + $0x1e8] sm:$0xff]   ;;  %v3784_v13 = vld [vmem:[%s4778_s1 + $0x1f0] sm:$0xff]   ;;  %v4168_v18 = vpack.c.bf16 %v397_v7, %v396_v6 }
  0x29   : > { %3462 = vmatpush3.bf16.msra.mxu1 %v3761_v47  ;;  %1336 = vmatprep.mubr.bf16.mxu0 %v3989_v52  ;;  %v3777_v45 = vld [vmem:[%s4778_s1 + $0x1a0] sm:$0xff]   ;;  %v2830_v47 = vld [vmem:[%s3957_s18 + $0xb0] sm:$0xff]  ;;  %v2832_v1 = vld [vmem:[%s3957_s18 + $0xc8] sm:$0xff] }
  0x2a   : > { %1497 = vmatprep.mubr.bf16.mxu1 %v3991_v53  ;;  %3351 = vmatprep.subr.bf16.mxu0 %v3762_v63  ;;  %v4116_v50 = vpack.c.bf16 %v2830_v47, %v2829_v46  ;;  %v3781_v63 = vld [vmem:[%s4778_s1 + $0x1a8] sm:$0xff]   ;;  %v3785_v15 = vld [vmem:[%s4778_s1 + $0x1b0] sm:$0xff]   ;;  %v3787_v28 = vld [vmem:[%s4778_s1 + $0x138] sm:$0xff]  }
  0x2b   : > { %3463 = vmatprep.subr.bf16.mxu1 %v3764_v3  ;;  %v4142_v3 = vpack.c.bf16 %v349_v60, %v348_v56  ;;  %v351_v14 = vld [vmem:[%s3957_s18 + $0xc9] sm:$0xff]  ;;  %v3789_v31 = vld [vmem:[%s4778_s1 + $0x1b8] sm:$0xff]  }
  0x2c   : > { %3352 = vmatpush3.bf16.msra.mxu0 %v3763_v2  ;;  %v4140_v2 = vpack.c.bf16 %v395_v55, %v394_v54  ;;  %v399_v26 = vld [vmem:[%s3957_s18 + $0xca] sm:$0xff]  ;;  %v2836_v33 = vld [vmem:[%s3957_s18 + $0xf8] sm:$0xff] }
  0x2d   : > { %3464 = vmatpush3.bf16.msra.mxu1 %v3765_v4  ;;  %3353 = vmatprep.subr.bf16.mxu0 %v3766_v12  ;;  %v4144_v4 = vpack.c.bf16 %v2832_v1, %v2831_v0  ;;  %v3783_v12 = vld [vmem:[%s4778_s1 + $0x130] sm:$0xff]   ;;  %v2837_v46 = vld [vmem:[%s3957_s18 + $0x108] sm:$0xff] }
  0x2e   : > { %3465 = vmatprep.subr.bf16.mxu1 %v3768_v17  ;;  %v2834_v17 = vld [vmem:[%s3957_s18 + $0xe0] sm:$0xff]  ;;  %v354_v44 = vld [vmem:[%s3957_s18 + $0xf1] sm:$0xff]  ;;  %v2840_v0 = vld [vmem:[%s3957_s18 + $0x128] sm:$0xff] }
  0x2f   : > { %1337 = vmatmul.mubr.bf16.gmra.mrb[4].mxu0 %v463_v39  ;;  %v392_v39 = vld [vmem:[%s3957_s18 + $0x7a] sm:$0xff]  ;;  %v2838_v47 = vld [vmem:[%s3957_s18 + $0x110] sm:$0xff] }
  0x30   : > { %1498 = vmatmul.mubr.bf16.gmra.mrb[4].mxu1 %v3996_v57  ;;  %1344 = vmatprep.mubr.bf16.mxu0 %v4003_v61  ;;  %v4112_v48 = vpack.c.bf16 %v393_v40, %v392_v39  ;;  %v4203_v39 = vld [vmem:[%s4778_s1 + $0x200] sm:$0xff]   ;;  %v4228_v55 = vpack.c.bf16 %v2838_v47, %v2837_v46  ;;  %v402_v56 = vld [vmem:[%s3957_s18 + $0xf2] sm:$0xff]  ;;  %v404_v7 = vld [vmem:[%s3957_s18 + $0x10a] sm:$0xff] }
  0x31   : > { %1505 = vmatprep.mubr.bf16.mxu1 %v4005_v62  ;;  %3354 = vmatpush3.bf16.msra.mxu0 %v3767_v16  ;;  %v2833_v16 = vld [vmem:[%s3957_s18 + $0xd8] sm:$0xff]  ;;  %v2845_v46 = vld [vmem:[%s3957_s18 + $0x168] sm:$0xff]  ;;  %v2846_v47 = vld [vmem:[%s3957_s18 + $0x170] sm:$0xff] }
  0x32   : > { %3466 = vmatpush3.bf16.msra.mxu1 %v3769_v19  ;;  %3355 = vmatprep.subr.bf16.mxu0 %v3770_v25  ;;  %v4170_v19 = vpack.c.bf16 %v351_v14, %v350_v8  ;;  %v4172_v20 = vpack.c.bf16 %v2834_v17, %v2833_v16  ;;  %v398_v25 = vld [vmem:[%s3957_s18 + $0xc2] sm:$0xff]  ;;  %v357_v60 = vld [vmem:[%s3957_s18 + $0x111] sm:$0xff] }
  0x33   : > { %3467 = vmatprep.subr.bf16.mxu1 %v3772_v30  ;;  %v353_v30 = vld [vmem:[%s3957_s18 + $0xe1] sm:$0xff]  ;;  %v4196_v34 = vpack.c.bf16 %v399_v26, %v398_v25  ;;  %v405_v8 = vld [vmem:[%s3957_s18 + $0x112] sm:$0xff]  ;;  %v407_v26 = vld [vmem:[%s3957_s18 + $0x12a] sm:$0xff] }
  0x34   : > { %v2841_v14 = vld [vmem:[%s3957_s18 + $0x138] sm:$0xff]  ;;  %v4256_v16 = vpack.c.bf16 %v405_v8, %v404_v7  ;;  %v406_v25 = vld [vmem:[%s3957_s18 + $0x122] sm:$0xff] }
  0x35   : > { %3356 = vmatpush3.bf16.msra.mxu0 %v3771_v29  ;;  %v3788_v29 = vld [vmem:[%s4778_s1 + $0x1f8] sm:$0xff]   ;;  %v2847_v8 = vld [vmem:[%s3957_s18 + $0x180] sm:$0xff] }
  0x36   : > { %3468 = vmatpush3.bf16.msra.mxu1 %v3773_v32  ;;  %3357 = vmatprep.subr.bf16.mxu0 %v3774_v38  ;;  %v2835_v32 = vld [vmem:[%s3957_s18 + $0xf0] sm:$0xff]  ;;  %v4198_v38 = vpack.c.bf16 %v353_v30, %v352_v27  ;;  %v360_v27 = vld [vmem:[%s3957_s18 + $0x139] sm:$0xff] }
  0x37   : > { %1345 = vmatmul.mubr.bf16.gmra.mrb[8].mxu0 %v3991_v53  ;;  %3469 = vmatprep.subr.bf16.mxu1 %v3776_v43  ;;  %v4205_v40 = vpack.c.bf16 %v2836_v33, %v2835_v32  ;;  %v401_v43 = vld [vmem:[%s3957_s18 + $0xe2] sm:$0xff]  ;;  %v2844_v30 = vld [vmem:[%s3957_s18 + $0x158] sm:$0xff] }
  0x38   : > { %1506 = vmatmul.mubr.bf16.gmra.mrb[8].mxu1 %v4028_v9  ;;  %1352 = vmatprep.mubr.bf16.mxu0 %v4030_v10  ;;  %v365_v7 = vld [vmem:[%s3957_s18 + $0x171] sm:$0xff] }
  0x39   : > { %1513 = vmatprep.mubr.bf16.mxu1 %v4032_v11  ;;  %3358 = vmatpush3.bf16.msra.mxu0 %v3775_v42  ;;  %v400_v42 = vld [vmem:[%s3957_s18 + $0xda] sm:$0xff] }
  0x3a   : > { %3470 = vmatpush3.bf16.msra.mxu1 %v3777_v45  ;;  %3359 = vmatprep.subr.bf16.mxu0 %v3778_v51  ;;  %v355_v45 = vld [vmem:[%s3957_s18 + $0xf9] sm:$0xff]  ;;  %v4224_v51 = vpack.c.bf16 %v401_v43, %v400_v42  ;;  %v409_v43 = vld [vmem:[%s3957_s18 + $0x142] sm:$0xff] }
  0x3b   : > { %3471 = vmatprep.subr.bf16.mxu1 %v3780_v59  ;;  %v4226_v54 = vpack.c.bf16 %v355_v45, %v354_v44  ;;  %v356_v59 = vld [vmem:[%s3957_s18 + $0x109] sm:$0xff]  ;;  %v408_v42 = vld [vmem:[%s3957_s18 + $0x13a] sm:$0xff]  ;;  %v362_v44 = vld [vmem:[%s3957_s18 + $0x151] sm:$0xff] }
  0x3c   : > { %v363_v45 = vld [vmem:[%s3957_s18 + $0x159] sm:$0xff] }
  0x3d   : > { %3360 = vmatpush3.bf16.msra.mxu0 %v3779_v58  ;;  %v403_v58 = vld [vmem:[%s3957_s18 + $0xfa] sm:$0xff] }
  0x3e   : > { %3472 = vmatpush3.bf16.msra.mxu1 %v3781_v63  ;;  %3361 = vmatprep.subr.bf16.mxu0 %v3782_v5  ;;  %v2839_v63 = vld [vmem:[%s3957_s18 + $0x120] sm:$0xff]  ;;  %v4240_v1 = vpack.c.bf16 %v403_v58, %v402_v56  ;;  %v4242_v5 = vpack.c.bf16 %v357_v60, %v356_v59  ;;  %v4288_v56 = vpack.c.bf16 %v409_v43, %v408_v42  ;;  %v410_v60 = vld [vmem:[%s3957_s18 + $0x152] sm:$0xff] }
  0x3f   : > { %1353 = vmatmul.mubr.bf16.gmra.mrb[12].mxu0 %v4005_v62  ;;  %3473 = vmatprep.subr.bf16.mxu1 %v3784_v13  ;;  %v4244_v6 = vpack.c.bf16 %v2840_v0, %v2839_v63  ;;  %v359_v13 = vld [vmem:[%s3957_s18 + $0x129] sm:$0xff]  ;;  %v4290_v58 = vpack.c.bf16 %v363_v45, %v362_v44  ;;  %v4292_v59 = vpack.c.bf16 %v2846_v47, %v2845_v46  ;;  %v411_v63 = vld [vmem:[%s3957_s18 + $0x15a] sm:$0xff] }
  0x40   : > { %1514 = vmatmul.mubr.bf16.gmra.mrb[12].mxu1 %v4056_v22  ;;  %1360 = vmatprep.mubr.bf16.mxu0 %v4058_v23  ;;  %v364_v0 = vld [vmem:[%s3957_s18 + $0x169] sm:$0xff]  ;;  %v2973_v44 = vld [vmem:[%s3957_s18 + $0x181] sm:$0xff] }
  0x41   : > { %1521 = vmatprep.mubr.bf16.mxu1 %v4060_v24  ;;  %3362 = vmatpush3.bf16.msra.mxu0 %v3783_v12  ;;  %v358_v12 = vld [vmem:[%s3957_s18 + $0x121] sm:$0xff]  ;;  %v2974_v45 = vld [vmem:[%s3957_s18 + $0x189] sm:$0xff] }
  0x42   : > { %3474 = vmatpush3.bf16.msra.mxu1 %v3785_v15  ;;  %3363 = vmatprep.subr.bf16.mxu0 %v3786_v21  ;;  %v2842_v15 = vld [vmem:[%s3957_s18 + $0x140] sm:$0xff]  ;;  %v4258_v17 = vpack.c.bf16 %v359_v13, %v358_v12  ;;  %v2848_v12 = vld [vmem:[%s3957_s18 + $0x188] sm:$0xff]  ;;  %v4304_v13 = vpack.c.bf16 %v411_v63, %v410_v60 }
  0x43   : > { %3475 = vmatprep.subr.bf16.mxu1 %v3788_v29  ;;  %v4260_v21 = vpack.c.bf16 %v2842_v15, %v2841_v14  ;;  %v2843_v29 = vld [vmem:[%s3957_s18 + $0x150] sm:$0xff]  ;;  %v4306_v14 = vpack.c.bf16 %v365_v7, %v364_v0  ;;  %v4308_v15 = vpack.c.bf16 %v2848_v12, %v2847_v8  ;;  %v4428_v7 = vpack.c.bf16 %v2974_v45, %v2973_v44 }
  0x44   : > { %v4276_v33 = vpack.c.bf16 %v2844_v30, %v2843_v29  ;;  %v3793_v29 = vld [vmem:[%s4779_s2 + $0x8] sm:$0xff]   ;;  %v3083_v44 = vld [vmem:[%s3957_s18 + $0x31] sm:$0xff] }
  0x45   : > { %3364 = vmatpush3.bf16.msra.mxu0 %v3787_v28  ;;  %v361_v28 = vld [vmem:[%s3957_s18 + $0x141] sm:$0xff] }
  0x46   : > { %3476 = vmatpush3.bf16.msra.mxu1 %v3789_v31  ;;  %3621 = vmatprep.subr.bf16.mxu0 %v4203_v39  ;;  %v4272_v31 = vpack.c.bf16 %v407_v26, %v406_v25  ;;  %v4274_v32 = vpack.c.bf16 %v361_v28, %v360_v27  ;;  %v412_v25 = vld [vmem:[%s3957_s18 + $0x16a] sm:$0xff]  ;;  %v413_v26 = vld [vmem:[%s3957_s18 + $0x172] sm:$0xff] }
  0x47   : > { %1361 = vmatmul.mubr.bf16.gmra.mrb[16].mxu0 %v4032_v11  ;;  %3669 = vmatprep.subr.bf16.mxu1 %v4210_v41  ;;  %v4316_v27 = vpack.c.bf16 %v413_v26, %v412_v25  ;;  %v3792_v28 = vld [vmem:[%s4778_s1 + $0x208] sm:$0xff]  }
  0x48   : > { %1522 = vmatmul.mubr.bf16.gmra.mrb[16].mxu1 %v4084_v35  ;;  %1368 = vmatprep.mubr.bf16.mxu0 %v4086_v36 }
  0x49   : > { %1529 = vmatprep.mubr.bf16.mxu1 %v4088_v37 }
  0x4f   : > { %1369 = vmatmul.mubr.bf16.gmra.mrb[20].mxu0 %v4060_v24 }
  0x50   : > { %1530 = vmatmul.mubr.bf16.gmra.mrb[20].mxu1 %v4112_v48  ;;  %1376 = vmatprep.mubr.bf16.mxu0 %v4114_v49 }
  0x51   : > { %1537 = vmatprep.mubr.bf16.mxu1 %v4116_v50 }
  0x57   : > { %1377 = vmatmul.mubr.bf16.gmra.mrb[24].mxu0 %v4088_v37 }
  0x58   : > { %1538 = vmatmul.mubr.bf16.gmra.mrb[24].mxu1 %v4140_v2  ;;  %1384 = vmatprep.mubr.bf16.mxu0 %v4142_v3 }
  0x59   : > { %1545 = vmatprep.mubr.bf16.mxu1 %v4144_v4 }
  0x5f   : > { %1385 = vmatmul.mubr.bf16.gmra.mrb[28].mxu0 %v4116_v50 }
  0x60   : > { %1546 = vmatmul.mubr.bf16.gmra.mrb[28].mxu1 %v4168_v18  ;;  %1392 = vmatprep.mubr.bf16.mxu0 %v4170_v19 }
  0x61   : > { %1553 = vmatprep.mubr.bf16.mxu1 %v4172_v20 }
  0x67   : > { %1393 = vmatmul.mubr.bf16.gmra.mrb[32].mxu0 %v4144_v4 }
  0x68   : > { %1554 = vmatmul.mubr.bf16.gmra.mrb[32].mxu1 %v4196_v34  ;;  %1400 = vmatprep.mubr.bf16.mxu0 %v4198_v38 }
  0x69   : > { %1561 = vmatprep.mubr.bf16.mxu1 %v4205_v40 }
  0x6f   : > { %1401 = vmatmul.mubr.bf16.gmra.mrb[36].mxu0 %v4172_v20 }
  0x70   : > { %1562 = vmatmul.mubr.bf16.gmra.mrb[36].mxu1 %v4224_v51  ;;  %1408 = vmatprep.mubr.bf16.mxu0 %v4226_v54 }
  0x71   : > { %1569 = vmatprep.mubr.bf16.mxu1 %v4228_v55 }
  0x77   : > { %1409 = vmatmul.mubr.bf16.gmra.mrb[40].mxu0 %v4205_v40 }
  0x78   : > { %1570 = vmatmul.mubr.bf16.gmra.mrb[40].mxu1 %v4240_v1  ;;  %1416 = vmatprep.mubr.bf16.mxu0 %v4242_v5 }
  0x79   : > { %1577 = vmatprep.mubr.bf16.mxu1 %v4244_v6 }
  0x7f   : > { %1417 = vmatmul.mubr.bf16.gmra.mrb[44].mxu0 %v4228_v55 }
  0x80   : > { %1578 = vmatmul.mubr.bf16.gmra.mrb[44].mxu1 %v4256_v16  ;;  %1424 = vmatprep.mubr.bf16.mxu0 %v4258_v17 }
  0x81   : > { %1585 = vmatprep.mubr.bf16.mxu1 %v4260_v21 }
  0x87   : > { %1425 = vmatmul.mubr.bf16.gmra.mrb[48].mxu0 %v4244_v6 }
  0x88   : > { %1586 = vmatmul.mubr.bf16.gmra.mrb[48].mxu1 %v4272_v31  ;;  %1432 = vmatprep.mubr.bf16.mxu0 %v4274_v32 }
  0x89   : > { %1593 = vmatprep.mubr.bf16.mxu1 %v4276_v33 }
  0x8f   : > { %1433 = vmatmul.mubr.bf16.gmra.mrb[52].mxu0 %v4260_v21 }
  0x90   : > { %1594 = vmatmul.mubr.bf16.gmra.mrb[52].mxu1 %v4288_v56  ;;  %1440 = vmatprep.mubr.bf16.mxu0 %v4290_v58 }
  0x91   : > { %1601 = vmatprep.mubr.bf16.mxu1 %v4292_v59 }
  0x97   : > { %1441 = vmatmul.mubr.bf16.gmra.mrb[56].mxu0 %v4276_v33 }
  0x98   : > { %1602 = vmatmul.mubr.bf16.gmra.mrb[56].mxu1 %v4304_v13  ;;  %1448 = vmatprep.mubr.bf16.mxu0 %v4306_v14 }
  0x99   : > { %1609 = vmatprep.mubr.bf16.mxu1 %v4308_v15 }
  0x9f   : > { %1449 = vmatmul.mubr.bf16.gmra.mrb[60].mxu0 %v4292_v59 }
  0xa0   : > { %1610 = vmatmul.mubr.bf16.gmra.mrb[60].mxu1 %v4316_v27  ;;  %1650 = vmatprep.mubr.bf16.mxu0 %v3996_v57  ;;  %v3794_v57 = vld [vmem:[%s4778_s1 + $0x210] sm:$0xff]  }
  0xa1   : > { %1811 = vmatprep.mubr.bf16.mxu1 %v4003_v61 }
  0xa7   : > { %1651 = vmatmul.mubr.bf16.vlgmr.msra.gmra.mrb[64].mxu0 %v3989_v52  ;;  %v3795_v52 = vld [vmem:[%s4779_s2 + $0x10] sm:$0xff]  }
  0xa8   : > { %1812 = vmatmul.mubr.bf16.vlgmr.msra.gmra.mrb[64].mxu1 %v3991_v53  ;;  %3622 = vmatpush3.bf16.msra.mxu0 %v4203_v39  ;;  %v3796_v53 = vld [vmem:[%s4778_s1 + $0x218] sm:$0xff]   ;;  %v3798_v39 = vld [vmem:[%s4778_s1 + $0x220] sm:$0xff]  }
  0xa9   : > { %3670 = vmatpush3.bf16.msra.mxu1 %v4210_v41  ;;  %1658 = vmatprep.mubr.bf16.mxu0 %v4028_v9  ;;  %v3797_v9 = vld [vmem:[%s4779_s2 + $0x18] sm:$0xff]   ;;  %v3802_v41 = vld [vmem:[%s4778_s1 + $0x230] sm:$0xff]  }
  0xaa   : > { %1819 = vmatprep.mubr.bf16.mxu1 %v4030_v10  ;;  %3623 = vmatprep.subr.bf16.mxu0 %v3792_v28 }
  0xab   : > { %3671 = vmatprep.subr.bf16.mxu1 %v3793_v29 }
  0xac   : > { %3624 = vmatpush3.bf16.msra.mxu0 %v3792_v28  ;;  %v2911_v28 = vld [vmem:[%s3957_s18 + $0x182] sm:$0xff] }
  0xad   : > { %3672 = vmatpush3.bf16.msra.mxu1 %v3793_v29  ;;  %3625 = vmatprep.subr.bf16.mxu0 %v3794_v57  ;;  %v2912_v29 = vld [vmem:[%s3957_s18 + $0x18a] sm:$0xff] }
  0xae   : > { %3673 = vmatprep.subr.bf16.mxu1 %v3795_v52 }
  0xaf   : > { %1659 = vmatmul.mubr.bf16.gmra.mrb[68].mxu0 %v4003_v61  ;;  %v3799_v61 = vld [vmem:[%s4779_s2 + $0x20] sm:$0xff]  }
  0xb0   : > { %1820 = vmatmul.mubr.bf16.gmra.mrb[68].mxu1 %v4005_v62  ;;  %1666 = vmatprep.mubr.bf16.mxu0 %v4056_v22  ;;  %v3800_v62 = vld [vmem:[%s4778_s1 + $0x228] sm:$0xff]  }
  0xb1   : > { %1827 = vmatprep.mubr.bf16.mxu1 %v4058_v23  ;;  %3626 = vmatpush3.bf16.msra.mxu0 %v3794_v57  ;;  %v3801_v22 = vld [vmem:[%s4779_s2 + $0x28] sm:$0xff]  }
  0xb2   : > { %3674 = vmatpush3.bf16.msra.mxu1 %v3795_v52  ;;  %3627 = vmatprep.subr.bf16.mxu0 %v3796_v53  ;;  %v2975_v52 = vld [vmem:[%s3957_s18 + $0x199] sm:$0xff] }
  0xb3   : > { %3675 = vmatprep.subr.bf16.mxu1 %v3797_v9 }
  0xb5   : > { %3628 = vmatpush3.bf16.msra.mxu0 %v3796_v53  ;;  %v2976_v53 = vld [vmem:[%s3957_s18 + $0x1a1] sm:$0xff] }
  0xb6   : > { %3676 = vmatpush3.bf16.msra.mxu1 %v3797_v9  ;;  %3629 = vmatprep.subr.bf16.mxu0 %v3798_v39 }
  0xb7   : > { %1667 = vmatmul.mubr.bf16.gmra.mrb[72].mxu0 %v4030_v10  ;;  %3677 = vmatprep.subr.bf16.mxu1 %v3799_v61  ;;  %v3803_v10 = vld [vmem:[%s4779_s2 + $0x30] sm:$0xff]  }
  0xb8   : > { %1828 = vmatmul.mubr.bf16.gmra.mrb[72].mxu1 %v4032_v11  ;;  %1674 = vmatprep.mubr.bf16.mxu0 %v4084_v35  ;;  %v3804_v11 = vld [vmem:[%s4778_s1 + $0x238] sm:$0xff]  }
  0xb9   : > { %1835 = vmatprep.mubr.bf16.mxu1 %v4086_v36  ;;  %3630 = vmatpush3.bf16.msra.mxu0 %v3798_v39  ;;  %v3805_v35 = vld [vmem:[%s4779_s2 + $0x38] sm:$0xff]  }
  0xba   : > { %3678 = vmatpush3.bf16.msra.mxu1 %v3799_v61  ;;  %3631 = vmatprep.subr.bf16.mxu0 %v3800_v62 }
  0xbb   : > { %3679 = vmatprep.subr.bf16.mxu1 %v3801_v22 }
  0xbd   : > { %3632 = vmatpush3.bf16.msra.mxu0 %v3800_v62 }
  0xbe   : > { %3680 = vmatpush3.bf16.msra.mxu1 %v3801_v22  ;;  %3633 = vmatprep.subr.bf16.mxu0 %v3802_v41 }
  0xbf   : > { %1675 = vmatmul.mubr.bf16.gmra.mrb[76].mxu0 %v4058_v23  ;;  %3681 = vmatprep.subr.bf16.mxu1 %v3803_v10 }
  0xc0   : > { %1836 = vmatmul.mubr.bf16.gmra.mrb[76].mxu1 %v4060_v24  ;;  %1682 = vmatprep.mubr.bf16.mxu0 %v4112_v48 }
  0xc1   : > { %1843 = vmatprep.mubr.bf16.mxu1 %v4114_v49  ;;  %3634 = vmatpush3.bf16.msra.mxu0 %v3802_v41 }
  0xc2   : > { %3682 = vmatpush3.bf16.msra.mxu1 %v3803_v10  ;;  %3635 = vmatprep.subr.bf16.mxu0 %v3804_v11  ;;  %v671_v10 = vpack.c.bf16 %v2976_v53, %v2975_v52 }
  0xc3   : > { %3683 = vmatprep.subr.bf16.mxu1 %v3805_v35 }
  0xc5   : > { %3636 = vmatpush3.bf16.msra.mxu0 %v3804_v11 }
  0xc6   : > { %3684 = vmatpush3.bf16.msra.mxu1 %v3805_v35 }
  0xc7   : > { %1683 = vmatmul.mubr.bf16.gmra.mrb[80].mxu0 %v4086_v36 }
  0xc8   : > { %1844 = vmatmul.mubr.bf16.gmra.mrb[80].mxu1 %v4088_v37  ;;  %1690 = vmatprep.mubr.bf16.mxu0 %v4140_v2 }
  0xc9   : > { %1851 = vmatprep.mubr.bf16.mxu1 %v4142_v3 }
  0xcf   : > { %1691 = vmatmul.mubr.bf16.gmra.mrb[84].mxu0 %v4114_v49 }
  0xd0   : > { %1852 = vmatmul.mubr.bf16.gmra.mrb[84].mxu1 %v4116_v50  ;;  %1698 = vmatprep.mubr.bf16.mxu0 %v4168_v18 }
  0xd1   : > { %1859 = vmatprep.mubr.bf16.mxu1 %v4170_v19 }
  0xd7   : > { %1699 = vmatmul.mubr.bf16.gmra.mrb[88].mxu0 %v4142_v3 }
  0xd8   : > { %1860 = vmatmul.mubr.bf16.gmra.mrb[88].mxu1 %v4144_v4  ;;  %1706 = vmatprep.mubr.bf16.mxu0 %v4196_v34 }
  0xd9   : > { %1867 = vmatprep.mubr.bf16.mxu1 %v4198_v38 }
  0xdf   : > { %1707 = vmatmul.mubr.bf16.gmra.mrb[92].mxu0 %v4170_v19 }
  0xe0   : > { %1868 = vmatmul.mubr.bf16.gmra.mrb[92].mxu1 %v4172_v20  ;;  %1714 = vmatprep.mubr.bf16.mxu0 %v4224_v51 }
  0xe1   : > { %1875 = vmatprep.mubr.bf16.mxu1 %v4226_v54 }
  0xe7   : > { %1715 = vmatmul.mubr.bf16.gmra.mrb[96].mxu0 %v4198_v38 }
  0xe8   : > { %1876 = vmatmul.mubr.bf16.gmra.mrb[96].mxu1 %v4205_v40  ;;  %1722 = vmatprep.mubr.bf16.mxu0 %v4240_v1 }
  0xe9   : > { %1883 = vmatprep.mubr.bf16.mxu1 %v4242_v5 }
  0xef   : > { %1723 = vmatmul.mubr.bf16.gmra.mrb[100].mxu0 %v4226_v54 }
  0xf0   : > { %1884 = vmatmul.mubr.bf16.gmra.mrb[100].mxu1 %v4228_v55  ;;  %1730 = vmatprep.mubr.bf16.mxu0 %v4256_v16 }
  0xf1   : > { %1891 = vmatprep.mubr.bf16.mxu1 %v4258_v17 }
  0xf7   : > { %1731 = vmatmul.mubr.bf16.gmra.mrb[104].mxu0 %v4242_v5 }
  0xf8   : > { %1892 = vmatmul.mubr.bf16.gmra.mrb[104].mxu1 %v4244_v6  ;;  %1738 = vmatprep.mubr.bf16.mxu0 %v4272_v31 }
  0xf9   : > { %1899 = vmatprep.mubr.bf16.mxu1 %v4274_v32 }
  0xfa   : > { %v3141_v23 = vpop.f32.mrb[0].mxu0 }
  0xfb   : > { %v3253_v24 = vpop.f32.mrb[0].mxu1  ;;  %v3142_v36 = vpop.f32.mrb[1].mxu0 }
  0xfc   : > { %v3143_v37 = vadd.f32 %v3142_v36, %v3141_v23  ;;  %v3254_v48 = vpop.f32.mrb[1].mxu1  ;;  %v3144_v49 = vpop.f32.mrb[2].mxu0  ;;  %v2943_v36 = vld [vmem:[%s3957_s18 + $0x198] sm:$0xff] }
  0xfd   : > { %v3255_v50 = vadd.f32 %v3254_v48, %v3253_v24  ;;  %v3256_v2 = vpop.f32.mrb[2].mxu1  ;;  %v3145_v3 = vpop.f32.mrb[3].mxu0  ;;  %v2944_v48 = vld [vmem:[%s3957_s18 + $0x1a0] sm:$0xff] }
  0xfe   : > { %v3146_v4 = vadd.f32 %v3145_v3, %v3144_v49  ;;  %v3257_v18 = vpop.f32.mrb[3].mxu1  ;;  %v2977_v49 = vld [vmem:[%s3957_s18 + $0x32] sm:$0xff] }
  0xff   : > { %v4410_v19 = vadd.f32 %v3255_v50, %v3143_v37  ;;  %v3258_v20 = vadd.f32 %v3257_v18, %v3256_v2  ;;  %1739 = vmatmul.mubr.bf16.gmra.mrb[108].mxu0 %v4258_v17  ;;  %v2978_v50 = vld [vmem:[%s3957_s18 + $0x3a] sm:$0xff] }
 0x100   : > { %1900 = vmatmul.mubr.bf16.gmra.mrb[108].mxu1 %v4260_v21  ;;  %1746 = vmatprep.mubr.bf16.mxu0 %v4288_v56  ;;  %v3081_v3 = vld [vmem:[%s3957_s18 + $0x19] sm:$0xff] }
 0x101   : > { %v4415_v34 = vadd.f32 %v3258_v20, %v3146_v4  ;;  %1907 = vmatprep.mubr.bf16.mxu1 %v4290_v58  ;;  %v3082_v4 = vld [vmem:[%s3957_s18 + $0x21] sm:$0xff] }
 0x102   : > { %v3147_v38 = vpop.f32.mrb[4].mxu0 }
 0x103   : > { %v3259_v40 = vpop.f32.mrb[4].mxu1  ;;  %v3148_v51 = vpop.f32.mrb[5].mxu0 }
 0x104   : > { %v3149_v54 = vadd.f32 %v3148_v51, %v3147_v38  ;;  %v3260_v55 = vpop.f32.mrb[5].mxu1  ;;  %v3150_v1 = vpop.f32.mrb[6].mxu0  ;;  %v704_v51 = vpack.c.bf16 %v2978_v50, %v2977_v49  ;;  %v3089_v49 = vld [vmem:[%s3957_s18 + $0x79] sm:$0xff]  ;;  %v3090_v50 = vld [vmem:[%s3957_s18 + $0x81] sm:$0xff] }
 0x105   : > { %v3261_v5 = vadd.f32 %v3260_v55, %v3259_v40  ;;  %v3262_v6 = vpop.f32.mrb[6].mxu1  ;;  %v3151_v16 = vpop.f32.mrb[7].mxu0 }
 0x106   : > { %v3152_v17 = vadd.f32 %v3151_v16, %v3150_v1  ;;  %v3263_v30 = vpop.f32.mrb[7].mxu1 }
 0x107   : > { %v4418_v21 = vadd.f32 %v3261_v5, %v3149_v54  ;;  %v3264_v31 = vadd.f32 %v3263_v30, %v3262_v6  ;;  %1747 = vmatmul.mubr.bf16.gmra.mrb[112].mxu0 %v4274_v32  ;;  %v2274_v5 = vpack.c.bf16 %v3082_v4, %v3081_v3 }
 0x108   : > { %1908 = vmatmul.mubr.bf16.gmra.mrb[112].mxu1 %v4276_v33  ;;  %1754 = vmatprep.mubr.bf16.mxu0 %v4304_v13 }
 0x109   : > { %v4423_v42 = vadd.f32 %v3264_v31, %v3152_v17  ;;  %1915 = vmatprep.mubr.bf16.mxu1 %v4306_v14  ;;  %v2979_v31 = vld [vmem:[%s3957_s18 + $0x4a] sm:$0xff] }
 0x10a   : > { %v3153_v43 = vpop.f32.mrb[8].mxu0 }
 0x10b   : > { %v3265_v46 = vpop.f32.mrb[8].mxu1  ;;  %v3154_v47 = vpop.f32.mrb[9].mxu0 }
 0x10c   : > { %v3155_v56 = vadd.f32 %v3154_v47, %v3153_v43  ;;  %v3266_v60 = vpop.f32.mrb[9].mxu1  ;;  %v3156_v63 = vpop.f32.mrb[10].mxu0  ;;  %v2980_v43 = vld [vmem:[%s3957_s18 + $0x52] sm:$0xff]  ;;  %v2981_v47 = vld [vmem:[%s3957_s18 + $0x62] sm:$0xff] }
 0x10d   : > { %v3267_v0 = vadd.f32 %v3266_v60, %v3265_v46  ;;  %v3268_v32 = vpop.f32.mrb[10].mxu1  ;;  %v3157_v33 = vpop.f32.mrb[11].mxu0  ;;  %v3084_v46 = vld [vmem:[%s3957_s18 + $0x39] sm:$0xff] }
 0x10e   : > { %v3158_v8 = vadd.f32 %v3157_v33, %v3156_v63  ;;  %v3269_v12 = vpop.f32.mrb[11].mxu1  ;;  %v3085_v63 = vld [vmem:[%s3957_s18 + $0x49] sm:$0xff] }
 0x10f   : > { %v4430_v13 = vadd.f32 %v3267_v0, %v3155_v56  ;;  %v3270_v25 = vadd.f32 %v3269_v12, %v3268_v32  ;;  %1755 = vmatmul.mubr.bf16.gmra.mrb[116].mxu0 %v4290_v58  ;;  %v4442_v58 = vpack.c.bf16 %v2912_v29, %v2911_v28  ;;  %v2982_v56 = vld [vmem:[%s3957_s18 + $0x6a] sm:$0xff]  ;;  %v2275_v29 = vpack.c.bf16 %v3084_v46, %v3083_v44  ;;  %v3092_v46 = vld [vmem:[%s3957_s18 + $0x99] sm:$0xff] }
 0x110   : > { %1916 = vmatmul.mubr.bf16.gmra.mrb[116].mxu1 %v4292_v59  ;;  %1762 = vmatprep.mubr.bf16.mxu0 %v4316_v27  ;;  %v3086_v0 = vld [vmem:[%s3957_s18 + $0x51] sm:$0xff] }
 0x111   : > { %v4435_v26 = vadd.f32 %v3270_v25, %v3158_v8  ;;  %1923 = vmatprep.mubr.bf16.mxu1 %v4428_v7  ;;  %v705_v8 = vpack.c.bf16 %v2980_v43, %v2979_v31  ;;  %v2988_v31 = vld [vmem:[%s3957_s18 + $0xb2] sm:$0xff] }
 0x112   : > { %v3159_v57 = vpop.f32.mrb[12].mxu0  ;;  %v3091_v43 = vld [vmem:[%s3957_s18 + $0x91] sm:$0xff] }
 0x113   : > { %v3271_v9 = vpop.f32.mrb[12].mxu1  ;;  %v3160_v39 = vpop.f32.mrb[13].mxu0 }
 0x114   : > { %v3161_v61 = vadd.f32 %v3160_v39, %v3159_v57  ;;  %v3272_v62 = vpop.f32.mrb[13].mxu1  ;;  %v3162_v22 = vpop.f32.mrb[14].mxu0  ;;  %v706_v57 = vpack.c.bf16 %v2982_v56, %v2981_v47  ;;  %v2276_v39 = vpack.c.bf16 %v3086_v0, %v3085_v63  ;;  %v2989_v47 = vld [vmem:[%s3957_s18 + $0xc2] sm:$0xff]  ;;  %v2990_v56 = vld [vmem:[%s3957_s18 + $0xca] sm:$0xff] }
 0x115   : > { %v3273_v59 = vadd.f32 %v3272_v62, %v3271_v9  ;;  %v3274_v27 = vpop.f32.mrb[14].mxu1  ;;  %v3163_v41 = vpop.f32.mrb[15].mxu0  ;;  %v3093_v63 = vld [vmem:[%s3957_s18 + $0xa9] sm:$0xff]  ;;  %v3094_v0 = vld [vmem:[%s3957_s18 + $0xb1] sm:$0xff] }
 0x116   : > { %v3164_v11 = vadd.f32 %v3163_v41, %v3162_v22  ;;  %v3275_v35 = vpop.f32.mrb[15].mxu1  ;;  %v2984_v41 = vld [vmem:[%s3957_s18 + $0x82] sm:$0xff] }
 0x117   : > { %v4444_v23 = vadd.f32 %v3273_v59, %v3161_v61  ;;  %v3276_v24 = vadd.f32 %v3275_v35, %v3274_v27  ;;  %1763 = vmatmul.mubr.bf16.gmra.mrb[120].mxu0 %v4306_v14  ;;  %v2983_v27 = vld [vmem:[%s3957_s18 + $0x7a] sm:$0xff]  ;;  %v3088_v35 = vld [vmem:[%s3957_s18 + $0x69] sm:$0xff] }
 0x118   : > { %1924 = vmatmul.mubr.bf16.gmra.mrb[120].mxu1 %v4308_v15  ;;  %1770 = vmatprep.mubr.bf16.mxu0 %v4442_v58  ;;  %v623_v15 = vpack.c.bf16 %v2944_v48, %v2943_v36  ;;  %v2986_v36 = vld [vmem:[%s3957_s18 + $0x9a] sm:$0xff]  ;;  %v707_v4 = vpack.c.bf16 %v2984_v41, %v2983_v27 }
 0x119   : > { %v4450_v37 = vadd.f32 %v3276_v24, %v3164_v11  ;;  %1931 = vmatprep.mubr.bf16.mxu1 %v671_v10  ;;  %v3087_v10 = vld [vmem:[%s3957_s18 + $0x61] sm:$0xff]  ;;  %v2985_v24 = vld [vmem:[%s3957_s18 + $0x92] sm:$0xff] }
 0x11a   : > { %v3165_v2 = vpop.f32.mrb[16].mxu0  ;;  %v2991_v41 = vld [vmem:[%s3957_s18 + $0xda] sm:$0xff] }
 0x11b   : > { %v3277_v18 = vpop.f32.mrb[16].mxu1  ;;  %v3166_v20 = vpop.f32.mrb[17].mxu0 }
 0x11c   : > { %v3167_v38 = vadd.f32 %v3166_v20, %v3165_v2  ;;  %v3278_v40 = vpop.f32.mrb[17].mxu1  ;;  %v3168_v14 = vpop.f32.mrb[18].mxu0 }
 0x11d   : > { %v3279_v54 = vadd.f32 %v3278_v40, %v3277_v18  ;;  %v3280_v55 = vpop.f32.mrb[18].mxu1  ;;  %v3169_v1 = vpop.f32.mrb[19].mxu0  ;;  %v2277_v40 = vpack.c.bf16 %v3088_v35, %v3087_v10  ;;  %v2992_v10 = vld [vmem:[%s3957_s18 + $0xe2] sm:$0xff] }
 0x11e   : > { %v3170_v6 = vadd.f32 %v3169_v1, %v3168_v14  ;;  %v3281_v16 = vpop.f32.mrb[19].mxu1  ;;  %v708_v14 = vpack.c.bf16 %v2986_v36, %v2985_v24  ;;  %v3095_v35 = vld [vmem:[%s3957_s18 + $0xc1] sm:$0xff]  ;;  %v3096_v36 = vld [vmem:[%s3957_s18 + $0xc9] sm:$0xff] }
 0x11f   : > { %v4457_v17 = vadd.f32 %v3279_v54, %v3167_v38  ;;  %v3282_v30 = vadd.f32 %v3281_v16, %v3280_v55  ;;  %1771 = vmatmul.mubr.bf16.gmra.mrb[124].mxu0 %v4428_v7  ;;  %v2278_v55 = vpack.c.bf16 %v3090_v50, %v3089_v49  ;;  %v2994_v49 = vld [vmem:[%s3957_s18 + $0xfa] sm:$0xff] }
 0x120   : > { %1932 = vmatmul.mubr.bf16.gmra.mrb[124].mxu1 %v623_v15  ;;  %3637 = vmatprep.mubr.bf16.mxu0 %v704_v51 }
 0x121   : > { %v4463_v45 = vadd.f32 %v3282_v30, %v3170_v6  ;;  %3685 = vmatprep.mubr.bf16.mxu1 %v2274_v5  ;;  %v2987_v30 = vld [vmem:[%s3957_s18 + $0xaa] sm:$0xff] }
 0x122   : > { %v3171_v60 = vpop.f32.mrb[20].mxu0 }
 0x123   : > { %v3283_v32 = vpop.f32.mrb[20].mxu1  ;;  %v3172_v33 = vpop.f32.mrb[21].mxu0 }
 0x124   : > { %v3173_v12 = vadd.f32 %v3172_v33, %v3171_v60  ;;  %v3284_v25 = vpop.f32.mrb[21].mxu1  ;;  %v3174_v28 = vpop.f32.mrb[22].mxu0 }
 0x125   : > { %v3285_v52 = vadd.f32 %v3284_v25, %v3283_v32  ;;  %v3286_v53 = vpop.f32.mrb[22].mxu1  ;;  %v3175_v9 = vpop.f32.mrb[23].mxu0 }
 0x126   : > { %v3176_v61 = vadd.f32 %v3175_v9, %v3174_v28  ;;  %v3287_v62 = vpop.f32.mrb[23].mxu1 }
 0x127   : > { %v4470_v22 = vadd.f32 %v3285_v52, %v3173_v12  ;;  %v3288_v59 = vadd.f32 %v3287_v62, %v3286_v53  ;;  %3638 = vmatmul.mubr.bf16.vlgmr.msra.gmra.mrb[128].mxu0 %v705_v8  ;;  %v709_v8 = vpack.c.bf16 %v2988_v31, %v2987_v30 }
 0x128   : > { %3686 = vmatmul.mubr.bf16.vlgmr.msra.gmra.mrb[128].mxu1 %v2275_v29  ;;  %3641 = vmatprep.mubr.bf16.mxu0 %v706_v57  ;;  %v2279_v29 = vpack.c.bf16 %v3092_v46, %v3091_v43  ;;  %v710_v57 = vpack.c.bf16 %v2990_v56, %v2989_v47  ;;  %v2995_v46 = vld [vmem:[%s3957_s18 + $0x10a] sm:$0xff]  ;;  %v2996_v47 = vld [vmem:[%s3957_s18 + $0x112] sm:$0xff] }
 0x129   : > { %v4475_v11 = vadd.f32 %v3288_v59, %v3176_v61  ;;  %3689 = vmatprep.mubr.bf16.mxu1 %v2276_v39  ;;  %v2280_v39 = vpack.c.bf16 %v3094_v0, %v3093_v63  ;;  %v3099_v56 = vld [vmem:[%s3957_s18 + $0xf1] sm:$0xff]  ;;  %v3100_v63 = vld [vmem:[%s3957_s18 + $0xf9] sm:$0xff]  ;;  %v2997_v0 = vld [vmem:[%s3957_s18 + $0x122] sm:$0xff] }
 0x12a   : > { %v3177_v48 = vpop.f32.mrb[24].mxu0 }
 0x12b   : > { %v3289_v2 = vpop.f32.mrb[24].mxu1  ;;  %v3178_v3 = vpop.f32.mrb[25].mxu0 }
 0x12c   : > { %v3179_v18 = vadd.f32 %v3178_v3, %v3177_v48  ;;  %v3290_v20 = vpop.f32.mrb[25].mxu1  ;;  %v3180_v38 = vpop.f32.mrb[26].mxu0  ;;  %v2993_v48 = vld [vmem:[%s3957_s18 + $0xf2] sm:$0xff]  ;;  %v3098_v3 = vld [vmem:[%s3957_s18 + $0xe1] sm:$0xff] }
 0x12d   : > { %v3291_v15 = vadd.f32 %v3290_v20, %v3289_v2  ;;  %v3292_v51 = vpop.f32.mrb[26].mxu1  ;;  %v3181_v54 = vpop.f32.mrb[27].mxu0  ;;  %v3097_v2 = vld [vmem:[%s3957_s18 + $0xd9] sm:$0xff]  ;;  %v711_v20 = vpack.c.bf16 %v2992_v10, %v2991_v41 }
 0x12e   : > { %v3182_v1 = vadd.f32 %v3181_v54, %v3180_v38  ;;  %v3293_v5 = vpop.f32.mrb[27].mxu1 }
 0x12f   : > { %v4482_v6 = vadd.f32 %v3291_v15, %v3179_v18  ;;  %v3294_v16 = vadd.f32 %v3293_v5, %v3292_v51  ;;  %3642 = vmatmul.mubr.bf16.gmra.mrb[132].mxu0 %v707_v4  ;;  %v2281_v15 = vpack.c.bf16 %v3096_v36, %v3095_v35  ;;  %v712_v51 = vpack.c.bf16 %v2994_v49, %v2993_v48  ;;  %v2999_v49 = vld [vmem:[%s3957_s18 + $0x13a] sm:$0xff] }
 0x130   : > { %3690 = vmatmul.mubr.bf16.gmra.mrb[132].mxu1 %v2277_v40  ;;  %3645 = vmatprep.mubr.bf16.mxu0 %v708_v14  ;;  %v2282_v5 = vpack.c.bf16 %v3098_v3, %v3097_v2  ;;  %v3103_v2 = vld [vmem:[%s3957_s18 + $0x121] sm:$0xff] }
 0x131   : > { %v4487_v44 = vadd.f32 %v3294_v16, %v3182_v1  ;;  %3693 = vmatprep.mubr.bf16.mxu1 %v2278_v55 }
 0x132   : > { %v3183_v60 = vpop.f32.mrb[28].mxu0 }
 0x133   : > { %v3295_v32 = vpop.f32.mrb[28].mxu1  ;;  %v3184_v33 = vpop.f32.mrb[29].mxu0 }
 0x134   : > { %v3185_v12 = vadd.f32 %v3184_v33, %v3183_v60  ;;  %v3296_v25 = vpop.f32.mrb[29].mxu1  ;;  %v3186_v28 = vpop.f32.mrb[30].mxu0 }
 0x135   : > { %v3297_v52 = vadd.f32 %v3296_v25, %v3295_v32  ;;  %v3298_v53 = vpop.f32.mrb[30].mxu1  ;;  %v3187_v9 = vpop.f32.mrb[31].mxu0  ;;  %v2998_v32 = vld [vmem:[%s3957_s18 + $0x12a] sm:$0xff] }
 0x136   : > { %v3188_v61 = vadd.f32 %v3187_v9, %v3186_v28  ;;  %v3299_v62 = vpop.f32.mrb[31].mxu1  ;;  %v2283_v9 = vpack.c.bf16 %v3100_v63, %v3099_v56 }
 0x137   : > { %v4494_v59 = vadd.f32 %v3297_v52, %v3185_v12  ;;  %v3300_v27 = vadd.f32 %v3299_v62, %v3298_v53  ;;  %3646 = vmatmul.mubr.bf16.gmra.mrb[136].mxu0 %v709_v8  ;;  %v3101_v8 = vld [vmem:[%s3957_s18 + $0x109] sm:$0xff]  ;;  %v3102_v12 = vld [vmem:[%s3957_s18 + $0x111] sm:$0xff] }
 0x138   : > { %3694 = vmatmul.mubr.bf16.gmra.mrb[136].mxu1 %v2279_v29  ;;  %3649 = vmatprep.mubr.bf16.mxu0 %v710_v57  ;;  %v713_v29 = vpack.c.bf16 %v2996_v47, %v2995_v46  ;;  %v2284_v41 = vpack.c.bf16 %v3102_v12, %v3101_v8  ;;  %v3003_v8 = vld [vmem:[%s3957_s18 + $0x16a] sm:$0xff]  ;;  %v3004_v12 = vld [vmem:[%s3957_s18 + $0x172] sm:$0xff] }
 0x139   : > { %v4499_v24 = vadd.f32 %v3300_v27, %v3188_v61  ;;  %3697 = vmatprep.mubr.bf16.mxu1 %v2280_v39  ;;  %v714_v39 = vpack.c.bf16 %v2998_v32, %v2997_v0 }
 0x13a   : > { %v3189_v50 = vpop.f32.mrb[32].mxu0 }
 0x13b   : > { %v3301_v4 = vpop.f32.mrb[32].mxu1  ;;  %v3190_v18 = vpop.f32.mrb[33].mxu0 }
 0x13c   : > { %v3191_v38 = vadd.f32 %v3190_v18, %v3189_v50  ;;  %v3302_v40 = vpop.f32.mrb[33].mxu1  ;;  %v3192_v14 = vpop.f32.mrb[34].mxu0  ;;  %v3000_v50 = vld [vmem:[%s3957_s18 + $0x142] sm:$0xff]  ;;  %v3001_v18 = vld [vmem:[%s3957_s18 + $0x152] sm:$0xff] }
 0x13d   : > { %v3303_v54 = vadd.f32 %v3302_v40, %v3301_v4  ;;  %v3304_v55 = vpop.f32.mrb[34].mxu1  ;;  %v3193_v1 = vpop.f32.mrb[35].mxu0  ;;  %v3104_v4 = vld [vmem:[%s3957_s18 + $0x129] sm:$0xff]  ;;  %v3105_v40 = vld [vmem:[%s3957_s18 + $0x139] sm:$0xff] }
 0x13e   : > { %v3194_v16 = vadd.f32 %v3193_v1, %v3192_v14  ;;  %v3305_v30 = vpop.f32.mrb[35].mxu1  ;;  %v3106_v14 = vld [vmem:[%s3957_s18 + $0x141] sm:$0xff] }
 0x13f   : > { %v4506_v31 = vadd.f32 %v3303_v54, %v3191_v38  ;;  %v3306_v43 = vadd.f32 %v3305_v30, %v3304_v55  ;;  %3650 = vmatmul.mubr.bf16.gmra.mrb[140].mxu0 %v711_v20  ;;  %v3002_v20 = vld [vmem:[%s3957_s18 + $0x15a] sm:$0xff]  ;;  %v715_v54 = vpack.c.bf16 %v3000_v50, %v2999_v49  ;;  %v2286_v56 = vpack.c.bf16 %v3106_v14, %v3105_v40  ;;  %v3008_v40 = vld [vmem:[%s3957_s18 + $0x1a2] sm:$0xff] }
 0x140   : > { %3698 = vmatmul.mubr.bf16.gmra.mrb[140].mxu1 %v2281_v15  ;;  %3653 = vmatprep.mubr.bf16.mxu0 %v712_v51  ;;  %v716_v30 = vpack.c.bf16 %v3002_v20, %v3001_v18 }
 0x141   : > { %v4511_v60 = vadd.f32 %v3306_v43, %v3194_v16  ;;  %3701 = vmatprep.mubr.bf16.mxu1 %v2282_v5  ;;  %v2285_v16 = vpack.c.bf16 %v3104_v4, %v3103_v2 }
 0x142   : > { %v3195_v33 = vpop.f32.mrb[36].mxu0 }
 0x143   : > { %v3307_v25 = vpop.f32.mrb[36].mxu1  ;;  %v3196_v28 = vpop.f32.mrb[37].mxu0 }
 0x144   : > { %v3197_v57 = vadd.f32 %v3196_v28, %v3195_v33  ;;  %v3308_v52 = vpop.f32.mrb[37].mxu1  ;;  %v3198_v53 = vpop.f32.mrb[38].mxu0  ;;  %v3107_v28 = vld [vmem:[%s3957_s18 + $0x151] sm:$0xff] }
 0x145   : > { %v3309_v61 = vadd.f32 %v3308_v52, %v3307_v25  ;;  %v3310_v62 = vpop.f32.mrb[38].mxu1  ;;  %v3199_v27 = vpop.f32.mrb[39].mxu0  ;;  %v3109_v52 = vld [vmem:[%s3957_s18 + $0x169] sm:$0xff] }
 0x146   : > { %v3200_v10 = vadd.f32 %v3199_v27, %v3198_v53  ;;  %v3311_v35 = vpop.f32.mrb[39].mxu1  ;;  %v3110_v53 = vld [vmem:[%s3957_s18 + $0x171] sm:$0xff] }
 0x147   : > { %v4518_v36 = vadd.f32 %v3309_v61, %v3197_v57  ;;  %v3312_v48 = vadd.f32 %v3311_v35, %v3310_v62  ;;  %3654 = vmatmul.mubr.bf16.gmra.mrb[144].mxu0 %v713_v29  ;;  %v3108_v29 = vld [vmem:[%s3957_s18 + $0x159] sm:$0xff]  ;;  %v717_v61 = vpack.c.bf16 %v3004_v12, %v3003_v8  ;;  %v2288_v50 = vpack.c.bf16 %v3110_v53, %v3109_v52 }
 0x148   : > { %3702 = vmatmul.mubr.bf16.gmra.mrb[144].mxu1 %v2283_v9  ;;  %3657 = vmatprep.mubr.bf16.mxu0 %v714_v39 }
 0x149   : > { %v4523_v3 = vadd.f32 %v3312_v48, %v3200_v10  ;;  %3705 = vmatprep.mubr.bf16.mxu1 %v2284_v41  ;;  %v2287_v10 = vpack.c.bf16 %v3108_v29, %v3107_v28 }
 0x14a   : > { %v3201_v38 = vpop.f32.mrb[40].mxu0 }
 0x14b   : > { %v3313_v15 = vpop.f32.mrb[40].mxu1  ;;  %v3202_v51 = vpop.f32.mrb[41].mxu0 }
 0x14c   : > { %v3203_v55 = vadd.f32 %v3202_v51, %v3201_v38  ;;  %v3314_v1 = vpop.f32.mrb[41].mxu1  ;;  %v3204_v5 = vpop.f32.mrb[42].mxu0  ;;  %v3007_v38 = vld [vmem:[%s3957_s18 + $0x19a] sm:$0xff]  ;;  %s3123_s18 = sshll.u32 %s4785_s22, 8 }
 0x14d   : > { %v3315_v43 = vadd.f32 %v3314_v1, %v3313_v15  ;;  %v3316_v46 = vpop.f32.mrb[42].mxu1  ;;  %v3205_v47 = vpop.f32.mrb[43].mxu0  ;;  %s4662_s15 = scalar_lea.vmem %s4782_s5, %s3123_s18  ;;  %s4667_s19 = scalar_lea.vmem %s4780_s3, %s3123_s18 }
 0x14e   : > { %v3206_v63 = vadd.f32 %v3205_v47, %v3204_v5  ;;  %v3317_v0 = vpop.f32.mrb[43].mxu1 }
 0x14f   : > { %v4530_v32 = vadd.f32 %v3315_v43, %v3203_v55  ;;  %v3318_v33 = vadd.f32 %v3317_v0, %v3316_v46  ;;  %3658 = vmatmul.mubr.bf16.gmra.mrb[148].mxu0 %v715_v54  ;;  %v719_v55 = vpack.c.bf16 %v3008_v40, %v3007_v38 }
 0x150   : > { %3706 = vmatmul.mubr.bf16.gmra.mrb[148].mxu1 %v2285_v16  ;;  %3661 = vmatprep.mubr.bf16.mxu0 %v716_v30 }
 0x151   : > { %v4534_v25 = vadd.f32 %v3318_v33, %v3206_v63  ;;  %3709 = vmatprep.mubr.bf16.mxu1 %v2286_v56 }
 0x152   : > { %v3207_v57 = vpop.f32.mrb[44].mxu0 }
 0x153   : > { %v3319_v9 = vpop.f32.mrb[44].mxu1  ;;  %v3208_v39 = vpop.f32.mrb[45].mxu0 }
 0x154   : > { %v3209_v62 = vadd.f32 %v3208_v39, %v3207_v57  ;;  %v3320_v27 = vpop.f32.mrb[45].mxu1  ;;  %v3210_v41 = vpop.f32.mrb[46].mxu0 }
 0x155   : > { %v3321_v35 = vadd.f32 %v3320_v27, %v3319_v9  ;;  %v3322_v48 = vpop.f32.mrb[46].mxu1  ;;  %v3211_v49 = vpop.f32.mrb[47].mxu0 }
 0x156   : > { %v3212_v2 = vadd.f32 %v3211_v49, %v3210_v41  ;;  %v3323_v4 = vpop.f32.mrb[47].mxu1 }
 0x157   : > { %v4540_v18 = vadd.f32 %v3321_v35, %v3209_v62  ;;  %v3324_v20 = vadd.f32 %v3323_v4, %v3322_v48  ;;  %3662 = vmatmul.mubr.bf16.gmra.mrb[152].mxu0 %v717_v61 }
 0x158   : > { %3710 = vmatmul.mubr.bf16.gmra.mrb[152].mxu1 %v2287_v10  ;;  %3665 = vmatprep.mubr.bf16.mxu0 %v4442_v58 }
 0x159   : > { %v4545_v14 = vadd.f32 %v3324_v20, %v3212_v2  ;;  %3713 = vmatprep.mubr.bf16.mxu1 %v2288_v50 }
 0x15a   : > { %v3213_v15 = vpop.f32.mrb[48].mxu0 }
 0x15b   : > { %v3325_v51 = vpop.f32.mrb[48].mxu1  ;;  %v3214_v54 = vpop.f32.mrb[49].mxu0 }
 0x15c   : > { %v3215_v1 = vadd.f32 %v3214_v54, %v3213_v15  ;;  %v3326_v5 = vpop.f32.mrb[49].mxu1  ;;  %v3216_v16 = vpop.f32.mrb[50].mxu0 }
 0x15d   : > { %v3327_v30 = vadd.f32 %v3326_v5, %v3325_v51  ;;  %v3328_v43 = vpop.f32.mrb[50].mxu1  ;;  %v3217_v46 = vpop.f32.mrb[51].mxu0 }
 0x15e   : > { %v3218_v47 = vadd.f32 %v3217_v46, %v3216_v16  ;;  %v3329_v56 = vpop.f32.mrb[51].mxu1 }
 0x15f   : > { %v4547_v63 = vadd.f32 %v3327_v30, %v3215_v1  ;;  %v3330_v58 = vadd.f32 %v3329_v56, %v3328_v43  ;;  %3666 = vmatmul.mubr.bf16.gmra.mrb[156].mxu0 %v719_v55 }
 0x160   : > { %3714 = vmatmul.mubr.bf16.gmra.mrb[156].mxu1 %v4428_v7 }
 0x161   : > { %v4550_v0 = vadd.f32 %v3330_v58, %v3218_v47 }
 0x162   : > { %v3219_v33 = vpop.f32.mrb[52].mxu0 }
 0x163   : > { %v3331_v8 = vpop.f32.mrb[52].mxu1  ;;  %v3220_v12 = vpop.f32.mrb[53].mxu0 }
 0x164   : > { %v3221_v28 = vadd.f32 %v3220_v12, %v3219_v33  ;;  %v3332_v29 = vpop.f32.mrb[53].mxu1  ;;  %v3222_v57 = vpop.f32.mrb[54].mxu0 }
 0x165   : > { %v3333_v52 = vadd.f32 %v3332_v29, %v3331_v8  ;;  %v3334_v53 = vpop.f32.mrb[54].mxu1  ;;  %v3223_v9 = vpop.f32.mrb[55].mxu0 }
 0x166   : > { %v3224_v39 = vadd.f32 %v3223_v9, %v3222_v57  ;;  %v3335_v61 = vpop.f32.mrb[55].mxu1 }
 0x167   : > { %v4552_v62 = vadd.f32 %v3333_v52, %v3221_v28  ;;  %v3336_v27 = vadd.f32 %v3335_v61, %v3334_v53 }
 0x169   : > { %v4554_v41 = vadd.f32 %v3336_v27, %v3224_v39 }
 0x16a   : > { %v3225_v10 = vpop.f32.mrb[56].mxu0 }
 0x16b   : > { %v3337_v7 = vpop.f32.mrb[56].mxu1  ;;  %v3226_v35 = vpop.f32.mrb[57].mxu0 }
 0x16c   : > { %v3227_v48 = vadd.f32 %v3226_v35, %v3225_v10  ;;  %v3338_v49 = vpop.f32.mrb[57].mxu1  ;;  %v3228_v50 = vpop.f32.mrb[58].mxu0 }
 0x16d   : > { %v3339_v2 = vadd.f32 %v3338_v49, %v3337_v7  ;;  %v3340_v4 = vpop.f32.mrb[58].mxu1  ;;  %v3229_v20 = vpop.f32.mrb[59].mxu0 }
 0x16e   : > { %v3230_v38 = vadd.f32 %v3229_v20, %v3228_v50  ;;  %v3341_v40 = vpop.f32.mrb[59].mxu1 }
 0x16f   : > { %v4556_v15 = vadd.f32 %v3339_v2, %v3227_v48  ;;  %v3342_v51 = vadd.f32 %v3341_v40, %v3340_v4 }
 0x171   : > { %v4558_v54 = vadd.f32 %v3342_v51, %v3230_v38 }
 0x172   : > { %v3231_v55 = vpop.f32.mrb[60].mxu0 }
 0x173   : > { %v3343_v1 = vpop.f32.mrb[60].mxu1  ;;  %v3232_v5 = vpop.f32.mrb[61].mxu0 }
 0x174   : > { %v3233_v16 = vadd.f32 %v3232_v5, %v3231_v55  ;;  %v3344_v30 = vpop.f32.mrb[61].mxu1  ;;  %v3234_v43 = vpop.f32.mrb[62].mxu0 }
 0x175   : > { %v3345_v46 = vadd.f32 %v3344_v30, %v3343_v1  ;;  %v3346_v47 = vpop.f32.mrb[62].mxu1  ;;  %v3235_v56 = vpop.f32.mrb[63].mxu0 }
 0x176   : > { %v3236_v58 = vadd.f32 %v3235_v56, %v3234_v43  ;;  %v3347_v33 = vpop.f32.mrb[63].mxu1 }
 0x177   : > { %v4560_v8 = vadd.f32 %v3345_v46, %v3233_v16  ;;  %v3348_v12 = vadd.f32 %v3347_v33, %v3346_v47 }
 0x179   : > { %v4562_v28 = vadd.f32 %v3348_v12, %v3236_v58 }
 0x17a   : > { %v3365_v29 = vpop.f32.mrb[64].mxu0 }
 0x17b   : > { %v3477_v57 = vpop.f32.mrb[64].mxu1  ;;  %v3366_v52 = vpop.f32.mrb[65].mxu0 }
 0x17c   : > { %v3367_v53 = vadd.f32 %v3366_v52, %v3365_v29  ;;  %v3478_v9 = vpop.f32.mrb[65].mxu1  ;;  %v3368_v39 = vpop.f32.mrb[66].mxu0 }
 0x17d   : > { %v3479_v61 = vadd.f32 %v3478_v9, %v3477_v57  ;;  %v3480_v27 = vpop.f32.mrb[66].mxu1  ;;  %v3369_v10 = vpop.f32.mrb[67].mxu0 }
 0x17e   : > { %v1653_v7 = vadd.f32 %v3367_v53, %v4410_v19  ;;  %v3370_v35 = vadd.f32 %v3369_v10, %v3368_v39  ;;  %v3481_v48 = vpop.f32.mrb[67].mxu1 }
 0x17f   : > { %v3482_v49 = vadd.f32 %v3481_v48, %v3480_v27 }
 0x180   : > { %v1656_v50 = vadd.f32 %v3370_v35, %v4415_v34  ;;  %v4566_v2 = vadd.f32 %v3479_v61, %v1653_v7 }
 0x182   : > { %v3371_v4 = vpop.f32.mrb[68].mxu0  ;;  %v4568_v20 = vadd.f32 %v3482_v49, %v1656_v50 }
 0x183   : > { %v3483_v38 = vpop.f32.mrb[68].mxu1  ;;  %v3372_v40 = vpop.f32.mrb[69].mxu0 }
 0x184   : > { %v3373_v51 = vadd.f32 %v3372_v40, %v3371_v4  ;;  %v3484_v55 = vpop.f32.mrb[69].mxu1  ;;  %v3374_v1 = vpop.f32.mrb[70].mxu0 }
 0x185   : > { %v3485_v5 = vadd.f32 %v3484_v55, %v3483_v38  ;;  %v3486_v16 = vpop.f32.mrb[70].mxu1  ;;  %v3375_v30 = vpop.f32.mrb[71].mxu0 }
 0x186   : > { %v1661_v19 = vadd.f32 %v3373_v51, %v4418_v21  ;;  %v3376_v43 = vadd.f32 %v3375_v30, %v3374_v1  ;;  %v3487_v46 = vpop.f32.mrb[71].mxu1 }
 0x187   : > { %v3488_v47 = vadd.f32 %v3487_v46, %v3486_v16 }
 0x188   : > { %v1664_v34 = vadd.f32 %v3376_v43, %v4423_v42  ;;  %v4572_v56 = vadd.f32 %v3485_v5, %v1661_v19 }
 0x18a   : > { %v3377_v58 = vpop.f32.mrb[72].mxu0  ;;  %v4574_v33 = vadd.f32 %v3488_v47, %v1664_v34 }
 0x18b   : > { %v3489_v12 = vpop.f32.mrb[72].mxu1  ;;  %v3378_v29 = vpop.f32.mrb[73].mxu0 }
 0x18c   : > { %v3379_v57 = vadd.f32 %v3378_v29, %v3377_v58  ;;  %v3490_v52 = vpop.f32.mrb[73].mxu1  ;;  %v3380_v53 = vpop.f32.mrb[74].mxu0 }
 0x18d   : > { %v3491_v9 = vadd.f32 %v3490_v52, %v3489_v12  ;;  %v3492_v39 = vpop.f32.mrb[74].mxu1  ;;  %v3381_v61 = vpop.f32.mrb[75].mxu0 }
 0x18e   : > { %v1669_v21 = vadd.f32 %v3379_v57, %v4430_v13  ;;  %v3382_v27 = vadd.f32 %v3381_v61, %v3380_v53  ;;  %v3493_v10 = vpop.f32.mrb[75].mxu1 }
 0x18f   : > { %v3494_v7 = vadd.f32 %v3493_v10, %v3492_v39 }
 0x190   : > { %v1672_v42 = vadd.f32 %v3382_v27, %v4435_v26  ;;  %v4578_v35 = vadd.f32 %v3491_v9, %v1669_v21 }
 0x192   : > { %v3383_v48 = vpop.f32.mrb[76].mxu0  ;;  %v4580_v49 = vadd.f32 %v3494_v7, %v1672_v42 }
 0x193   : > { %v3495_v50 = vpop.f32.mrb[76].mxu1  ;;  %v3384_v4 = vpop.f32.mrb[77].mxu0 }
 0x194   : > { %v3385_v38 = vadd.f32 %v3384_v4, %v3383_v48  ;;  %v3496_v40 = vpop.f32.mrb[77].mxu1  ;;  %v3386_v51 = vpop.f32.mrb[78].mxu0 }
 0x195   : > { %v3497_v55 = vadd.f32 %v3496_v40, %v3495_v50  ;;  %v3498_v1 = vpop.f32.mrb[78].mxu1  ;;  %v3387_v5 = vpop.f32.mrb[79].mxu0 }
 0x196   : > { %v1677_v13 = vadd.f32 %v3385_v38, %v4444_v23  ;;  %v3388_v16 = vadd.f32 %v3387_v5, %v3386_v51  ;;  %v3499_v30 = vpop.f32.mrb[79].mxu1 }
 0x197   : > { %v3500_v19 = vadd.f32 %v3499_v30, %v3498_v1 }
 0x198   : > { %v1680_v26 = vadd.f32 %v3388_v16, %v4450_v37  ;;  %v4584_v43 = vadd.f32 %v3497_v55, %v1677_v13 }
 0x19a   : > { %v3389_v46 = vpop.f32.mrb[80].mxu0  ;;  %v4586_v47 = vadd.f32 %v3500_v19, %v1680_v26 }
 0x19b   : > { %v3501_v34 = vpop.f32.mrb[80].mxu1  ;;  %v3390_v58 = vpop.f32.mrb[81].mxu0 }
 0x19c   : > { %v3391_v12 = vadd.f32 %v3390_v58, %v3389_v46  ;;  %v3502_v29 = vpop.f32.mrb[81].mxu1  ;;  %v3392_v57 = vpop.f32.mrb[82].mxu0 }
 0x19d   : > { %v3503_v52 = vadd.f32 %v3502_v29, %v3501_v34  ;;  %v3504_v53 = vpop.f32.mrb[82].mxu1  ;;  %v3393_v9 = vpop.f32.mrb[83].mxu0 }
 0x19e   : > { %v1685_v23 = vadd.f32 %v3391_v12, %v4457_v17  ;;  %v3394_v39 = vadd.f32 %v3393_v9, %v3392_v57  ;;  %v3505_v61 = vpop.f32.mrb[83].mxu1 }
 0x19f   : > { %v3506_v21 = vadd.f32 %v3505_v61, %v3504_v53 }
 0x1a0   : > { %v1688_v37 = vadd.f32 %v3394_v39, %v4463_v45  ;;  %v4590_v27 = vadd.f32 %v3503_v52, %v1685_v23 }
 0x1a2   : > { %v3395_v10 = vpop.f32.mrb[84].mxu0  ;;  %v4592_v7 = vadd.f32 %v3506_v21, %v1688_v37 }
 0x1a3   : > { %v3507_v42 = vpop.f32.mrb[84].mxu1  ;;  %v3396_v48 = vpop.f32.mrb[85].mxu0 }
 0x1a4   : > { %v3397_v50 = vadd.f32 %v3396_v48, %v3395_v10  ;;  %v3508_v4 = vpop.f32.mrb[85].mxu1  ;;  %v3398_v38 = vpop.f32.mrb[86].mxu0 }
 0x1a5   : > { %v3509_v40 = vadd.f32 %v3508_v4, %v3507_v42  ;;  %v3510_v51 = vpop.f32.mrb[86].mxu1  ;;  %v3399_v55 = vpop.f32.mrb[87].mxu0 }
 0x1a6   : > { %v1693_v17 = vadd.f32 %v3397_v50, %v4470_v22  ;;  %v3400_v1 = vadd.f32 %v3399_v55, %v3398_v38  ;;  %v3511_v5 = vpop.f32.mrb[87].mxu1 }
 0x1a7   : > { %v3512_v13 = vadd.f32 %v3511_v5, %v3510_v51 }
 0x1a8   : > { %v1696_v45 = vadd.f32 %v3400_v1, %v4475_v11  ;;  %v4596_v16 = vadd.f32 %v3509_v40, %v1693_v17 }
 0x1aa   : > { %v3401_v30 = vpop.f32.mrb[88].mxu0  ;;  %v4598_v19 = vadd.f32 %v3512_v13, %v1696_v45 }
 0x1ab   : > { %v3513_v26 = vpop.f32.mrb[88].mxu1  ;;  %v3402_v46 = vpop.f32.mrb[89].mxu0 }
 0x1ac   : > { %v3403_v34 = vadd.f32 %v3402_v46, %v3401_v30  ;;  %v3514_v58 = vpop.f32.mrb[89].mxu1  ;;  %v3404_v12 = vpop.f32.mrb[90].mxu0 }
 0x1ad   : > { %v3515_v29 = vadd.f32 %v3514_v58, %v3513_v26  ;;  %v3516_v57 = vpop.f32.mrb[90].mxu1  ;;  %v3405_v52 = vpop.f32.mrb[91].mxu0 }
 0x1ae   : > { %v1701_v22 = vadd.f32 %v3403_v34, %v4482_v6  ;;  %v3406_v53 = vadd.f32 %v3405_v52, %v3404_v12  ;;  %v3517_v9 = vpop.f32.mrb[91].mxu1 }
 0x1af   : > { %v3518_v23 = vadd.f32 %v3517_v9, %v3516_v57 }
 0x1b0   : > { %v1704_v11 = vadd.f32 %v3406_v53, %v4487_v44  ;;  %v4602_v39 = vadd.f32 %v3515_v29, %v1701_v22 }
 0x1b2   : > { %v3407_v61 = vpop.f32.mrb[92].mxu0  ;;  %v4604_v21 = vadd.f32 %v3518_v23, %v1704_v11 }
 0x1b3   : > { %v3519_v37 = vpop.f32.mrb[92].mxu1  ;;  %v3408_v10 = vpop.f32.mrb[93].mxu0 }
 0x1b4   : > { %v3409_v42 = vadd.f32 %v3408_v10, %v3407_v61  ;;  %v3520_v48 = vpop.f32.mrb[93].mxu1  ;;  %v3410_v50 = vpop.f32.mrb[94].mxu0 }
 0x1b5   : > { %v3521_v4 = vadd.f32 %v3520_v48, %v3519_v37  ;;  %v3522_v38 = vpop.f32.mrb[94].mxu1  ;;  %v3411_v40 = vpop.f32.mrb[95].mxu0 }
 0x1b6   : > { %v1709_v6 = vadd.f32 %v3409_v42, %v4494_v59  ;;  %v3412_v51 = vadd.f32 %v3411_v40, %v3410_v50  ;;  %v3523_v55 = vpop.f32.mrb[95].mxu1 }
 0x1b7   : > { %v3524_v17 = vadd.f32 %v3523_v55, %v3522_v38 }
 0x1b8   : > { %v1712_v44 = vadd.f32 %v3412_v51, %v4499_v24  ;;  %v4608_v1 = vadd.f32 %v3521_v4, %v1709_v6 }
 0x1ba   : > { %v3413_v5 = vpop.f32.mrb[96].mxu0  ;;  %v4610_v13 = vadd.f32 %v3524_v17, %v1712_v44 }
 0x1bb   : > { %v3525_v45 = vpop.f32.mrb[96].mxu1  ;;  %v3414_v30 = vpop.f32.mrb[97].mxu0 }
 0x1bc   : > { %v3415_v26 = vadd.f32 %v3414_v30, %v3413_v5  ;;  %v3526_v46 = vpop.f32.mrb[97].mxu1  ;;  %v3416_v34 = vpop.f32.mrb[98].mxu0 }
 0x1bd   : > { %v3527_v58 = vadd.f32 %v3526_v46, %v3525_v45  ;;  %v3528_v12 = vpop.f32.mrb[98].mxu1  ;;  %v3417_v29 = vpop.f32.mrb[99].mxu0 }
 0x1be   : > { %v1717_v59 = vadd.f32 %v3415_v26, %v4506_v31  ;;  %v3418_v57 = vadd.f32 %v3417_v29, %v3416_v34  ;;  %v3529_v52 = vpop.f32.mrb[99].mxu1 }
 0x1bf   : > { %v3530_v22 = vadd.f32 %v3529_v52, %v3528_v12 }
 0x1c0   : > { %v1720_v24 = vadd.f32 %v3418_v57, %v4511_v60  ;;  %v4614_v53 = vadd.f32 %v3527_v58, %v1717_v59 }
 0x1c2   : > { %v3419_v9 = vpop.f32.mrb[100].mxu0  ;;  %v4616_v23 = vadd.f32 %v3530_v22, %v1720_v24 }
 0x1c3   : > { %v3531_v11 = vpop.f32.mrb[100].mxu1  ;;  %v3420_v61 = vpop.f32.mrb[101].mxu0 }
 0x1c4   : > { %v3421_v37 = vadd.f32 %v3420_v61, %v3419_v9  ;;  %v3532_v10 = vpop.f32.mrb[101].mxu1  ;;  %v3422_v42 = vpop.f32.mrb[102].mxu0 }
 0x1c5   : > { %v3533_v48 = vadd.f32 %v3532_v10, %v3531_v11  ;;  %v3534_v50 = vpop.f32.mrb[102].mxu1  ;;  %v3423_v4 = vpop.f32.mrb[103].mxu0 }
 0x1c6   : > { %v1725_v31 = vadd.f32 %v3421_v37, %v4518_v36  ;;  %v3424_v38 = vadd.f32 %v3423_v4, %v3422_v42  ;;  %v3535_v40 = vpop.f32.mrb[103].mxu1 }
 0x1c7   : > { %v3536_v6 = vadd.f32 %v3535_v40, %v3534_v50 }
 0x1c8   : > { %v1728_v60 = vadd.f32 %v3424_v38, %v4523_v3  ;;  %v4620_v51 = vadd.f32 %v3533_v48, %v1725_v31 }
 0x1ca   : > { %v3425_v55 = vpop.f32.mrb[104].mxu0  ;;  %v4622_v17 = vadd.f32 %v3536_v6, %v1728_v60 }
 0x1cb   : > { %v3537_v44 = vpop.f32.mrb[104].mxu1  ;;  %v3426_v5 = vpop.f32.mrb[105].mxu0 }
 0x1cc   : > { %v3427_v45 = vadd.f32 %v3426_v5, %v3425_v55  ;;  %v3538_v30 = vpop.f32.mrb[105].mxu1  ;;  %v3428_v26 = vpop.f32.mrb[106].mxu0 }
 0x1cd   : > { %v3539_v46 = vadd.f32 %v3538_v30, %v3537_v44  ;;  %v3540_v34 = vpop.f32.mrb[106].mxu1  ;;  %v3429_v58 = vpop.f32.mrb[107].mxu0 }
 0x1ce   : > { %v1733_v36 = vadd.f32 %v3427_v45, %v4530_v32  ;;  %v3430_v12 = vadd.f32 %v3429_v58, %v3428_v26  ;;  %v3541_v29 = vpop.f32.mrb[107].mxu1 }
 0x1cf   : > { %v3542_v59 = vadd.f32 %v3541_v29, %v3540_v34 }
 0x1d0   : > { %v1736_v3 = vadd.f32 %v3430_v12, %v4534_v25  ;;  %v4626_v57 = vadd.f32 %v3539_v46, %v1733_v36 }
 0x1d2   : > { %v3431_v52 = vpop.f32.mrb[108].mxu0  ;;  %v4628_v22 = vadd.f32 %v3542_v59, %v1736_v3 }
 0x1d3   : > { %v3543_v24 = vpop.f32.mrb[108].mxu1  ;;  %v3432_v9 = vpop.f32.mrb[109].mxu0 }
 0x1d4   : > { %v3433_v11 = vadd.f32 %v3432_v9, %v3431_v52  ;;  %v3544_v61 = vpop.f32.mrb[109].mxu1  ;;  %v3434_v37 = vpop.f32.mrb[110].mxu0 }
 0x1d5   : > { %v3545_v10 = vadd.f32 %v3544_v61, %v3543_v24  ;;  %v3546_v42 = vpop.f32.mrb[110].mxu1  ;;  %v3435_v48 = vpop.f32.mrb[111].mxu0 }
 0x1d6   : > { %v1741_v32 = vadd.f32 %v3433_v11, %v4540_v18  ;;  %v3436_v50 = vadd.f32 %v3435_v48, %v3434_v37  ;;  %v3547_v4 = vpop.f32.mrb[111].mxu1 }
 0x1d7   : > { %v3548_v31 = vadd.f32 %v3547_v4, %v3546_v42 }
 0x1d8   : > { %v1744_v25 = vadd.f32 %v3436_v50, %v4545_v14  ;;  %v4632_v38 = vadd.f32 %v3545_v10, %v1741_v32 }
 0x1da   : > { %v3437_v40 = vpop.f32.mrb[112].mxu0  ;;  %v4634_v6 = vadd.f32 %v3548_v31, %v1744_v25 }
 0x1db   : > { %v3549_v60 = vpop.f32.mrb[112].mxu1  ;;  %v3438_v55 = vpop.f32.mrb[113].mxu0 }
 0x1dc   : > { %v3439_v44 = vadd.f32 %v3438_v55, %v3437_v40  ;;  %v3550_v5 = vpop.f32.mrb[113].mxu1  ;;  %v3440_v45 = vpop.f32.mrb[114].mxu0 }
 0x1dd   : > { %v3551_v30 = vadd.f32 %v3550_v5, %v3549_v60  ;;  %v3552_v26 = vpop.f32.mrb[114].mxu1  ;;  %v3441_v46 = vpop.f32.mrb[115].mxu0 }
 0x1de   : > { %v1749_v18 = vadd.f32 %v3439_v44, %v4547_v63  ;;  %v3442_v34 = vadd.f32 %v3441_v46, %v3440_v45  ;;  %v3553_v58 = vpop.f32.mrb[115].mxu1 }
 0x1df   : > { %v3554_v36 = vadd.f32 %v3553_v58, %v3552_v26 }
 0x1e0   : > { %v1752_v14 = vadd.f32 %v3442_v34, %v4550_v0  ;;  %v4638_v12 = vadd.f32 %v3551_v30, %v1749_v18 }
 0x1e2   : > { %v3443_v29 = vpop.f32.mrb[116].mxu0  ;;  %v4640_v59 = vadd.f32 %v3554_v36, %v1752_v14 }
 0x1e3   : > { %v3555_v3 = vpop.f32.mrb[116].mxu1  ;;  %v3444_v52 = vpop.f32.mrb[117].mxu0 }
 0x1e4   : > { %v3445_v24 = vadd.f32 %v3444_v52, %v3443_v29  ;;  %v3556_v9 = vpop.f32.mrb[117].mxu1  ;;  %v3446_v11 = vpop.f32.mrb[118].mxu0 }
 0x1e5   : > { %v3557_v61 = vadd.f32 %v3556_v9, %v3555_v3  ;;  %v3558_v37 = vpop.f32.mrb[118].mxu1  ;;  %v3447_v10 = vpop.f32.mrb[119].mxu0 }
 0x1e6   : > { %v1757_v63 = vadd.f32 %v3445_v24, %v4552_v62  ;;  %v3448_v42 = vadd.f32 %v3447_v10, %v3446_v11  ;;  %v3559_v48 = vpop.f32.mrb[119].mxu1 }
 0x1e7   : > { %v3560_v32 = vadd.f32 %v3559_v48, %v3558_v37 }
 0x1e8   : > { %v1760_v0 = vadd.f32 %v3448_v42, %v4554_v41  ;;  %v4644_v50 = vadd.f32 %v3557_v61, %v1757_v63 }
 0x1ea   : > { %v3449_v4 = vpop.f32.mrb[120].mxu0  ;;  %v4646_v31 = vadd.f32 %v3560_v32, %v1760_v0 }
 0x1eb   : > { %v3561_v25 = vpop.f32.mrb[120].mxu1  ;;  %v3450_v40 = vpop.f32.mrb[121].mxu0 }
 0x1ec   : > { %v3451_v60 = vadd.f32 %v3450_v40, %v3449_v4  ;;  %v3562_v55 = vpop.f32.mrb[121].mxu1  ;;  %v3452_v44 = vpop.f32.mrb[122].mxu0 }
 0x1ed   : > { %v3563_v5 = vadd.f32 %v3562_v55, %v3561_v25  ;;  %v3564_v45 = vpop.f32.mrb[122].mxu1  ;;  %v3453_v30 = vpop.f32.mrb[123].mxu0 }
 0x1ee   : > { %v1765_v62 = vadd.f32 %v3451_v60, %v4556_v15  ;;  %v3454_v26 = vadd.f32 %v3453_v30, %v3452_v44  ;;  %v3565_v46 = vpop.f32.mrb[123].mxu1 }
 0x1ef   : > { %v3566_v18 = vadd.f32 %v3565_v46, %v3564_v45 }
 0x1f0   : > { %v1768_v41 = vadd.f32 %v3454_v26, %v4558_v54  ;;  %v4650_v34 = vadd.f32 %v3563_v5, %v1765_v62 }
 0x1f2   : > { %v3455_v58 = vpop.f32.mrb[124].mxu0  ;;  %v4652_v36 = vadd.f32 %v3566_v18, %v1768_v41 }
 0x1f3   : > { %v3567_v14 = vpop.f32.mrb[124].mxu1  ;;  %v3456_v29 = vpop.f32.mrb[125].mxu0 }
 0x1f4   : > { %v3457_v3 = vadd.f32 %v3456_v29, %v3455_v58  ;;  %v3568_v52 = vpop.f32.mrb[125].mxu1  ;;  %v3458_v24 = vpop.f32.mrb[126].mxu0 }
 0x1f5   : > { %v3569_v9 = vadd.f32 %v3568_v52, %v3567_v14  ;;  %v3570_v11 = vpop.f32.mrb[126].mxu1  ;;  %v3459_v61 = vpop.f32.mrb[127].mxu0 }
 0x1f6   : > { %v1773_v15 = vadd.f32 %v3457_v3, %v4560_v8  ;;  %v3460_v37 = vadd.f32 %v3459_v61, %v3458_v24  ;;  %v3571_v10 = vpop.f32.mrb[127].mxu1 }
 0x1f7   : > { %v3572_v63 = vadd.f32 %v3571_v10, %v3570_v11 }
 0x1f8   : > { %v1776_v54 = vadd.f32 %v3460_v37, %v4562_v28  ;;  %v4657_v42 = vadd.f32 %v3569_v9, %v1773_v15 }
 0x1fa   : > { %v3639_v8 = vpop.f32.mrb[128].mxu0  ;;  %v4669_v48 = vadd.f32 %v3572_v63, %v1776_v54 }
 0x1fb   : > { %v1983_v28 = vadd.f32 %v3639_v8, %v4572_v56  ;;  %v3687_v32 = vpop.f32.mrb[128].mxu1  ;;  %v1974_v0 = vpop.f32.mrb[129].mxu0 }
 0x1fc   : > { %2517 = vst [vmem:[%s4662_s15 + $0x10] sm:$0xff] %v3687_v32  ;;  %v1975_v4 = vadd.f32 %v1974_v0, %v4566_v2  ;;  %v2388_v25 = vpop.f32.mrb[129].mxu1  ;;  %v3640_v40 = vpop.f32.mrb[130].mxu0  ;;  %v2586_v18 = vmul.f32 %v3687_v32, %v3687_v32 }
 0x1fd   : > { %2103 = vst [vmem:[%s4667_s19 + $0x10] sm:$0xff] %v1983_v28  ;;  %2515 = vst [vmem:[%s4662_s15] sm:$0xff] %v2388_v25  ;;  %v2584_v60 = vmul.f32 %v2388_v25, %v2388_v25  ;;  %v1986_v55 = vadd.f32 %v3640_v40, %v4574_v33  ;;  %v3688_v44 = vpop.f32.mrb[130].mxu1  ;;  %v1977_v5 = vpop.f32.mrb[131].mxu0  ;;  %v2172_v33 = vmul.f32 %v1983_v28, %v1983_v28 }
 0x1fe   : > { %2101 = vst [vmem:[%s4667_s19] sm:$0xff] %v1975_v4  ;;  %2518 = vst [vmem:[%s4662_s15 + $0x18] sm:$0xff] %v3688_v44  ;;  %v1978_v56 = vadd.f32 %v1977_v5, %v4568_v20  ;;  %v2391_v45 = vpop.f32.mrb[131].mxu1  ;;  %v2170_v2 = vmul.f32 %v1975_v4, %v1975_v4  ;;  %v2587_v20 = vmul.f32 %v3688_v44, %v3688_v44 }
 0x1ff   : > { %2104 = vst [vmem:[%s4667_s19 + $0x18] sm:$0xff] %v1986_v55  ;;  %2516 = vst [vmem:[%s4662_s15 + $0x8] sm:$0xff] %v2391_v45  ;;  %v2547_v30 = vadd.f32 %v2391_v45, %v2388_v25  ;;  %v2585_v62 = vmul.f32 %v2391_v45, %v2391_v45  ;;  %v2173_v15 = vmul.f32 %v1986_v55, %v1986_v55 }
 0x200   : > { %2102 = vst [vmem:[%s4667_s19 + $0x8] sm:$0xff] %v1978_v56  ;;  %v2133_v26 = vadd.f32 %v1978_v56, %v1975_v4  ;;  %v2171_v46 = vmul.f32 %v1978_v56, %v1978_v56 }
 0x201   : > { %v2548_v41 = vadd.f32 %v3687_v32, %v2547_v30  ;;  %v2616_v58 = vadd.f32 %v2585_v62, %v2584_v60 }
 0x202   : > { %v2134_v14 = vadd.f32 %v2133_v26, %v1983_v28  ;;  %v2202_v29 = vadd.f32 %v2171_v46, %v2170_v2  ;;  %v3643_v3 = vpop.f32.mrb[132].mxu0 }
 0x203   : > { %v2617_v52 = vadd.f32 %v2616_v58, %v2586_v18  ;;  %v1999_v24 = vadd.f32 %v3643_v3, %v4584_v43  ;;  %v3691_v9 = vpop.f32.mrb[132].mxu1  ;;  %v1990_v11 = vpop.f32.mrb[133].mxu0  ;;  %v2549_v61 = vadd.f32 %v3688_v44, %v2548_v41 }
 0x204   : > { %v2203_v37 = vadd.f32 %v2202_v29, %v2172_v33  ;;  %2521 = vst [vmem:[%s4662_s15 + $0x30] sm:$0xff] %v3691_v9  ;;  %v1991_v10 = vadd.f32 %v1990_v11, %v4578_v35  ;;  %v2135_v63 = vadd.f32 %v2134_v14, %v1986_v55  ;;  %v2404_v54 = vpop.f32.mrb[133].mxu1  ;;  %v3644_v8 = vpop.f32.mrb[134].mxu0  ;;  %v2590_v18 = vmul.f32 %v3691_v9, %v3691_v9 }
 0x205   : > { %2107 = vst [vmem:[%s4667_s19 + $0x30] sm:$0xff] %v1999_v24  ;;  %2519 = vst [vmem:[%s4662_s15 + $0x20] sm:$0xff] %v2404_v54  ;;  %v2550_v28 = vadd.f32 %v2549_v61, %v2404_v54  ;;  %v2588_v32 = vmul.f32 %v2404_v54, %v2404_v54  ;;  %v2618_v43 = vadd.f32 %v2617_v52, %v2587_v20  ;;  %v3692_v0 = vpop.f32.mrb[134].mxu1  ;;  %v1993_v4 = vpop.f32.mrb[135].mxu0 }
 0x206   : > { %2105 = vst [vmem:[%s4667_s19 + $0x20] sm:$0xff] %v1991_v10  ;;  %v2136_v25 = vadd.f32 %v2135_v63, %v1991_v10  ;;  %v2174_v40 = vmul.f32 %v1991_v10, %v1991_v10  ;;  %v2204_v60 = vadd.f32 %v2203_v37, %v2173_v15  ;;  %v2002_v35 = vadd.f32 %v3644_v8, %v4586_v47  ;;  %v2407_v55 = vpop.f32.mrb[135].mxu1 }
 0x207   : > { %2522 = vst [vmem:[%s4662_s15 + $0x38] sm:$0xff] %v3692_v0  ;;  %v2619_v44 = vadd.f32 %v2618_v43, %v2588_v32  ;;  %v1994_v5 = vadd.f32 %v1993_v4, %v4580_v49  ;;  %2520 = vst [vmem:[%s4662_s15 + $0x28] sm:$0xff] %v2407_v55  ;;  %v2551_v56 = vadd.f32 %v2550_v28, %v2407_v55 }
 0x208   : > { %v2205_v45 = vadd.f32 %v2204_v60, %v2174_v40  ;;  %2108 = vst [vmem:[%s4667_s19 + $0x38] sm:$0xff] %v2002_v35  ;;  %v2589_v30 = vmul.f32 %v2407_v55, %v2407_v55  ;;  %v2176_v46 = vmul.f32 %v1999_v24, %v1999_v24  ;;  %v2591_v20 = vmul.f32 %v3692_v0, %v3692_v0 }
 0x209   : > { %2106 = vst [vmem:[%s4667_s19 + $0x28] sm:$0xff] %v1994_v5  ;;  %v2137_v62 = vadd.f32 %v2136_v25, %v1994_v5  ;;  %v2175_v2 = vmul.f32 %v1994_v5, %v1994_v5  ;;  %v2552_v26 = vadd.f32 %v3691_v9, %v2551_v56  ;;  %v2177_v15 = vmul.f32 %v2002_v35, %v2002_v35 }
 0x20a   : > { %v2620_v41 = vadd.f32 %v2619_v44, %v2589_v30  ;;  %v3647_v47 = vpop.f32.mrb[136].mxu0 }
 0x20b   : > { %v2138_v58 = vadd.f32 %v2137_v62, %v1999_v24  ;;  %v2206_v33 = vadd.f32 %v2205_v45, %v2175_v2  ;;  %v2015_v49 = vadd.f32 %v3647_v47, %v4596_v16  ;;  %v3695_v14 = vpop.f32.mrb[136].mxu1  ;;  %v2006_v29 = vpop.f32.mrb[137].mxu0  ;;  %v2553_v3 = vadd.f32 %v3692_v0, %v2552_v26 }
 0x20c   : > { %v2621_v52 = vadd.f32 %v2620_v41, %v2590_v18  ;;  %2525 = vst [vmem:[%s4662_s15 + $0x50] sm:$0xff] %v3695_v14  ;;  %v2007_v11 = vadd.f32 %v2006_v29, %v4590_v27  ;;  %v2420_v61 = vpop.f32.mrb[137].mxu1  ;;  %v3648_v9 = vpop.f32.mrb[138].mxu0  ;;  %v2594_v5 = vmul.f32 %v3695_v14, %v3695_v14 }
 0x20d   : > { %v2207_v37 = vadd.f32 %v2206_v33, %v2176_v46  ;;  %2111 = vst [vmem:[%s4667_s19 + $0x50] sm:$0xff] %v2015_v49  ;;  %v2139_v24 = vadd.f32 %v2138_v58, %v2002_v35  ;;  %2523 = vst [vmem:[%s4662_s15 + $0x40] sm:$0xff] %v2420_v61  ;;  %v2554_v16 = vadd.f32 %v2553_v3, %v2420_v61  ;;  %v3696_v10 = vpop.f32.mrb[138].mxu1  ;;  %v2009_v63 = vpop.f32.mrb[139].mxu0 }
 0x20e   : > { %2109 = vst [vmem:[%s4667_s19 + $0x40] sm:$0xff] %v2007_v11  ;;  %v2178_v54 = vmul.f32 %v2007_v11, %v2007_v11  ;;  %v2592_v8 = vmul.f32 %v2420_v61, %v2420_v61  ;;  %v2622_v28 = vadd.f32 %v2621_v52, %v2591_v20  ;;  %v2018_v27 = vadd.f32 %v3648_v9, %v4598_v19  ;;  %v2423_v32 = vpop.f32.mrb[139].mxu1 }
 0x20f   : > { %2526 = vst [vmem:[%s4662_s15 + $0x58] sm:$0xff] %v3696_v10  ;;  %v2140_v43 = vadd.f32 %v2139_v24, %v2007_v11  ;;  %v2208_v0 = vadd.f32 %v2207_v37, %v2177_v15  ;;  %v2010_v4 = vadd.f32 %v2009_v63, %v4592_v7  ;;  %2524 = vst [vmem:[%s4662_s15 + $0x48] sm:$0xff] %v2423_v32 }
 0x210   : > { %v2623_v25 = vadd.f32 %v2622_v28, %v2592_v8  ;;  %2112 = vst [vmem:[%s4667_s19 + $0x58] sm:$0xff] %v2018_v27  ;;  %v2555_v40 = vadd.f32 %v2554_v16, %v2423_v32  ;;  %v2593_v60 = vmul.f32 %v2423_v32, %v2423_v32  ;;  %v2180_v30 = vmul.f32 %v2015_v49, %v2015_v49 }
 0x211   : > { %v2209_v35 = vadd.f32 %v2208_v0, %v2178_v54  ;;  %2110 = vst [vmem:[%s4667_s19 + $0x48] sm:$0xff] %v2010_v4  ;;  %v2141_v55 = vadd.f32 %v2140_v43, %v2010_v4  ;;  %v2179_v44 = vmul.f32 %v2010_v4, %v2010_v4  ;;  %v2595_v18 = vmul.f32 %v3696_v10, %v3696_v10 }
 0x212   : > { %v2556_v56 = vadd.f32 %v3695_v14, %v2555_v40  ;;  %v2624_v45 = vadd.f32 %v2623_v25, %v2593_v60  ;;  %v3651_v19 = vpop.f32.mrb[140].mxu0  ;;  %v2181_v29 = vmul.f32 %v2018_v27, %v2018_v27 }
 0x213   : > { %v2142_v62 = vadd.f32 %v2141_v55, %v2015_v49  ;;  %v2210_v2 = vadd.f32 %v2209_v35, %v2179_v44  ;;  %v2031_v7 = vadd.f32 %v3651_v19, %v4608_v1  ;;  %v3699_v26 = vpop.f32.mrb[140].mxu1  ;;  %v2022_v46 = vpop.f32.mrb[141].mxu0 }
 0x214   : > { %v2625_v41 = vadd.f32 %v2624_v45, %v2594_v5  ;;  %2529 = vst [vmem:[%s4662_s15 + $0x70] sm:$0xff] %v3699_v26  ;;  %v2023_v47 = vadd.f32 %v2022_v46, %v4602_v39  ;;  %v2436_v58 = vpop.f32.mrb[141].mxu1  ;;  %v2557_v33 = vadd.f32 %v3696_v10, %v2556_v56  ;;  %v3652_v14 = vpop.f32.mrb[142].mxu0  ;;  %v2598_v32 = vmul.f32 %v3699_v26, %v3699_v26 }
 0x215   : > { %v2211_v3 = vadd.f32 %v2210_v2, %v2180_v30  ;;  %2115 = vst [vmem:[%s4667_s19 + $0x70] sm:$0xff] %v2031_v7  ;;  %v2143_v49 = vadd.f32 %v2142_v62, %v2018_v27  ;;  %2527 = vst [vmem:[%s4662_s15 + $0x60] sm:$0xff] %v2436_v58  ;;  %v2596_v1 = vmul.f32 %v2436_v58, %v2436_v58  ;;  %v3700_v20 = vpop.f32.mrb[142].mxu1  ;;  %v2025_v52 = vpop.f32.mrb[143].mxu0 }
 0x216   : > { %2113 = vst [vmem:[%s4667_s19 + $0x60] sm:$0xff] %v2023_v47  ;;  %v2182_v11 = vmul.f32 %v2023_v47, %v2023_v47  ;;  %v2558_v61 = vadd.f32 %v2557_v33, %v2436_v58  ;;  %v2626_v9 = vadd.f32 %v2625_v41, %v2595_v18  ;;  %v2034_v39 = vadd.f32 %v3652_v14, %v4610_v13  ;;  %v2439_v15 = vpop.f32.mrb[143].mxu1 }
 0x217   : > { %2530 = vst [vmem:[%s4662_s15 + $0x78] sm:$0xff] %v3700_v20  ;;  %v2144_v37 = vadd.f32 %v2143_v49, %v2023_v47  ;;  %v2212_v24 = vadd.f32 %v2211_v3, %v2181_v29  ;;  %v2026_v16 = vadd.f32 %v2025_v52, %v4604_v21  ;;  %2528 = vst [vmem:[%s4662_s15 + $0x68] sm:$0xff] %v2439_v15 }
 0x218   : > { %v2627_v10 = vadd.f32 %v2626_v9, %v2596_v1  ;;  %2116 = vst [vmem:[%s4667_s19 + $0x78] sm:$0xff] %v2034_v39  ;;  %v2559_v63 = vadd.f32 %v2558_v61, %v2439_v15  ;;  %v2597_v54 = vmul.f32 %v2439_v15, %v2439_v15  ;;  %v2184_v4 = vmul.f32 %v2031_v7, %v2031_v7 }
 0x219   : > { %v2213_v8 = vadd.f32 %v2212_v24, %v2182_v11  ;;  %2114 = vst [vmem:[%s4667_s19 + $0x68] sm:$0xff] %v2026_v16  ;;  %v2145_v28 = vadd.f32 %v2144_v37, %v2026_v16  ;;  %v2183_v27 = vmul.f32 %v2026_v16, %v2026_v16  ;;  %v2599_v55 = vmul.f32 %v3700_v20, %v3700_v20 }
 0x21a   : > { %v2560_v43 = vadd.f32 %v3699_v26, %v2559_v63  ;;  %v2628_v0 = vadd.f32 %v2627_v10, %v2597_v54  ;;  %v3655_v13 = vpop.f32.mrb[144].mxu0  ;;  %v2185_v30 = vmul.f32 %v2034_v39, %v2034_v39 }
 0x21b   : > { %v2146_v25 = vadd.f32 %v2145_v28, %v2031_v7  ;;  %v2214_v40 = vadd.f32 %v2213_v8, %v2183_v27  ;;  %v2047_v21 = vadd.f32 %v3655_v13, %v4620_v51  ;;  %v3703_v60 = vpop.f32.mrb[144].mxu1  ;;  %v2038_v35 = vpop.f32.mrb[145].mxu0 }
 0x21c   : > { %v2629_v44 = vadd.f32 %v2628_v0, %v2598_v32  ;;  %2533 = vst [vmem:[%s4662_s15 + $0x90] sm:$0xff] %v3703_v60  ;;  %v2039_v5 = vadd.f32 %v2038_v35, %v4614_v53  ;;  %v2452_v56 = vpop.f32.mrb[145].mxu1  ;;  %v2561_v45 = vadd.f32 %v3700_v20, %v2560_v43  ;;  %v3656_v19 = vpop.f32.mrb[146].mxu0  ;;  %v2602_v11 = vmul.f32 %v3703_v60, %v3703_v60 }
 0x21d   : > { %v2215_v62 = vadd.f32 %v2214_v40, %v2184_v4  ;;  %2119 = vst [vmem:[%s4667_s19 + $0x90] sm:$0xff] %v2047_v21  ;;  %v2147_v2 = vadd.f32 %v2146_v25, %v2034_v39  ;;  %2531 = vst [vmem:[%s4662_s15 + $0x80] sm:$0xff] %v2452_v56  ;;  %v2600_v51 = vmul.f32 %v2452_v56, %v2452_v56  ;;  %v3704_v7 = vpop.f32.mrb[146].mxu1  ;;  %v2041_v26 = vpop.f32.mrb[147].mxu0 }
 0x21e   : > { %2117 = vst [vmem:[%s4667_s19 + $0x80] sm:$0xff] %v2039_v5  ;;  %v2186_v46 = vmul.f32 %v2039_v5, %v2039_v5  ;;  %v2562_v18 = vadd.f32 %v2561_v45, %v2452_v56  ;;  %v2630_v41 = vadd.f32 %v2629_v44, %v2599_v55  ;;  %v2050_v53 = vadd.f32 %v3656_v19, %v4622_v17  ;;  %v2455_v47 = vpop.f32.mrb[147].mxu1 }
 0x21f   : > { %2534 = vst [vmem:[%s4662_s15 + $0x98] sm:$0xff] %v3704_v7  ;;  %v2148_v58 = vadd.f32 %v2147_v2, %v2039_v5  ;;  %v2216_v33 = vadd.f32 %v2215_v62, %v2185_v30  ;;  %v2042_v14 = vadd.f32 %v2041_v26, %v4616_v23  ;;  %2532 = vst [vmem:[%s4662_s15 + $0x88] sm:$0xff] %v2455_v47 }
 0x220   : > { %v2631_v29 = vadd.f32 %v2630_v41, %v2600_v51  ;;  %2120 = vst [vmem:[%s4667_s19 + $0x98] sm:$0xff] %v2050_v53  ;;  %v2563_v3 = vadd.f32 %v2562_v18, %v2455_v47  ;;  %v2601_v49 = vmul.f32 %v2455_v47, %v2455_v47  ;;  %v2188_v39 = vmul.f32 %v2047_v21, %v2047_v21 }
 0x221   : > { %v2217_v1 = vadd.f32 %v2216_v33, %v2186_v46  ;;  %2118 = vst [vmem:[%s4667_s19 + $0x88] sm:$0xff] %v2042_v14  ;;  %v2149_v20 = vadd.f32 %v2148_v58, %v2042_v14  ;;  %v2187_v52 = vmul.f32 %v2042_v14, %v2042_v14  ;;  %v2603_v10 = vmul.f32 %v3704_v7, %v3704_v7 }
 0x222   : > { %v2564_v61 = vadd.f32 %v3703_v60, %v2563_v3  ;;  %v2632_v9 = vadd.f32 %v2631_v29, %v2601_v49  ;;  %v3659_v17 = vpop.f32.mrb[148].mxu0  ;;  %v2189_v32 = vmul.f32 %v2050_v53, %v2050_v53 }
 0x223   : > { %v2150_v15 = vadd.f32 %v2149_v20, %v2047_v21  ;;  %v2218_v37 = vadd.f32 %v2217_v1, %v2187_v52  ;;  %v2063_v23 = vadd.f32 %v3659_v17, %v4632_v38  ;;  %v3707_v24 = vpop.f32.mrb[148].mxu1  ;;  %v2054_v16 = vpop.f32.mrb[149].mxu0 }
 0x224   : > { %v2633_v63 = vadd.f32 %v2632_v9, %v2602_v11  ;;  %2537 = vst [vmem:[%s4662_s15 + $0xb0] sm:$0xff] %v3707_v24  ;;  %v2055_v54 = vadd.f32 %v2054_v16, %v4626_v57  ;;  %v2468_v8 = vpop.f32.mrb[149].mxu1  ;;  %v2565_v28 = vadd.f32 %v3704_v7, %v2564_v61  ;;  %v3660_v27 = vpop.f32.mrb[150].mxu0  ;;  %v2606_v2 = vmul.f32 %v3707_v24, %v3707_v24 }
 0x225   : > { %v2219_v43 = vadd.f32 %v2218_v37, %v2188_v39  ;;  %2123 = vst [vmem:[%s4667_s19 + $0xb0] sm:$0xff] %v2063_v23  ;;  %v2151_v0 = vadd.f32 %v2150_v15, %v2050_v53  ;;  %2535 = vst [vmem:[%s4662_s15 + $0xa0] sm:$0xff] %v2468_v8  ;;  %v2604_v38 = vmul.f32 %v2468_v8, %v2468_v8  ;;  %v3708_v13 = vpop.f32.mrb[150].mxu1  ;;  %v2057_v4 = vpop.f32.mrb[151].mxu0 }
 0x226   : > { %2121 = vst [vmem:[%s4667_s19 + $0xa0] sm:$0xff] %v2055_v54  ;;  %v2190_v25 = vmul.f32 %v2055_v54, %v2055_v54  ;;  %v2566_v40 = vadd.f32 %v2565_v28, %v2468_v8  ;;  %v2634_v21 = vadd.f32 %v2633_v63, %v2603_v10  ;;  %v2066_v57 = vadd.f32 %v3660_v27, %v4634_v6  ;;  %v2471_v60 = vpop.f32.mrb[151].mxu1 }
 0x227   : > { %2538 = vst [vmem:[%s4662_s15 + $0xb8] sm:$0xff] %v3708_v13  ;;  %v2152_v35 = vadd.f32 %v2151_v0, %v2055_v54  ;;  %v2220_v55 = vadd.f32 %v2219_v43, %v2189_v32  ;;  %v2058_v44 = vadd.f32 %v2057_v4, %v4628_v22  ;;  %2536 = vst [vmem:[%s4662_s15 + $0xa8] sm:$0xff] %v2471_v60 }
 0x228   : > { %v2635_v5 = vadd.f32 %v2634_v21, %v2604_v38  ;;  %2124 = vst [vmem:[%s4667_s19 + $0xb8] sm:$0xff] %v2066_v57  ;;  %v2567_v56 = vadd.f32 %v2566_v40, %v2471_v60  ;;  %v2605_v45 = vmul.f32 %v2471_v60, %v2471_v60  ;;  %v2192_v26 = vmul.f32 %v2063_v23, %v2063_v23 }
 0x229   : > { %v2221_v19 = vadd.f32 %v2220_v55, %v2190_v25  ;;  %2122 = vst [vmem:[%s4667_s19 + $0xa8] sm:$0xff] %v2058_v44  ;;  %v2153_v30 = vadd.f32 %v2152_v35, %v2058_v44  ;;  %v2191_v62 = vmul.f32 %v2058_v44, %v2058_v44  ;;  %v2607_v47 = vmul.f32 %v3708_v13, %v3708_v13 }
 0x22a   : > { %v2568_v51 = vadd.f32 %v3707_v24, %v2567_v56  ;;  %v2636_v7 = vadd.f32 %v2635_v5, %v2605_v45  ;;  %v3663_v6 = vpop.f32.mrb[152].mxu0  ;;  %v2193_v49 = vmul.f32 %v2066_v57, %v2066_v57 }
 0x22b   : > { %v2154_v46 = vadd.f32 %v2153_v30, %v2063_v23  ;;  %v2222_v18 = vadd.f32 %v2221_v19, %v2191_v62  ;;  %v2079_v22 = vadd.f32 %v3663_v6, %v4644_v50  ;;  %v3711_v41 = vpop.f32.mrb[152].mxu1  ;;  %v2070_v53 = vpop.f32.mrb[153].mxu0 }
 0x22c   : > { %v2637_v58 = vadd.f32 %v2636_v7, %v2606_v2  ;;  %2541 = vst [vmem:[%s4662_s15 + $0xd0] sm:$0xff] %v3711_v41  ;;  %v2071_v33 = vadd.f32 %v2070_v53, %v4638_v12  ;;  %v2484_v14 = vpop.f32.mrb[153].mxu1  ;;  %v2569_v29 = vadd.f32 %v3708_v13, %v2568_v51  ;;  %v3664_v3 = vpop.f32.mrb[154].mxu0  ;;  %v2610_v28 = vmul.f32 %v3711_v41, %v3711_v41 }
 0x22d   : > { %v2223_v1 = vadd.f32 %v2222_v18, %v2192_v26  ;;  %2127 = vst [vmem:[%s4667_s19 + $0xd0] sm:$0xff] %v2079_v22  ;;  %v2155_v20 = vadd.f32 %v2154_v46, %v2066_v57  ;;  %2539 = vst [vmem:[%s4662_s15 + $0xc0] sm:$0xff] %v2484_v14  ;;  %v2608_v50 = vmul.f32 %v2484_v14, %v2484_v14  ;;  %v3712_v52 = vpop.f32.mrb[154].mxu1  ;;  %v2073_v11 = vpop.f32.mrb[155].mxu0 }
 0x22e   : > { %2125 = vst [vmem:[%s4667_s19 + $0xc0] sm:$0xff] %v2071_v33  ;;  %v2194_v61 = vmul.f32 %v2071_v33, %v2071_v33  ;;  %v2570_v9 = vadd.f32 %v2569_v29, %v2484_v14  ;;  %v2638_v17 = vadd.f32 %v2637_v58, %v2607_v47  ;;  %v2082_v12 = vadd.f32 %v3664_v3, %v4646_v31  ;;  %v2487_v39 = vpop.f32.mrb[155].mxu1 }
 0x22f   : > { %2542 = vst [vmem:[%s4662_s15 + $0xd8] sm:$0xff] %v3712_v52  ;;  %v2156_v15 = vadd.f32 %v2155_v20, %v2071_v33  ;;  %v2224_v37 = vadd.f32 %v2223_v1, %v2193_v49  ;;  %v2074_v23 = vadd.f32 %v2073_v11, %v4640_v59  ;;  %2540 = vst [vmem:[%s4662_s15 + $0xc8] sm:$0xff] %v2487_v39 }
 0x230   : > { %v2639_v24 = vadd.f32 %v2638_v17, %v2608_v50  ;;  %2128 = vst [vmem:[%s4667_s19 + $0xd8] sm:$0xff] %v2082_v12  ;;  %v2571_v16 = vadd.f32 %v2570_v9, %v2487_v39  ;;  %v2609_v10 = vmul.f32 %v2487_v39, %v2487_v39  ;;  %v2196_v43 = vmul.f32 %v2079_v22, %v2079_v22 }
 0x231   : > { %v2225_v63 = vadd.f32 %v2224_v37, %v2194_v61  ;;  %2126 = vst [vmem:[%s4667_s19 + $0xc8] sm:$0xff] %v2074_v23  ;;  %v2157_v54 = vadd.f32 %v2156_v15, %v2074_v23  ;;  %v2195_v8 = vmul.f32 %v2074_v23, %v2074_v23  ;;  %v2611_v25 = vmul.f32 %v3712_v52, %v3712_v52 }
 0x232   : > { %v2572_v27 = vadd.f32 %v3711_v41, %v2571_v16  ;;  %v2640_v32 = vadd.f32 %v2639_v24, %v2609_v10  ;;  %v3667_v31 = vpop.f32.mrb[156].mxu0  ;;  %v2197_v55 = vmul.f32 %v2082_v12, %v2082_v12 }
 0x233   : > { %v2158_v0 = vadd.f32 %v2157_v54, %v2079_v22  ;;  %v2226_v38 = vadd.f32 %v2225_v63, %v2195_v8  ;;  %v2095_v59 = vadd.f32 %v3667_v31, %v4657_v42  ;;  %v3715_v13 = vpop.f32.mrb[156].mxu1  ;;  %v2086_v4 = vpop.f32.mrb[157].mxu0 }
 0x234   : > { %v2641_v40 = vadd.f32 %v2640_v32, %v2610_v28  ;;  %2545 = vst [vmem:[%s4662_s15 + $0xf0] sm:$0xff] %v3715_v13  ;;  %v2087_v21 = vadd.f32 %v2086_v4, %v4650_v34  ;;  %v2500_v57 = vpop.f32.mrb[157].mxu1  ;;  %v2573_v60 = vadd.f32 %v3712_v52, %v2572_v27  ;;  %v3668_v35 = vpop.f32.mrb[158].mxu0  ;;  %v2614_v47 = vmul.f32 %v3715_v13, %v3715_v13 }
 0x235   : > { %v2227_v44 = vadd.f32 %v2226_v38, %v2196_v43  ;;  %2131 = vst [vmem:[%s4667_s19 + $0xf0] sm:$0xff] %v2095_v59  ;;  %v2159_v5 = vadd.f32 %v2158_v0, %v2082_v12  ;;  %2543 = vst [vmem:[%s4662_s15 + $0xe0] sm:$0xff] %v2500_v57  ;;  %v2612_v42 = vmul.f32 %v2500_v57, %v2500_v57  ;;  %v3716_v56 = vpop.f32.mrb[158].mxu1  ;;  %v2089_v45 = vpop.f32.mrb[159].mxu0 }
 0x236   : > { %2129 = vst [vmem:[%s4667_s19 + $0xe0] sm:$0xff] %v2087_v21  ;;  %v2198_v19 = vmul.f32 %v2087_v21, %v2087_v21  ;;  %v2574_v30 = vadd.f32 %v2573_v60, %v2500_v57  ;;  %v2642_v62 = vadd.f32 %v2641_v40, %v2611_v25  ;;  %v2098_v34 = vadd.f32 %v3668_v35, %v4669_v48  ;;  %v2503_v2 = vpop.f32.mrb[159].mxu1 }
 0x237   : > { %2546 = vst [vmem:[%s4662_s15 + $0xf8] sm:$0xff] %v3716_v56  ;;  %v2160_v51 = vadd.f32 %v2159_v5, %v2087_v21  ;;  %v2228_v7 = vadd.f32 %v2227_v44, %v2197_v55  ;;  %v2090_v6 = vadd.f32 %v2089_v45, %v4652_v36  ;;  %2544 = vst [vmem:[%s4662_s15 + $0xe8] sm:$0xff] %v2503_v2 }
 0x238   : > { %v2643_v26 = vadd.f32 %v2642_v62, %v2612_v42  ;;  %2132 = vst [vmem:[%s4667_s19 + $0xf8] sm:$0xff] %v2098_v34  ;;  %v2575_v46 = vadd.f32 %v2574_v30, %v2503_v2  ;;  %v2613_v18 = vmul.f32 %v2503_v2, %v2503_v2  ;;  %v2200_v14 = vmul.f32 %v2095_v59, %v2095_v59 }
 0x239   : > { %v2229_v22 = vadd.f32 %v2228_v7, %v2198_v19  ;;  %2130 = vst [vmem:[%s4667_s19 + $0xe8] sm:$0xff] %v2090_v6  ;;  %v2161_v41 = vadd.f32 %v2160_v51, %v2090_v6  ;;  %v2199_v53 = vmul.f32 %v2090_v6, %v2090_v6  ;;  %v2615_v3 = vmul.f32 %v3716_v56, %v3716_v56 }
 0x23a   : > { %v2576_v58 = vadd.f32 %v3715_v13, %v2575_v46  ;;  %v2644_v33 = vadd.f32 %v2643_v26, %v2613_v18  ;;  %v2201_v20 = vmul.f32 %v2098_v34, %v2098_v34 }
 0x23b   : > { %v2162_v48 = vadd.f32 %v2161_v41, %v2095_v59  ;;  %v2230_v29 = vadd.f32 %v2229_v22, %v2199_v53 }
 0x23c   : > { %v2577_v49 = vadd.f32 %v3716_v56, %v2576_v58  ;;  %v2645_v1 = vadd.f32 %v2644_v33, %v2614_v47 }
 0x23d   : > { %v2163_v36 = vadd.f32 %v2162_v48, %v2098_v34  ;;  %v2231_v50 = vadd.f32 %v2230_v29, %v2200_v14 }
 0x23e   : > { %v2578_v52 = vrot.slane %v2577_v49, 4  ;;  %v2646_v11 = vadd.f32 %v2645_v1, %v2615_v3 }
 0x23f   : > { %v2164_v61 = vrot.slane %v2163_v36, 4  ;;  %v2232_v9 = vadd.f32 %v2231_v50, %v2201_v20 }
 0x240   : > { %v2579_v17 = vadd.f32 %v2578_v52, %v2577_v49  ;;  %v2647_v12 = vrot.slane %v2646_v11, 4 }
 0x241   : > { %v2165_v39 = vadd.f32 %v2164_v61, %v2163_v36  ;;  %v2233_v15 = vrot.slane %v2232_v9, 4 }
 0x242   : > { %v2580_v37 = vrot.slane %v2579_v17, 2  ;;  %v2648_v23 = vadd.f32 %v2647_v12, %v2646_v11 }
 0x243   : > { %v2166_v24 = vrot.slane %v2165_v39, 2  ;;  %v2234_v16 = vadd.f32 %v2233_v15, %v2232_v9 }
 0x244   : > { %v2581_v10 = vadd.f32 %v2580_v37, %v2579_v17  ;;  %v2649_v63 = vrot.slane %v2648_v23, 2 }
 0x245   : > { %v2167_v54 = vadd.f32 %v2166_v24, %v2165_v39  ;;  %v2235_v8 = vrot.slane %v2234_v16, 2 }
 0x246   : > { %v2582_v28 = vrot.slane %v2581_v10, 1  ;;  %v2650_v27 = vadd.f32 %v2649_v63, %v2648_v23 }
 0x247   : > { %v2168_v32 = vrot.slane %v2167_v54, 1  ;;  %v2236_v31 = vadd.f32 %v2235_v8, %v2234_v16 }
 0x248   : > { %v2651_v43 = vrot.slane %v2650_v27, 1  ;;  %v2583_v38 = vadd.f32 %v2582_v28, %v2581_v10 }
 0x249   : > { %v2237_v0 = vrot.slane %v2236_v31, 1  ;;  %v2169_v13 = vadd.f32 %v2168_v32, %v2167_v54 }
 0x24a   : > { %v2652_v59 = vadd.f32 %v2651_v43, %v2650_v27 }
 0x24b   : > { %v2238_v4 = vadd.f32 %v2237_v0, %v2236_v31 }
 0x24c   : > { %v2653_v25 = vsel %vm2239_vm0, %v2583_v38, %v2652_v59 }
 0x24d   : > { %v2240_v40 = vsel %vm2239_vm0, %v2169_v13, %v2238_v4  ;;  %2654 = vst [vmem:[%s284_s25] sm:$0x3] %v2653_v25 }
 0x24e   : > { %2241 = vst [vmem:[%s275_s28] sm:$0x3] %v2240_v40 }
 0x24f PF: > { %s17_s21 = sadd.s32 1, %s3812_s21  }
 0x250   : > { %p14_p4 = scmp.ge.s32.totalorder %s17_s21, 4  }
 0x252   :  { %16 = sbr.rel (!%p14_p4) target bundleno = 1 (0x1), region = 100 }

</bundles_post_ra>
